<compile_context>
chip_gen: v5e
topology: v5e:2x2
jax: 0.10.0
libtpu: 0.0.40
codegen_flags: <defaults>
</compile_context>

<pallas_src>
import functools

import jax
import jax.numpy as jnp
from jax import lax
from jax.experimental import pallas as pl
from jax.experimental.pallas import tpu as pltpu


def _round_up(x, m):
    return (x + m - 1) // m * m


# --------------------------------------------------------------------------
# In-kernel helpers (operate on VMEM values)
# --------------------------------------------------------------------------
def _pad_hw1(x):
    """Zero-pad a (H, W, C) value by 1 on each side of H and W."""
    H, W, C = x.shape
    dt = x.dtype
    zrow = jnp.zeros((1, W, C), dt)
    x = jnp.concatenate([zrow, x, zrow], axis=0)          # (H+2, W,   C)
    zcol = jnp.zeros((H + 2, 1, C), dt)
    return jnp.concatenate([zcol, x, zcol], axis=1)       # (H+2, W+2, C)


def _im2col_3x3(x):
    """(H, W, C) -> (H*W, 9*C) patches for a 3x3, padding=1, stride=1 conv."""
    H, W, C = x.shape
    xp = _pad_hw1(x)
    taps = [xp[dh:dh + H, dw:dw + W, :] for dh in range(3) for dw in range(3)]
    return jnp.concatenate(taps, axis=-1).reshape(H * W, 9 * C)


# --------------------------------------------------------------------------
# Pass 1: conv1 + bias + ReLU, per-image BN partial sums
# --------------------------------------------------------------------------
def _conv1_bn_stats_kernel(x_ref, w_ref, b_ref, h1_ref, stats_ref, *, mxu_dtype):
    # x_ref: (H, W, Cin) f32, w_ref: (9*Cin, Cp) mxu_dtype, b_ref: (1, Cp) f32
    patches = _im2col_3x3(x_ref[...]).astype(mxu_dtype)            # (H*W, 9*Cin)
    acc = jnp.dot(patches, w_ref[...],
                  preferred_element_type=jnp.float32)              # (H*W, Cp) f32
    h1 = jnp.maximum(acc + b_ref[...], 0.0)                        # bias + ReLU

    # Per-image BN partials (reduced across the batch in plain JAX afterwards).
    stats_ref[0:1, :] = jnp.sum(h1, axis=0, keepdims=True)
    stats_ref[1:2, :] = jnp.sum(h1 * h1, axis=0, keepdims=True)

    # Lane-dense (H*W, Cp) store of the intermediate in bf16.
    h1_ref[...] = h1.astype(h1_ref.dtype)


# --------------------------------------------------------------------------
# Pass 2: fused BN affine + conv2 + bias + ReLU
# --------------------------------------------------------------------------
def _bn_conv2_kernel(h1_ref, scale_ref, shift_ref, w_ref, b_ref, out_ref,
                     *, H, W, mxu_dtype):
    Cp = h1_ref.shape[-1]
    h1 = h1_ref[...].astype(jnp.float32)                           # (H*W, Cp)
    h1n = h1 * scale_ref[...] + shift_ref[...]                     # fused BN affine

    patches = _im2col_3x3(h1n.reshape(H, W, Cp)).astype(mxu_dtype)  # (H*W, 9*Cp)
    acc = jnp.dot(patches, w_ref[...],
                  preferred_element_type=jnp.float32)               # (H*W, Cp)
    out_ref[...] = jnp.maximum(acc + b_ref[...], 0.0).astype(out_ref.dtype)


# --------------------------------------------------------------------------
# Public wrapper (NCHW in / NCHW out, matching the PyTorch module)
# --------------------------------------------------------------------------
def block_forward(x_nchw, params, *, eps=1e-5, mxu_dtype=jnp.bfloat16,
                  h1_dtype=jnp.bfloat16):
    w1, b1, gamma, beta, w2, b2 = (params["w1"], params["b1"], params["gamma"],
                                   params["beta"], params["w2"], params["b2"])
    N, Cin, H, W = x_nchw.shape
    Cout = w1.shape[0]
    Cp = _round_up(Cout, 128)          # lane-pad output channels

    # NCHW -> NHWC (interface glue; channels live on the lane axis in-kernel).
    x_nhwc = jnp.transpose(x_nchw, (0, 2, 3, 1))

    # Conv weights: OIHW -> (kh, kw, cin, cout) -> (9*cin, Cp), zero-padded cout.
    w1_m = jnp.transpose(w1, (2, 3, 1, 0)).reshape(9 * Cin, Cout)
    w1_m = jnp.pad(w1_m, ((0, 0), (0, Cp - Cout))).astype(mxu_dtype)
    w2_t = jnp.transpose(w2, (2, 3, 1, 0))                         # (3,3,Cout,Cout)
    w2_m = jnp.pad(w2_t, ((0, 0), (0, 0), (0, Cp - Cout), (0, Cp - Cout)))
    w2_m = w2_m.reshape(9 * Cp, Cp).astype(mxu_dtype)
    b1_p = jnp.pad(b1, (0, Cp - Cout)).reshape(1, Cp)
    b2_p = jnp.pad(b2, (0, Cp - Cout)).reshape(1, Cp)
    gamma_p = jnp.pad(gamma, (0, Cp - Cout))    # zeros on padded channels
    beta_p = jnp.pad(beta, (0, Cp - Cout))

    cparams = pltpu.CompilerParams(
        dimension_semantics=("parallel",),
        vmem_limit_bytes=32 * 1024 * 1024,
    )

    # ---------------- Pass 1: conv1 + ReLU + BN partials ----------------
    h1, stats = pl.pallas_call(
        functools.partial(_conv1_bn_stats_kernel, mxu_dtype=mxu_dtype),
        grid=(N,),
        in_specs=[
            pl.BlockSpec((None, H, W, Cin), lambda n: (n, 0, 0, 0)),
            pl.BlockSpec((9 * Cin, Cp), lambda n: (0, 0)),
            pl.BlockSpec((1, Cp), lambda n: (0, 0)),
        ],
        out_specs=(
            pl.BlockSpec((None, H * W, Cp), lambda n: (n, 0, 0)),
            pl.BlockSpec((None, 2, Cp), lambda n: (n, 0, 0)),
        ),
        out_shape=(
            jax.ShapeDtypeStruct((N, H * W, Cp), h1_dtype),
            jax.ShapeDtypeStruct((N, 2, Cp), jnp.float32),
        ),
        compiler_params=cparams,
    )(x_nhwc, w1_m, b1_p)

    # ------ BN statistics over the whole batch (tiny reduction in JAX) ------
    cnt = jnp.float32(N * H * W)
    mean = jnp.sum(stats[:, 0, :], axis=0) / cnt
    var = jnp.maximum(jnp.sum(stats[:, 1, :], axis=0) / cnt - mean * mean, 0.0)
    scale = gamma_p * lax.rsqrt(var + eps)      # 0 on padded channels
    shift = beta_p - mean * scale
    scale = scale.reshape(1, Cp)
    shift = shift.reshape(1, Cp)

    # ---------------- Pass 2: BN affine + conv2 + ReLU ----------------
    out = pl.pallas_call(
        functools.partial(_bn_conv2_kernel, H=H, W=W, mxu_dtype=mxu_dtype),
        grid=(N,),
        in_specs=[
            pl.BlockSpec((None, H * W, Cp), lambda n: (n, 0, 0)),
            pl.BlockSpec((1, Cp), lambda n: (0, 0)),
            pl.BlockSpec((1, Cp), lambda n: (0, 0)),
            pl.BlockSpec((9 * Cp, Cp), lambda n: (0, 0)),
            pl.BlockSpec((1, Cp), lambda n: (0, 0)),
        ],
        out_specs=pl.BlockSpec((None, H * W, Cp), lambda n: (n, 0, 0)),
        out_shape=jax.ShapeDtypeStruct((N, H * W, Cp), jnp.float32),
        compiler_params=cparams,
    )(h1, scale, shift, w2_m, b2_p)

    # Drop padded channels, restore NCHW.
    out = out[:, :, :Cout].reshape(N, H, W, Cout)
    return jnp.transpose(out, (0, 3, 1, 2))


# --------------------------------------------------------------------------
# Pure-JAX reference (for the in-script correctness check)
# --------------------------------------------------------------------------
def block_reference(x, params, eps=1e-5):
    dn = ("NCHW", "OIHW", "NCHW")
    y = lax.conv_general_dilated(x, params["w1"], (1, 1), [(1, 1), (1, 1)],
                                 dimension_numbers=dn)
    y = jnp.maximum(y + params["b1"][None, :, None, None], 0.0)
    mean = jnp.mean(y, axis=(0, 2, 3), keepdims=True)
    var = jnp.var(y, axis=(0, 2, 3), keepdims=True)        # biased, training mode
    y = (y - mean) * lax.rsqrt(var + eps)
    y = y * params["gamma"][None, :, None, None] + params["beta"][None, :, None, None]
    y = lax.conv_general_dilated(y, params["w2"], (1, 1), [(1, 1), (1, 1)],
                                 dimension_numbers=dn)
    return jnp.maximum(y + params["b2"][None, :, None, None], 0.0)


def init_params(key, in_ch, out_ch):
    k1, k2, k3, k4 = jax.random.split(key, 4)
    s1 = 1.0 / jnp.sqrt(in_ch * 9.0)
    s2 = 1.0 / jnp.sqrt(out_ch * 9.0)
    return {
        "w1": jax.random.uniform(k1, (out_ch, in_ch, 3, 3), jnp.float32, -s1, s1),
        "b1": jax.random.uniform(k2, (out_ch,), jnp.float32, -s1, s1),
        "gamma": jnp.ones((out_ch,), jnp.float32),
        "beta": jnp.zeros((out_ch,), jnp.float32),
        "w2": jax.random.uniform(k3, (out_ch, out_ch, 3, 3), jnp.float32, -s2, s2),
        "b2": jax.random.uniform(k4, (out_ch,), jnp.float32, -s2, s2),
    }


if __name__ == "__main__":
    key = jax.random.PRNGKey(0)
    kx, kp = jax.random.split(key)

    N, Cin, Cout, H, W = 2, 4, 8, 16, 16
    x = jax.random.normal(kx, (N, Cin, H, W), jnp.float32)
    params = init_params(kp, Cin, Cout)

    fwd = jax.jit(block_forward)
    y = fwd(x, params)
    jax.block_until_ready(y)
    assert y.shape == (N, Cout, H, W), y.shape

    # Correctness vs pure-JAX f32 reference (bf16 MXU inputs -> loose tolerance).
    y_ref = block_reference(x, params)
    rel_err = jnp.linalg.norm(y - y_ref) / (jnp.linalg.norm(y_ref) + 1e-12)
    assert float(rel_err) < 5e-2, float(rel_err)

    print("KERNEL_OK")
</pallas_src>

<mosaic_0001>
module attributes {stable_mosaic.version = 11 : i64} {
  func.func @_conv1_bn_stats_kernel(%arg0: i32, %arg1: memref<1x16x16x4xf32, #tpu.memory_space<vmem>>, %arg2: memref<36x128xbf16, #tpu.memory_space<vmem>>, %arg3: memref<1x128xf32, #tpu.memory_space<vmem>>, %arg4: memref<1x256x128xbf16, #tpu.memory_space<vmem>>, %arg5: memref<1x2x128xf32, #tpu.memory_space<vmem>>) attributes {dimension_semantics = [#tpu.dimension_semantics<parallel>], iteration_bounds = array<i64: 2>, scalar_prefetch = 0 : i64, scratch_operands = 0 : i64, tpu.core_type = #tpu.core_type<tc>, window_params = [{transform_indices = @transform_0, window_bounds = array<i64: 1, 16, 16, 4>}, {pipeline_mode = #tpu.pipeline_mode<synchronous>, transform_indices = @transform_1, window_bounds = array<i64: 36, 128>}, {pipeline_mode = #tpu.pipeline_mode<synchronous>, transform_indices = @transform_2, window_bounds = array<i64: 1, 128>}, {transform_indices = @transform_3, window_bounds = array<i64: 1, 256, 128>}, {transform_indices = @transform_4, window_bounds = array<i64: 1, 2, 128>}]} {
    %c0 = arith.constant 0 : index
    %c0_0 = arith.constant 0 : index
    %c0_1 = arith.constant 0 : index
    %c0_2 = arith.constant 0 : index
    %0 = vector.load %arg1[%c0, %c0_0, %c0_1, %c0_2] : memref<1x16x16x4xf32, #tpu.memory_space<vmem>>, vector<1x16x16x4xf32>
    %1 = vector.shape_cast %0 : vector<1x16x16x4xf32> to vector<16x16x4xf32>
    %cst = arith.constant 0.000000e+00 : f32
    %2 = vector.broadcast %cst : f32 to vector<1x16x4xf32>
    %3 = tpu.concatenate %2, %1, %2 in 0 : vector<1x16x4xf32>, vector<16x16x4xf32>, vector<1x16x4xf32> -> vector<18x16x4xf32>
    %cst_3 = arith.constant 0.000000e+00 : f32
    %4 = vector.broadcast %cst_3 : f32 to vector<18x1x4xf32>
    %5 = tpu.concatenate %4, %3, %4 in 1 : vector<18x1x4xf32>, vector<18x16x4xf32>, vector<18x1x4xf32> -> vector<18x18x4xf32>
    %6 = vector.extract_strided_slice %5 {offsets = [0, 0, 0], sizes = [16, 16, 4], strides = [1, 1, 1]} : vector<18x18x4xf32> to vector<16x16x4xf32>
    %7 = vector.extract_strided_slice %5 {offsets = [0, 1, 0], sizes = [16, 16, 4], strides = [1, 1, 1]} : vector<18x18x4xf32> to vector<16x16x4xf32>
    %8 = vector.extract_strided_slice %5 {offsets = [0, 2, 0], sizes = [16, 16, 4], strides = [1, 1, 1]} : vector<18x18x4xf32> to vector<16x16x4xf32>
    %9 = vector.extract_strided_slice %5 {offsets = [1, 0, 0], sizes = [16, 16, 4], strides = [1, 1, 1]} : vector<18x18x4xf32> to vector<16x16x4xf32>
    %10 = vector.extract_strided_slice %5 {offsets = [1, 1, 0], sizes = [16, 16, 4], strides = [1, 1, 1]} : vector<18x18x4xf32> to vector<16x16x4xf32>
    %11 = vector.extract_strided_slice %5 {offsets = [1, 2, 0], sizes = [16, 16, 4], strides = [1, 1, 1]} : vector<18x18x4xf32> to vector<16x16x4xf32>
    %12 = vector.extract_strided_slice %5 {offsets = [2, 0, 0], sizes = [16, 16, 4], strides = [1, 1, 1]} : vector<18x18x4xf32> to vector<16x16x4xf32>
    %13 = vector.extract_strided_slice %5 {offsets = [2, 1, 0], sizes = [16, 16, 4], strides = [1, 1, 1]} : vector<18x18x4xf32> to vector<16x16x4xf32>
    %14 = vector.extract_strided_slice %5 {offsets = [2, 2, 0], sizes = [16, 16, 4], strides = [1, 1, 1]} : vector<18x18x4xf32> to vector<16x16x4xf32>
    %15 = tpu.concatenate %6, %7, %8, %9, %10, %11, %12, %13, %14 in 2 : vector<16x16x4xf32>, vector<16x16x4xf32>, vector<16x16x4xf32>, vector<16x16x4xf32>, vector<16x16x4xf32>, vector<16x16x4xf32>, vector<16x16x4xf32>, vector<16x16x4xf32>, vector<16x16x4xf32> -> vector<16x16x36xf32>
    %16 = vector.shape_cast %15 : vector<16x16x36xf32> to vector<256x36xf32>
    %17 = arith.truncf %16 : vector<256x36xf32> to vector<256x36xbf16>
    %c0_4 = arith.constant 0 : index
    %c0_5 = arith.constant 0 : index
    %18 = vector.load %arg2[%c0_4, %c0_5] : memref<36x128xbf16, #tpu.memory_space<vmem>>, vector<36x128xbf16>
    %cst_6 = arith.constant dense<0.000000e+00> : vector<256x128xf32>
    %19 = tpu.matmul %17, %18, %cst_6 {dimension_numbers = #tpu.dot_dimension_numbers<[1], [0], [0], [1], [0, 0, 1, 1], [], []>} : vector<256x36xbf16>, vector<36x128xbf16>, vector<256x128xf32> -> vector<256x128xf32>
    %c0_7 = arith.constant 0 : index
    %c0_8 = arith.constant 0 : index
    %20 = vector.load %arg3[%c0_7, %c0_8] : memref<1x128xf32, #tpu.memory_space<vmem>>, vector<1x128xf32>
    %21 = vector.broadcast %20 : vector<1x128xf32> to vector<256x128xf32>
    %22 = arith.addf %19, %21 : vector<256x128xf32>
    %cst_9 = arith.constant 0.000000e+00 : f32
    %23 = vector.broadcast %cst_9 : f32 to vector<256x128xf32>
    %24 = arith.maximumf %22, %23 : vector<256x128xf32>
    %cst_10 = arith.constant dense<0.000000e+00> : vector<128xf32>
    %25 = vector.multi_reduction <add>, %24, %cst_10 [0] : vector<256x128xf32> to vector<128xf32>
    %26 = vector.shape_cast %25 : vector<128xf32> to vector<1x128xf32>
    %c0_11 = arith.constant 0 : index
    %c0_12 = arith.constant 0 : index
    %c0_13 = arith.constant 0 : index
    %27 = vector.load %arg5[%c0_11, %c0_12, %c0_13] : memref<1x2x128xf32, #tpu.memory_space<vmem>>, vector<1x1x128xf32>
    %28 = vector.shape_cast %27 : vector<1x1x128xf32> to vector<1x128xf32>
    %29 = vector.shape_cast %26 : vector<1x128xf32> to vector<1x1x128xf32>
    tpu.vector_store %arg5[%c0_11, %c0_12, %c0_13], %29 {strides = array<i32>} : memref<1x2x128xf32, #tpu.memory_space<vmem>>, vector<1x1x128xf32>,
    %30 = arith.mulf %24, %24 : vector<256x128xf32>
    %cst_14 = arith.constant dense<0.000000e+00> : vector<128xf32>
    %31 = vector.multi_reduction <add>, %30, %cst_14 [0] : vector<256x128xf32> to vector<128xf32>
    %32 = vector.shape_cast %31 : vector<128xf32> to vector<1x128xf32>
    %c0_15 = arith.constant 0 : index
    %c1 = arith.constant 1 : index
    %c0_16 = arith.constant 0 : index
    %33 = vector.load %arg5[%c0_15, %c1, %c0_16] : memref<1x2x128xf32, #tpu.memory_space<vmem>>, vector<1x1x128xf32>
    %34 = vector.shape_cast %33 : vector<1x1x128xf32> to vector<1x128xf32>
    %35 = vector.shape_cast %32 : vector<1x128xf32> to vector<1x1x128xf32>
    tpu.vector_store %arg5[%c0_15, %c1, %c0_16], %35 {strides = array<i32>} : memref<1x2x128xf32, #tpu.memory_space<vmem>>, vector<1x1x128xf32>,
    %36 = arith.truncf %24 : vector<256x128xf32> to vector<256x128xbf16>
    %c0_17 = arith.constant 0 : index
    %c0_18 = arith.constant 0 : index
    %c0_19 = arith.constant 0 : index
    %37 = vector.load %arg4[%c0_17, %c0_18, %c0_19] : memref<1x256x128xbf16, #tpu.memory_space<vmem>>, vector<1x256x128xbf16>
    %38 = vector.shape_cast %37 : vector<1x256x128xbf16> to vector<256x128xbf16>
    %39 = vector.shape_cast %36 : vector<256x128xbf16> to vector<1x256x128xbf16>
    tpu.vector_store %arg4[%c0_17, %c0_18, %c0_19], %39 {strides = array<i32>} : memref<1x256x128xbf16, #tpu.memory_space<vmem>>, vector<1x256x128xbf16>,
    return
  }
  func.func @transform_0(%arg0: i32) -> (i32, i32, i32, i32) {
    %c0_i32 = arith.constant 0 : i32
    %c0_i32_0 = arith.constant 0 : i32
    %c0_i32_1 = arith.constant 0 : i32
    %c0_i32_2 = arith.constant 0 : i32
    return %arg0, %c0_i32, %c0_i32_0, %c0_i32_1 : i32, i32, i32, i32
  }
  func.func @transform_1(%arg0: i32) -> (i32, i32) {
    %c0_i32 = arith.constant 0 : i32
    %c0_i32_0 = arith.constant 0 : i32
    %c0_i32_1 = arith.constant 0 : i32
    return %c0_i32, %c0_i32_0 : i32, i32
  }
  func.func @transform_2(%arg0: i32) -> (i32, i32) {
    %c0_i32 = arith.constant 0 : i32
    %c0_i32_0 = arith.constant 0 : i32
    %c0_i32_1 = arith.constant 0 : i32
    return %c0_i32, %c0_i32_0 : i32, i32
  }
  func.func @transform_3(%arg0: i32) -> (i32, i32, i32) {
    %c0_i32 = arith.constant 0 : i32
    %c0_i32_0 = arith.constant 0 : i32
    %c0_i32_1 = arith.constant 0 : i32
    return %arg0, %c0_i32, %c0_i32_0 : i32, i32, i32
  }
  func.func @transform_4(%arg0: i32) -> (i32, i32, i32) {
    %c0_i32 = arith.constant 0 : i32
    %c0_i32_0 = arith.constant 0 : i32
    %c0_i32_1 = arith.constant 0 : i32
    return %arg0, %c0_i32, %c0_i32_0 : i32, i32, i32
  }
}

module attributes {stable_mosaic.version = 11 : i64} {
  func.func @_bn_conv2_kernel(%arg0: i32, %arg1: memref<1x256x128xbf16, #tpu.memory_space<vmem>>, %arg2: memref<1x128xf32, #tpu.memory_space<vmem>>, %arg3: memref<1x128xf32, #tpu.memory_space<vmem>>, %arg4: memref<1152x128xbf16, #tpu.memory_space<vmem>>, %arg5: memref<1x128xf32, #tpu.memory_space<vmem>>, %arg6: memref<1x256x128xf32, #tpu.memory_space<vmem>>) attributes {dimension_semantics = [#tpu.dimension_semantics<parallel>], iteration_bounds = array<i64: 2>, scalar_prefetch = 0 : i64, scratch_operands = 0 : i64, tpu.core_type = #tpu.core_type<tc>, window_params = [{transform_indices = @transform_0, window_bounds = array<i64: 1, 256, 128>}, {pipeline_mode = #tpu.pipeline_mode<synchronous>, transform_indices = @transform_1, window_bounds = array<i64: 1, 128>}, {pipeline_mode = #tpu.pipeline_mode<synchronous>, transform_indices = @transform_2, window_bounds = array<i64: 1, 128>}, {pipeline_mode = #tpu.pipeline_mode<synchronous>, transform_indices = @transform_3, window_bounds = array<i64: 1152, 128>}, {pipeline_mode = #tpu.pipeline_mode<synchronous>, transform_indices = @transform_4, window_bounds = array<i64: 1, 128>}, {transform_indices = @transform_5, window_bounds = array<i64: 1, 256, 128>}]} {
    %c0 = arith.constant 0 : index
    %c0_0 = arith.constant 0 : index
    %c0_1 = arith.constant 0 : index
    %0 = vector.load %arg1[%c0, %c0_0, %c0_1] : memref<1x256x128xbf16, #tpu.memory_space<vmem>>, vector<1x256x128xbf16>
    %1 = vector.shape_cast %0 : vector<1x256x128xbf16> to vector<256x128xbf16>
    %2 = arith.extf %1 : vector<256x128xbf16> to vector<256x128xf32>
    %c0_2 = arith.constant 0 : index
    %c0_3 = arith.constant 0 : index
    %3 = vector.load %arg2[%c0_2, %c0_3] : memref<1x128xf32, #tpu.memory_space<vmem>>, vector<1x128xf32>
    %4 = vector.broadcast %3 : vector<1x128xf32> to vector<256x128xf32>
    %5 = arith.mulf %2, %4 : vector<256x128xf32>
    %c0_4 = arith.constant 0 : index
    %c0_5 = arith.constant 0 : index
    %6 = vector.load %arg3[%c0_4, %c0_5] : memref<1x128xf32, #tpu.memory_space<vmem>>, vector<1x128xf32>
    %7 = vector.broadcast %6 : vector<1x128xf32> to vector<256x128xf32>
    %8 = arith.addf %5, %7 : vector<256x128xf32>
    %9 = vector.shape_cast %8 : vector<256x128xf32> to vector<16x16x128xf32>
    %cst = arith.constant 0.000000e+00 : f32
    %10 = vector.broadcast %cst : f32 to vector<1x16x128xf32>
    %11 = tpu.concatenate %10, %9, %10 in 0 : vector<1x16x128xf32>, vector<16x16x128xf32>, vector<1x16x128xf32> -> vector<18x16x128xf32>
    %cst_6 = arith.constant 0.000000e+00 : f32
    %12 = vector.broadcast %cst_6 : f32 to vector<18x1x128xf32>
    %13 = tpu.concatenate %12, %11, %12 in 1 : vector<18x1x128xf32>, vector<18x16x128xf32>, vector<18x1x128xf32> -> vector<18x18x128xf32>
    %14 = vector.extract_strided_slice %13 {offsets = [0, 0, 0], sizes = [16, 16, 128], strides = [1, 1, 1]} : vector<18x18x128xf32> to vector<16x16x128xf32>
    %15 = vector.extract_strided_slice %13 {offsets = [0, 1, 0], sizes = [16, 16, 128], strides = [1, 1, 1]} : vector<18x18x128xf32> to vector<16x16x128xf32>
    %16 = vector.extract_strided_slice %13 {offsets = [0, 2, 0], sizes = [16, 16, 128], strides = [1, 1, 1]} : vector<18x18x128xf32> to vector<16x16x128xf32>
    %17 = vector.extract_strided_slice %13 {offsets = [1, 0, 0], sizes = [16, 16, 128], strides = [1, 1, 1]} : vector<18x18x128xf32> to vector<16x16x128xf32>
    %18 = vector.extract_strided_slice %13 {offsets = [1, 1, 0], sizes = [16, 16, 128], strides = [1, 1, 1]} : vector<18x18x128xf32> to vector<16x16x128xf32>
    %19 = vector.extract_strided_slice %13 {offsets = [1, 2, 0], sizes = [16, 16, 128], strides = [1, 1, 1]} : vector<18x18x128xf32> to vector<16x16x128xf32>
    %20 = vector.extract_strided_slice %13 {offsets = [2, 0, 0], sizes = [16, 16, 128], strides = [1, 1, 1]} : vector<18x18x128xf32> to vector<16x16x128xf32>
    %21 = vector.extract_strided_slice %13 {offsets = [2, 1, 0], sizes = [16, 16, 128], strides = [1, 1, 1]} : vector<18x18x128xf32> to vector<16x16x128xf32>
    %22 = vector.extract_strided_slice %13 {offsets = [2, 2, 0], sizes = [16, 16, 128], strides = [1, 1, 1]} : vector<18x18x128xf32> to vector<16x16x128xf32>
    %23 = tpu.concatenate %14, %15, %16, %17, %18, %19, %20, %21, %22 in 2 : vector<16x16x128xf32>, vector<16x16x128xf32>, vector<16x16x128xf32>, vector<16x16x128xf32>, vector<16x16x128xf32>, vector<16x16x128xf32>, vector<16x16x128xf32>, vector<16x16x128xf32>, vector<16x16x128xf32> -> vector<16x16x1152xf32>
    %24 = vector.shape_cast %23 : vector<16x16x1152xf32> to vector<256x1152xf32>
    %25 = arith.truncf %24 : vector<256x1152xf32> to vector<256x1152xbf16>
    %c0_7 = arith.constant 0 : index
    %c0_8 = arith.constant 0 : index
    %26 = vector.load %arg4[%c0_7, %c0_8] : memref<1152x128xbf16, #tpu.memory_space<vmem>>, vector<1152x128xbf16>
    %cst_9 = arith.constant dense<0.000000e+00> : vector<256x128xf32>
    %27 = tpu.matmul %25, %26, %cst_9 {dimension_numbers = #tpu.dot_dimension_numbers<[1], [0], [0], [1], [0, 0, 1, 1], [], []>} : vector<256x1152xbf16>, vector<1152x128xbf16>, vector<256x128xf32> -> vector<256x128xf32>
    %c0_10 = arith.constant 0 : index
    %c0_11 = arith.constant 0 : index
    %28 = vector.load %arg5[%c0_10, %c0_11] : memref<1x128xf32, #tpu.memory_space<vmem>>, vector<1x128xf32>
    %29 = vector.broadcast %28 : vector<1x128xf32> to vector<256x128xf32>
    %30 = arith.addf %27, %29 : vector<256x128xf32>
    %cst_12 = arith.constant 0.000000e+00 : f32
    %31 = vector.broadcast %cst_12 : f32 to vector<256x128xf32>
    %32 = arith.maximumf %30, %31 : vector<256x128xf32>
    %c0_13 = arith.constant 0 : index
    %c0_14 = arith.constant 0 : index
    %c0_15 = arith.constant 0 : index
    %33 = vector.load %arg6[%c0_13, %c0_14, %c0_15] : memref<1x256x128xf32, #tpu.memory_space<vmem>>, vector<1x256x128xf32>
    %34 = vector.shape_cast %33 : vector<1x256x128xf32> to vector<256x128xf32>
    %35 = vector.shape_cast %32 : vector<256x128xf32> to vector<1x256x128xf32>
    tpu.vector_store %arg6[%c0_13, %c0_14, %c0_15], %35 {strides = array<i32>} : memref<1x256x128xf32, #tpu.memory_space<vmem>>, vector<1x256x128xf32>,
    return
  }
  func.func @transform_0(%arg0: i32) -> (i32, i32, i32) {
    %c0_i32 = arith.constant 0 : i32
    %c0_i32_0 = arith.constant 0 : i32
    %c0_i32_1 = arith.constant 0 : i32
    return %arg0, %c0_i32, %c0_i32_0 : i32, i32, i32
  }
  func.func @transform_1(%arg0: i32) -> (i32, i32) {
    %c0_i32 = arith.constant 0 : i32
    %c0_i32_0 = arith.constant 0 : i32
    %c0_i32_1 = arith.constant 0 : i32
    return %c0_i32, %c0_i32_0 : i32, i32
  }
  func.func @transform_2(%arg0: i32) -> (i32, i32) {
    %c0_i32 = arith.constant 0 : i32
    %c0_i32_0 = arith.constant 0 : i32
    %c0_i32_1 = arith.constant 0 : i32
    return %c0_i32, %c0_i32_0 : i32, i32
  }
  func.func @transform_3(%arg0: i32) -> (i32, i32) {
    %c0_i32 = arith.constant 0 : i32
    %c0_i32_0 = arith.constant 0 : i32
    %c0_i32_1 = arith.constant 0 : i32
    return %c0_i32, %c0_i32_0 : i32, i32
  }
  func.func @transform_4(%arg0: i32) -> (i32, i32) {
    %c0_i32 = arith.constant 0 : i32
    %c0_i32_0 = arith.constant 0 : i32
    %c0_i32_1 = arith.constant 0 : i32
    return %c0_i32, %c0_i32_0 : i32, i32
  }
  func.func @transform_5(%arg0: i32) -> (i32, i32, i32) {
    %c0_i32 = arith.constant 0 : i32
    %c0_i32_0 = arith.constant 0 : i32
    %c0_i32_1 = arith.constant 0 : i32
    return %arg0, %c0_i32, %c0_i32_0 : i32, i32, i32
  }
}

</mosaic_0001>

<bundles_post_ra>
// kernel: block_forward.2
= control target key start
LH: loop header
LB: loop body
LE: loop exit
PB: predicated region body
PF: predicated region fallthrough
CT: control target
= control target key end

     0   :  { %s2963_s15 = smov 0   ;;  %s4531_s0 = inlined_call_operand.vmem [shape: f32[2,16,16,4], index: 0, kind: input, shape index: {}]   ;;  %s4532_s1 = inlined_call_operand.vmem [shape: bf16[36,128], index: 1, kind: input, shape index: {}]   ;;  %s4533_s2 = inlined_call_operand.vmem [shape: f32[1,128], index: 2, kind: input, shape index: {}]   ;;  %s4534_s3 = inlined_call_operand.vmem [shape: bf16[2,256,128], index: 3, kind: output, shape index: {0}]   ;;  %s4535_s4 = inlined_call_operand.vmem [shape: f32[2,2,128], index: 4, kind: output, shape index: {1}]  }
   0x1 LB: > { %s2119_s16 = sadd.s32 4294967295, %s2927_s15   ;;  %p2123_p0 = scmp.ge.s32.totalorder %s2927_s15, 1  ;;  %s2927_s15 = sphi %s2963_s15, %s15_s15  }
   0x2   : > { %p165_p1 = scmp.lt.s32.totalorder %s2927_s15, 3 }
   0x4   : > { %p166_p2 = pnand %p2123_p0, %p165_p1 }
   0x6   : > { %169 = sbr.rel (%p166_p2) target bundleno = 648 (0x288), region = 32 }
   0xb   : > { %vm275_vm0 = vcmask 1040384   ;;  %p195_p3 = scmp.lt.s32.totalorder %s2119_s16, 1  ;;  %v2929_v0 = vmov 0.0   ;;  %vm441_vm1 = vcmask 1046528   ;;  %s2930_s21 = smov 4   ;;  %vm618_vm2 = vcmask 1045504  }
   0xc   : > { %v2971_v1 = vrot.slane %v2929_v0, 7  ;;  %s2931_s22 = smov 8   ;;  %s2932_s23 = smov 12   ;;  %vm1383_vm3 = vcmask 31744   ;;  %vm1416_vm4 = vcmask 64512   ;;  %vm1449_vm5 = vcmask 97280  }
   0xd   : > { %s4696_s16 = smov (!%p195_p3, %s2119_s16), 1  ;;  %s2933_s24 = smov 16   ;;  %vm1482_vm6 = vcmask 130048   ;;  %vm1515_vm7 = vcmask 162816   ;;  %vm1736_vm8 = vcmask 1041408   ;;  %vm1581_vm9 = vcmask 228352  }
   0xe   : > { %4595 = vst [vmem:[#allocation2_spill] sm:$0xff] %v2971_v1  ;;  %v2977_v2 = vsel %vm275_vm0, 0.0, %v2971_v1  ;;  %v2981_v3 = vsel %vm275_vm0, %v2971_v1, 0.0  ;;  %v443_v4 = vrot.slane %v2971_v1, 1  ;;  %s2155_s17 = sshll.u32 %s4696_s16, 8  ;;  %s2934_s25 = smov 20  }
   0xf   : > { %4596 = vst [vmem:[#allocation3_spill] sm:$0xff] %v2977_v2  ;;  %v442_v5 = vrot.slane %v2977_v2, 1  ;;  %v445_v6 = vrot.slane %v2981_v3, 1  ;;  %s2990_s20 = scalar_lea.vmem %s4531_s0, %s2155_s17  ;;  %s2935_s26 = smov 28   ;;  %vm1548_vm10 = vcmask 195584   ;;  %vm1614_vm11 = vcmask 261120  }
  0x10   : > { %v216_v9 = vld [vmem:[%s2990_s20 + $0x30] sm:$0xff]  ;;  %v217_v10 = vld [vmem:[%s2990_s20 + $0x38] sm:$0xff]  ;;  %v210_v16 = vld [vmem:[%s2990_s20] sm:$0xff]  ;;  %s2936_s27 = smov 24   ;;  %s2937_s28 = smov 32   ;;  %vm1687_vm12 = vcmask 293888  }
  0x11   : > { %v444_v7 = vsel %vm441_vm1, %v442_v5, %v443_v4  ;;  %v446_v8 = vsel %vm441_vm1, %v443_v4, %v445_v6  ;;  %v212_v11 = vld [vmem:[%s2990_s20 + $0x10] sm:$0xff]  ;;  %v287_v13 = vrot.slane %v216_v9, 7  ;;  %v288_v14 = vrot.slane %v217_v10, 7  ;;  %v213_v15 = vld [vmem:[%s2990_s20 + $0x18] sm:$0xff]  ;;  %v211_v17 = vld [vmem:[%s2990_s20 + $0x8] sm:$0xff]  ;;  %s2156_s11 = sshll.u32 %s4696_s16, 7 }
  0x12   : > { %v2997_v12 = vpack.i.bf16 %v446_v8, %v444_v7  ;;  %v281_v18 = vrot.slane %v212_v11, 7  ;;  %v282_v19 = vrot.slane %v213_v15, 7  ;;  %v278_v20 = vrot.slane %v210_v16, 7  ;;  %v218_v22 = vld [vmem:[%s2990_s20 + $0x40] sm:$0xff]  ;;  %v219_v39 = vld [vmem:[%s2990_s20 + $0x48] sm:$0xff]  ;;  %v220_v58 = vld [vmem:[%s2990_s20 + $0x50] sm:$0xff]  ;;  %s4422_s14 = scalar_lea.vmem %s4534_s3, %s2156_s11 }
  0x13   : > { %v279_v21 = vrot.slane %v211_v17, 7  ;;  %v3007_v24 = vsel %vm275_vm0, %v287_v13, %v288_v14  ;;  %v3010_v25 = vsel %vm275_vm0, 0.0, %v287_v13  ;;  %v3013_v26 = vsel %vm275_vm0, %v288_v14, 0.0  ;;  %v214_v44 = vld [vmem:[%s2990_s20 + $0x20] sm:$0xff]  ;;  %v215_v49 = vld [vmem:[%s2990_s20 + $0x28] sm:$0xff]  ;;  %v221_v6 = vld [vmem:[%s2990_s20 + $0x58] sm:$0xff] }
  0x14   : > { %4597 = vst [vmem:[#allocation4_spill] sm:$0xff] %v2997_v12  ;;  %2281 = vrot.lane.b32.xlu0 %v2997_v12, %s2930_s21  ;;  %v462_v27 = vrot.slane %v3010_v25, 1  ;;  %v463_v28 = vrot.slane %v3007_v24, 1  ;;  %v465_v29 = vrot.slane %v3013_v26, 1  ;;  %v290_v30 = vrot.slane %v218_v22, 7  ;;  %v224_v7 = vld [vmem:[%s2990_s20 + $0x70] sm:$0xff] }
  0x15   : > { %v3019_v31 = vsel %vm275_vm0, %v281_v18, %v282_v19  ;;  %v3022_v32 = vsel %vm275_vm0, 0.0, %v281_v18  ;;  %v3025_v33 = vsel %vm275_vm0, %v282_v19, 0.0  ;;  %v3028_v34 = vsel %vm275_vm0, %v278_v20, %v279_v21  ;;  %v225_v13 = vld [vmem:[%s2990_s20 + $0x78] sm:$0xff]  ;;  %s2128_s17 = sshll.u32 %s4696_s16, 1 }
  0x16   : > { %v464_v35 = vsel %vm441_vm1, %v462_v27, %v463_v28  ;;  %v466_v36 = vsel %vm441_vm1, %v463_v28, %v465_v29  ;;  %v452_v37 = vrot.slane %v3022_v32, 1  ;;  %v453_v38 = vrot.slane %v3019_v31, 1 }
  0x17   : > { %v3035_v40 = vpack.i.bf16 %v466_v36, %v464_v35  ;;  %v455_v41 = vrot.slane %v3025_v33, 1  ;;  %v3040_v43 = vsel %vm275_vm0, 0.0, %v278_v20  ;;  %v3045_v46 = vsel %vm275_vm0, %v279_v21, 0.0 }
  0x18   : > { %v454_v45 = vsel %vm441_vm1, %v452_v37, %v453_v38  ;;  %v447_v47 = vrot.slane %v3040_v43, 1  ;;  %v448_v48 = vrot.slane %v3028_v34, 1  ;;  %v450_v51 = vrot.slane %v3045_v46, 1 }
  0x19   : > { %4598 = vst [vmem:[#allocation5_spill] sm:$0xff] %v3035_v40  ;;  %2301 = vrot.lane.b32.xlu2 %v3035_v40, %s2930_s21  ;;  %v456_v50 = vsel %vm441_vm1, %v453_v38, %v455_v41  ;;  %v291_v52 = vrot.slane %v219_v39, 7  ;;  %v3055_v53 = vsel %vm275_vm0, 0.0, %v290_v30  ;;  %v284_v57 = vrot.slane %v214_v44, 7  ;;  %v223_v39 = vld [vmem:[%s2990_s20 + $0x68] sm:$0xff]  ;;  %v226_v41 = vld [vmem:[%s2990_s20 + $0x80] sm:$0xff] }
  0x1a   : > { %v3057_v54 = vpack.i.bf16 %v456_v50, %v454_v45  ;;  %v449_v55 = vsel %vm441_vm1, %v447_v47, %v448_v48  ;;  %v467_v56 = vrot.slane %v3055_v53, 1  ;;  %v451_v59 = vsel %vm441_vm1, %v448_v48, %v450_v51 }
  0x1b   : > { %v3064_v60 = vsel %vm275_vm0, %v290_v30, %v291_v52  ;;  %v3067_v61 = vsel %vm275_vm0, %v291_v52, 0.0  ;;  %v285_v62 = vrot.slane %v215_v49, 7  ;;  %v3071_v63 = vpack.i.bf16 %v451_v59, %v449_v55  ;;  %v222_v30 = vld [vmem:[%s2990_s20 + $0x60] sm:$0xff] }
  0x1c   : > { %4599 = vst [vmem:[#allocation6_spill] sm:$0xff] %v3057_v54  ;;  %2291 = vrot.lane.b32.xlu1 %v3057_v54, %s2930_s21  ;;  %v468_v0 = vrot.slane %v3064_v60, 1  ;;  %v470_v4 = vrot.slane %v3067_v61, 1  ;;  %v3076_v5 = vsel %vm275_vm0, 0.0, %v284_v57  ;;  %v293_v11 = vrot.slane %v220_v58, 7  ;;  %v227_v58 = vld [vmem:[%s2990_s20 + $0x88] sm:$0xff] }
  0x1d   : > { %v3081_v8 = vsel %vm275_vm0, %v284_v57, %v285_v62  ;;  %v3084_v9 = vsel %vm275_vm0, %v285_v62, 0.0  ;;  %v457_v10 = vrot.slane %v3076_v5, 1  ;;  %2286 = vrot.lane.b32.xlu0 %v3071_v63, %s2930_s21  ;;  %v294_v19 = vrot.slane %v221_v6, 7 }
  0x1e   : > { %v469_v14 = vsel %vm441_vm1, %v467_v56, %v468_v0  ;;  %v471_v15 = vsel %vm441_vm1, %v468_v0, %v470_v4  ;;  %v458_v16 = vrot.slane %v3081_v8, 1  ;;  %v460_v17 = vrot.slane %v3084_v9, 1 }
  0x1f   : > { %v3094_v18 = vpack.i.bf16 %v471_v15, %v469_v14  ;;  %v3097_v20 = vsel %vm275_vm0, 0.0, %v293_v11  ;;  %v299_v21 = vrot.slane %v224_v7, 7  ;;  %v300_v29 = vrot.slane %v225_v13, 7  ;;  %v230_v7 = vld [vmem:[%s2990_s20 + $0xa0] sm:$0xff] }
  0x20   : > { %v459_v22 = vsel %vm441_vm1, %v457_v10, %v458_v16  ;;  %v461_v27 = vsel %vm441_vm1, %v458_v16, %v460_v17  ;;  %v472_v28 = vrot.slane %v3097_v20, 1  ;;  %v3108_v36 = vsel %vm275_vm0, %v293_v11, %v294_v19  ;;  %v231_v10 = vld [vmem:[%s2990_s20 + $0xa8] sm:$0xff]  ;;  %v228_v11 = vld [vmem:[%s2990_s20 + $0x90] sm:$0xff] }
  0x21   : > { %4600 = vst [vmem:[#allocation7_spill] sm:$0xff] %v3094_v18  ;;  %2306 = vrot.lane.b32.xlu2 %v3094_v18, %s2930_s21  ;;  %v3105_v35 = vpack.i.bf16 %v461_v27, %v459_v22  ;;  %v3111_v37 = vsel %vm275_vm0, %v294_v19, 0.0  ;;  %v3114_v38 = vsel %vm275_vm0, 0.0, %v299_v21  ;;  %v473_v44 = vrot.slane %v3108_v36, 1 }
  0x22   : > { %v475_v45 = vrot.slane %v3111_v37, 1  ;;  %v3121_v47 = vsel %vm275_vm0, %v299_v21, %v300_v29  ;;  %v3124_v48 = vsel %vm275_vm0, %v300_v29, 0.0  ;;  %v482_v49 = vrot.slane %v3114_v38, 1 }
  0x23   : > { %4601 = vst [vmem:[#allocation8_spill] sm:$0xff] %v3105_v35  ;;  %v483_v50 = vrot.slane %v3121_v47, 1  ;;  %v485_v51 = vrot.slane %v3124_v48, 1  ;;  %v296_v52 = vrot.slane %v222_v30, 7  ;;  %v474_v55 = vsel %vm441_vm1, %v472_v28, %v473_v44  ;;  %v229_v30 = vld [vmem:[%s2990_s20 + $0x98] sm:$0xff] }
  0x24   : > { %2296 = vrot.lane.b32.xlu1 %v3105_v35, %s2930_s21  ;;  %v476_v56 = vsel %vm441_vm1, %v473_v44, %v475_v45  ;;  %v297_v57 = vrot.slane %v223_v39, 7  ;;  %v302_v59 = vrot.slane %v226_v41, 7  ;;  %v303_v21 = vrot.slane %v227_v58, 7 }
  0x25   : > { %v3134_v62 = vpack.i.bf16 %v476_v56, %v474_v55  ;;  %v484_v0 = vsel %vm441_vm1, %v482_v49, %v483_v50  ;;  %v486_v4 = vsel %vm441_vm1, %v483_v50, %v485_v51  ;;  %v3139_v6 = vsel %vm275_vm0, 0.0, %v296_v52 }
  0x26   : > { %v3144_v13 = vpack.i.bf16 %v486_v4, %v484_v0  ;;  %v3147_v14 = vsel %vm275_vm0, %v296_v52, %v297_v57  ;;  %v3150_v15 = vsel %vm275_vm0, %v297_v57, 0.0  ;;  %v477_v16 = vrot.slane %v3139_v6, 1 }
  0x27   : > { %4602 = vst [vmem:[#allocation9_spill] sm:$0xff] %v3134_v62  ;;  %2311 = vrot.lane.b32.xlu0 %v3134_v62, %s2930_s21  ;;  %v478_v17 = vrot.slane %v3147_v14, 1  ;;  %v480_v19 = vrot.slane %v3150_v15, 1  ;;  %v3158_v22 = vsel %vm275_vm0, 0.0, %v302_v59  ;;  %v308_v28 = vrot.slane %v230_v7, 7 }
  0x28   : > { %4603 = vst [vmem:[#allocation10_spill] sm:$0xff] %v3144_v13  ;;  %v487_v27 = vrot.slane %v3158_v22, 1  ;;  %v309_v29 = vrot.slane %v231_v10, 7  ;;  %v305_v39 = vrot.slane %v228_v11, 7  ;;  %v3167_v45 = vsel %vm275_vm0, %v302_v59, %v303_v21  ;;  %v232_v11 = vld [vmem:[%s2990_s20 + $0xb0] sm:$0xff] }
  0x29   : > { %2321 = vrot.lane.b32.xlu2 %v3144_v13, %s2930_s21  ;;  %v479_v41 = vsel %vm441_vm1, %v477_v16, %v478_v17  ;;  %v481_v44 = vsel %vm441_vm1, %v478_v17, %v480_v19  ;;  %v3170_v49 = vsel %vm275_vm0, %v303_v21, 0.0  ;;  %v488_v51 = vrot.slane %v3167_v45, 1  ;;  %v233_v16 = vld [vmem:[%s2990_s20 + $0xb8] sm:$0xff] }
  0x2a   : > { %v3172_v50 = vpack.i.bf16 %v481_v44, %v479_v41  ;;  %v490_v52 = vrot.slane %v3170_v49, 1  ;;  %v3177_v55 = vsel %vm275_vm0, %v308_v28, %v309_v29  ;;  %v3180_v56 = vsel %vm275_vm0, 0.0, %v308_v28 }
  0x2b   : > { %v3183_v57 = vsel %vm275_vm0, %v309_v29, 0.0  ;;  %v498_v58 = vrot.slane %v3177_v55, 1  ;;  %v306_v59 = vrot.slane %v229_v30, 7  ;;  %v489_v0 = vsel %vm441_vm1, %v487_v27, %v488_v51  ;;  %v236_v27 = vld [vmem:[%s2990_s20 + $0xd0] sm:$0xff]  ;;  %v237_v29 = vld [vmem:[%s2990_s20 + $0xd8] sm:$0xff]  ;;  %v234_v30 = vld [vmem:[%s2990_s20 + $0xc0] sm:$0xff] }
  0x2c   : > { %4604 = vst [vmem:[#allocation11_spill] sm:$0xff] %v3172_v50  ;;  %2316 = vrot.lane.b32.xlu1 %v3172_v50, %s2930_s21  ;;  %v491_v4 = vsel %vm441_vm1, %v488_v51, %v490_v52  ;;  %v497_v7 = vrot.slane %v3180_v56, 1  ;;  %v500_v10 = vrot.slane %v3183_v57, 1  ;;  %v3200_v21 = vsel %vm275_vm0, 0.0, %v305_v39 }
  0x2d   : > { %v3194_v17 = vpack.i.bf16 %v491_v4, %v489_v0  ;;  %v3197_v19 = vsel %vm275_vm0, %v305_v39, %v306_v59  ;;  %v3203_v28 = vsel %vm275_vm0, %v306_v59, 0.0  ;;  %v492_v51 = vrot.slane %v3200_v21, 1 }
  0x2e   : > { %v499_v41 = vsel %vm441_vm1, %v497_v7, %v498_v58  ;;  %v501_v44 = vsel %vm441_vm1, %v498_v58, %v500_v10  ;;  %v493_v52 = vrot.slane %v3197_v19, 1  ;;  %v495_v59 = vrot.slane %v3203_v28, 1  ;;  %v235_v7 = vld [vmem:[%s2990_s20 + $0xc8] sm:$0xff] }
  0x2f   : > { %4605 = vst [vmem:[#allocation12_spill] sm:$0xff] %v3194_v17  ;;  %2326 = vrot.lane.b32.xlu0 %v3194_v17, %s2930_s21  ;;  %v3214_v39 = vpack.i.bf16 %v501_v44, %v499_v41  ;;  %v311_v0 = vrot.slane %v232_v11, 7  ;;  %v312_v4 = vrot.slane %v233_v16, 7  ;;  %v317_v23 = vrot.slane %v236_v27, 7  ;;  %v239_v17 = vld [vmem:[%s2990_s20 + $0xe8] sm:$0xff] }
  0x30   : > { %v494_v42 = vsel %vm441_vm1, %v492_v51, %v493_v52  ;;  %v318_v12 = vrot.slane %v237_v29, 7  ;;  %v314_v13 = vrot.slane %v234_v30, 7  ;;  %v496_v58 = vsel %vm441_vm1, %v493_v52, %v495_v59 }
  0x31   : > { %4606 = vst [vmem:[#allocation13_spill] sm:$0xff] %v3214_v39  ;;  %2336 = vrot.lane.b32.xlu2 %v3214_v39, %s2930_s21  ;;  %v3223_v10 = vsel %vm275_vm0, %v311_v0, %v312_v4  ;;  %v3226_v41 = vsel %vm275_vm0, 0.0, %v311_v0  ;;  %v3229_v11 = vsel %vm275_vm0, %v312_v4, 0.0  ;;  %v3231_v16 = vpack.i.bf16 %v496_v58, %v494_v42  ;;  %v238_v39 = vld [vmem:[%s2990_s20 + $0xe0] sm:$0xff] }
  0x32   : > { %v502_v27 = vrot.slane %v3226_v41, 1  ;;  %v503_v29 = vrot.slane %v3223_v10, 1  ;;  %v505_v30 = vrot.slane %v3229_v11, 1  ;;  %v3237_v44 = vsel %vm275_vm0, %v317_v23, %v318_v12 }
  0x33   : > { %4607 = vst [vmem:[#allocation14_spill] sm:$0xff] %v3231_v16  ;;  %v3240_v51 = vsel %vm275_vm0, 0.0, %v317_v23  ;;  %v3243_v52 = vsel %vm275_vm0, %v318_v12, 0.0  ;;  %v315_v59 = vrot.slane %v235_v7, 7  ;;  %v513_v58 = vrot.slane %v3237_v44, 1 }
  0x34   : > { %2331 = vrot.lane.b32.xlu1 %v3231_v16, %s2930_s21  ;;  %v504_v42 = vsel %vm441_vm1, %v502_v27, %v503_v29  ;;  %v506_v0 = vsel %vm441_vm1, %v503_v29, %v505_v30  ;;  %v512_v4 = vrot.slane %v3240_v51, 1  ;;  %v515_v23 = vrot.slane %v3243_v52, 1 }
  0x35   : > { %v3253_v50 = vpack.i.bf16 %v506_v0, %v504_v42  ;;  %v3257_v12 = vsel %vm275_vm0, %v314_v13, %v315_v59  ;;  %v3260_v7 = vsel %vm275_vm0, 0.0, %v314_v13  ;;  %v3264_v29 = vsel %vm275_vm0, %v315_v59, 0.0 }
  0x36   : > { %v514_v27 = vsel %vm441_vm1, %v512_v4, %v513_v58  ;;  %v507_v30 = vrot.slane %v3260_v7, 1  ;;  %v508_v16 = vrot.slane %v3257_v12, 1  ;;  %v516_v42 = vsel %vm441_vm1, %v513_v58, %v515_v23 }
  0x37   : > { %4608 = vst [vmem:[#allocation15_spill] sm:$0xff] %v3253_v50  ;;  %2341 = vrot.lane.b32.xlu0 %v3253_v50, %s2930_s21  ;;  %v510_v0 = vrot.slane %v3264_v29, 1  ;;  %v320_v18 = vrot.slane %v238_v39, 7  ;;  %v321_v62 = vrot.slane %v239_v17, 7  ;;  %v3272_v13 = vpack.i.bf16 %v516_v42, %v514_v27 }
  0x38   : > { %v509_v4 = vsel %vm441_vm1, %v507_v30, %v508_v16  ;;  %v619_v59 = vrot.slane %v2977_v2, 2  ;;  %v620_v27 = vrot.slane %v2971_v1, 2  ;;  %v624_v30 = vrot.slane %v3040_v43, 2 }
  0x39   : > { %4609 = vst [vmem:[#allocation16_spill] sm:$0xff] %v3272_v13  ;;  %v511_v40 = vsel %vm441_vm1, %v508_v16, %v510_v0  ;;  %v3278_v54 = vsel %vm275_vm0, %v320_v18, %v321_v62  ;;  %v3281_v50 = vsel %vm275_vm0, 0.0, %v320_v18  ;;  %v3284_v58 = vsel %vm275_vm0, %v321_v62, 0.0  ;;  %2351 = vrot.lane.b32.xlu2 %v3272_v13, %s2930_s21 }
  0x3a   : > { %v3288_v17 = vpack.i.bf16 %v511_v40, %v509_v4  ;;  %v517_v39 = vrot.slane %v3281_v50, 1  ;;  %v518_v23 = vrot.slane %v3278_v54, 1  ;;  %v520_v16 = vrot.slane %v3284_v58, 1 }
  0x3b   : > { %v625_v18 = vrot.slane %v3028_v34, 2  ;;  %v627_v62 = vrot.slane %v3045_v46, 2  ;;  %v629_v0 = vrot.slane %v3022_v32, 2  ;;  %v630_v4 = vrot.slane %v3019_v31, 2 }
  0x3c   : > { %4610 = vst [vmem:[#allocation17_spill] sm:$0xff] %v3288_v17  ;;  %2346 = vrot.lane.b32.xlu1 %v3288_v17, %s2930_s21  ;;  %v519_v40 = vsel %vm441_vm1, %v517_v39, %v518_v23  ;;  %v521_v42 = vsel %vm441_vm1, %v518_v23, %v520_v16  ;;  %v621_v2 = vsel %vm618_vm2, %v619_v59, %v620_v27  ;;  %v4611_v1 = vrot.slane %v2981_v3, 2 }
  0x3d   : > { %v3303_v13 = vpack.i.bf16 %v521_v42, %v519_v40  ;;  %v626_v46 = vsel %vm618_vm2, %v624_v30, %v625_v18  ;;  %v628_v17 = vsel %vm618_vm2, %v625_v18, %v627_v62  ;;  %v642_v39 = vrot.slane %v3013_v26, 2 }
  0x3e   : > { %v623_v35 = vsel %vm618_vm2, %v620_v27, %v4611_v1  ;;  %v3316_v16 = vpack.i.bf16 %v628_v17, %v626_v46  ;;  %v631_v40 = vsel %vm618_vm2, %v629_v0, %v630_v4  ;;  %v4613_v59 = vrot.slane %v3025_v33, 2 }
  0x3f   : > { %2356 = vrot.lane.b32.xlu0 %v3303_v13, %s2930_s21  ;;  %v3314_v23 = vpack.i.bf16 %v623_v35, %v621_v2  ;;  %v639_v1 = vrot.slane %v3010_v25, 2  ;;  %v640_v27 = vrot.slane %v3007_v24, 2  ;;  %v634_v30 = vrot.slane %v3076_v5, 2 }
  0x40   : > { %v633_v3 = vsel %vm618_vm2, %v630_v4, %v4613_v59  ;;  %v635_v26 = vrot.slane %v3081_v8, 2  ;;  %v637_v18 = vrot.slane %v3084_v9, 2  ;;  %v644_v17 = vrot.slane %v3055_v53, 2 }
  0x41   : > { %4612 = vst [vmem:[#allocation18_spill] sm:$0xff] %v3314_v23  ;;  %2366 = vrot.lane.b32.xlu2 %v3316_v16, %s2931_s22  ;;  %v3329_v2 = vpack.i.bf16 %v633_v3, %v631_v40  ;;  %v641_v33 = vsel %vm618_vm2, %v639_v1, %v640_v27  ;;  %v643_v35 = vsel %vm618_vm2, %v640_v27, %v642_v39  ;;  %v645_v62 = vrot.slane %v3064_v60, 2 }
  0x42   : > { %v647_v42 = vrot.slane %v3067_v61, 2  ;;  %v636_v9 = vsel %vm618_vm2, %v634_v30, %v635_v26  ;;  %v638_v0 = vsel %vm618_vm2, %v635_v26, %v637_v18  ;;  %v3340_v4 = vpack.i.bf16 %v643_v35, %v641_v33 }
  0x43   : > { %v654_v46 = vrot.slane %v3139_v6, 2  ;;  %v655_v39 = vrot.slane %v3147_v14, 2  ;;  %v657_v40 = vrot.slane %v3150_v15, 2  ;;  %v3347_v59 = vpack.i.bf16 %v638_v0, %v636_v9 }
  0x44   : > { %2361 = vrot.lane.b32.xlu1 %v3314_v23, %s2931_s22  ;;  %v646_v3 = vsel %vm618_vm2, %v644_v17, %v645_v62  ;;  %v648_v61 = vsel %vm618_vm2, %v645_v62, %v647_v42  ;;  %v649_v1 = vrot.slane %v3097_v20, 2  ;;  %v650_v27 = vrot.slane %v3108_v36, 2 }
  0x45   : > { %v652_v30 = vrot.slane %v3111_v37, 2  ;;  %v3356_v26 = vpack.i.bf16 %v648_v61, %v646_v3  ;;  %v656_v18 = vsel %vm618_vm2, %v654_v46, %v655_v39  ;;  %v658_v15 = vsel %vm618_vm2, %v655_v39, %v657_v40 }
  0x46   : > { %v659_v33 = vrot.slane %v3114_v38, 2  ;;  %v660_v35 = vrot.slane %v3121_v47, 2  ;;  %v662_v17 = vrot.slane %v3124_v48, 2  ;;  %v651_v37 = vsel %vm618_vm2, %v649_v1, %v650_v27 }
  0x47   : > { %2371 = vrot.lane.b32.xlu0 %v3329_v2, %s2931_s22  ;;  %v653_v62 = vsel %vm618_vm2, %v650_v27, %v652_v30  ;;  %v3367_v42 = vpack.i.bf16 %v658_v15, %v656_v18  ;;  %v669_v9 = vrot.slane %v3200_v21, 2  ;;  %v670_v0 = vrot.slane %v3197_v19, 2 }
  0x48   : > { %v672_v46 = vrot.slane %v3203_v28, 2  ;;  %v3374_v39 = vpack.i.bf16 %v653_v62, %v651_v37  ;;  %v661_v40 = vsel %vm618_vm2, %v659_v33, %v660_v35  ;;  %v663_v48 = vsel %vm618_vm2, %v660_v35, %v662_v17 }
  0x49   : > { %2381 = vrot.lane.b32.xlu2 %v3340_v4, %s2931_s22  ;;  %v664_v3 = vrot.slane %v3158_v22, 2  ;;  %v665_v61 = vrot.slane %v3167_v45, 2  ;;  %v667_v1 = vrot.slane %v3170_v49, 2  ;;  %v3383_v27 = vpack.i.bf16 %v663_v48, %v661_v40 }
  0x4a   : > { %v671_v30 = vsel %vm618_vm2, %v669_v9, %v670_v0  ;;  %v673_v28 = vsel %vm618_vm2, %v670_v0, %v672_v46  ;;  %v674_v18 = vrot.slane %v3180_v56, 2  ;;  %v675_v15 = vrot.slane %v3177_v55, 2 }
  0x4b   : > { %v677_v33 = vrot.slane %v3183_v57, 2  ;;  %v666_v49 = vsel %vm618_vm2, %v664_v3, %v665_v61  ;;  %v668_v35 = vsel %vm618_vm2, %v665_v61, %v667_v1  ;;  %v3394_v17 = vpack.i.bf16 %v673_v28, %v671_v30 }
  0x4c   : > { %2376 = vrot.lane.b32.xlu1 %v3347_v59, %s2931_s22  ;;  %v684_v37 = vrot.slane %v3260_v7, 2  ;;  %v685_v62 = vrot.slane %v3257_v12, 2  ;;  %v687_v9 = vrot.slane %v3264_v29, 2  ;;  %v3401_v0 = vpack.i.bf16 %v668_v35, %v666_v49 }
  0x4d   : > { %v676_v46 = vsel %vm618_vm2, %v674_v18, %v675_v15  ;;  %v678_v57 = vsel %vm618_vm2, %v675_v15, %v677_v33  ;;  %v679_v40 = vrot.slane %v3226_v41, 2  ;;  %v680_v48 = vrot.slane %v3223_v10, 2 }
  0x4e   : > { %v682_v3 = vrot.slane %v3229_v11, 2  ;;  %v3410_v61 = vpack.i.bf16 %v678_v57, %v676_v46  ;;  %v686_v1 = vsel %vm618_vm2, %v684_v37, %v685_v62  ;;  %v688_v29 = vsel %vm618_vm2, %v685_v62, %v687_v9 }
  0x4f   : > { %2386 = vrot.lane.b32.xlu0 %v3356_v26, %s2931_s22  ;;  %v689_v30 = vrot.slane %v3240_v51, 2  ;;  %v690_v28 = vrot.slane %v3237_v44, 2  ;;  %v692_v18 = vrot.slane %v3243_v52, 2  ;;  %v681_v11 = vsel %vm618_vm2, %v679_v40, %v680_v48 }
  0x50   : > { %v683_v15 = vsel %vm618_vm2, %v680_v48, %v682_v3  ;;  %v3421_v33 = vpack.i.bf16 %v688_v29, %v686_v1  ;;  %v694_v62 = vrot.slane %v3281_v50, 2  ;;  %v695_v9 = vrot.slane %v3278_v54, 2 }
  0x51   : > { %2396 = vrot.lane.b32.xlu2 %v3367_v42, %s2931_s22  ;;  %v3425_v49 = vpack.i.bf16 %v683_v15, %v681_v11  ;;  %v691_v35 = vsel %vm618_vm2, %v689_v30, %v690_v28  ;;  %v693_v37 = vsel %vm618_vm2, %v690_v28, %v692_v18  ;;  %v697_v52 = vrot.slane %v3284_v58, 2 }
  0x52   : > { %4614 = vst [vmem:[#allocation19_spill] sm:$0xff] %v3421_v33  ;;  %v3434_v46 = vpack.i.bf16 %v693_v37, %v691_v35  ;;  %v696_v57 = vsel %vm618_vm2, %v694_v62, %v695_v9  ;;  %v2440_v48 = vpack.i.bf16 %v3028_v34, %v3040_v43  ;;  %v3449_v58 = vpack.i.bf16 %v3019_v31, %v3022_v32 }
  0x53   : > { %4615 = vst [vmem:[#allocation20_spill] sm:$0xff] %v3425_v49  ;;  %v698_v40 = vsel %vm618_vm2, %v695_v9, %v697_v52  ;;  %v3455_v1 = vpack.i.bf16 %v3007_v24, %v3010_v25  ;;  %v3461_v29 = vpack.i.bf16 %v3081_v8, %v3076_v5  ;;  %v3469_v28 = vpack.i.bf16 %v3064_v60, %v3055_v53 }
  0x54   : > { %2391 = vrot.lane.b32.xlu1 %v3374_v39, %s2931_s22  ;;  %4616 = vst [vmem:[#allocation21_spill] sm:$0xff] %v3434_v46  ;;  %v3444_v3 = vpack.i.bf16 %v698_v40, %v696_v57  ;;  %v3475_v18 = vpack.i.bf16 %v3147_v14, %v3139_v6  ;;  %v3481_v11 = vpack.i.bf16 %v3108_v36, %v3097_v20  ;;  %v240_v57 = vld [vmem:[%s2990_s20 + $0xf0] sm:$0xff]  ;;  %v3515_v40 = vld [vmem:[%s2990_s20 + $0xf8] sm:$0xff]  ;;  %s208_s20 = scalar_lea.vmem %s4535_s4, %s2128_s17 }
  0x55   : > { %4618 = vst [vmem:[#allocation23_spill] sm:$0xff] %v3449_v58  ;;  %v3489_v35 = vpack.i.bf16 %v3121_v47, %v3114_v38  ;;  %v3495_v37 = vpack.i.bf16 %v3197_v19, %v3200_v21  ;;  %v3501_v62 = vpack.i.bf16 %v3167_v45, %v3158_v22  ;;  %v3509_v52 = vpack.i.bf16 %v3177_v55, %v3180_v56 }
  0x56   : > { %4617 = vst [vmem:[#allocation22_spill] sm:$0xff] %v3444_v3  ;;  %v3521_v23 = vpack.i.bf16 %v3257_v12, %v3260_v7 }
  0x57   : > { %2401 = vrot.lane.b32.xlu0 %v3383_v27, %s2931_s22  ;;  %4619 = vst [vmem:[#allocation24_spill] sm:$0xff] %v3455_v1 }
  0x58   : > { %4620 = vst [vmem:[#allocation25_spill] sm:$0xff] %v3461_v29 }
  0x59   : > { %2411 = vrot.lane.b32.xlu2 %v3394_v17, %s2931_s22  ;;  %4621 = vst [vmem:[#allocation26_spill] sm:$0xff] %v3469_v28 }
  0x5a   : > { %4622 = vst [vmem:[#allocation27_spill] sm:$0xff] %v3475_v18 }
  0x5b   : > { %4623 = vst [vmem:[#allocation28_spill] sm:$0xff] %v3481_v11 }
  0x5c   : > { %2406 = vrot.lane.b32.xlu1 %v3401_v0, %s2931_s22  ;;  %4624 = vst [vmem:[#allocation29_spill] sm:$0xff] %v3489_v35 }
  0x5d   : > { %4625 = vst [vmem:[#allocation30_spill] sm:$0xff] %v3495_v37 }
  0x5e   : > { %4626 = vst [vmem:[#allocation31_spill] sm:$0xff] %v3501_v62 }
  0x5f   : > { %2416 = vrot.lane.b32.xlu0 %v3410_v61, %s2931_s22  ;;  %4627 = vst [vmem:[#allocation32_spill] sm:$0xff] %v3509_v52 }
  0x60   : > { %4628 = vst [vmem:[#allocation33_spill] sm:$0xff] %v3521_v23 }
  0x61   : > { %2426 = vrot.lane.b32.xlu2 %v3421_v33, %s2931_s22 }
  0x64   : > { %2421 = vrot.lane.b32.xlu1 %v3425_v49, %s2931_s22 }
  0x67   : > { %2431 = vrot.lane.b32.xlu0 %v3434_v46, %s2931_s22 }
  0x69   : > { %2441 = vrot.lane.b32.xlu2 %v2440_v48, %s2932_s23 }
  0x6c   : > { %2436 = vrot.lane.b32.xlu1 %v3444_v3, %s2931_s22 }
  0x6f   : > { %2446 = vrot.lane.b32.xlu0 %v3449_v58, %s2932_s23 }
  0x71   : > { %2456 = vrot.lane.b32.xlu2 %v3455_v1, %s2932_s23  ;;  %v3528_v1 = vpack.i.bf16 %v3223_v10, %v3226_v41 }
  0x73   : > { %v3465_v30 = vpop.permute.xlu2 %2301  ;;  %4629 = vst [vmem:[#allocation34_spill] sm:$0xff] %v3528_v1 }
  0x74   : > { %2451 = vrot.lane.b32.xlu1 %v3461_v29, %s2932_s23 }
  0x77   : > { %2461 = vrot.lane.b32.xlu0 %v3469_v28, %s2932_s23  ;;  %v323_v28 = vrot.slane %v240_v57, 7 }
  0x79   : > { %2471 = vrot.lane.b32.xlu2 %v3475_v18, %s2932_s23  ;;  %v3534_v18 = vpack.i.bf16 %v3237_v44, %v3240_v51  ;;  %v3542_v57 = vsel %vm275_vm0, 0.0, %v323_v28 }
  0x7a   : > { %4632 = vst [vmem:[#allocation37_spill] sm:$0xff] %v3542_v57 }
  0x7b   : > { %v3485_v15 = vpop.permute.xlu2 %2306  ;;  %4630 = vst [vmem:[#allocation35_spill] sm:$0xff] %v3534_v18 }
  0x7c   : > { %2466 = vrot.lane.b32.xlu1 %v3481_v11, %s2932_s23 }
  0x7f   : > { %2476 = vrot.lane.b32.xlu0 %v3489_v35, %s2932_s23  ;;  %v4579_v35 = vrot.slane %v3515_v40, 7 }
  0x81   : > { %2486 = vrot.lane.b32.xlu2 %v3495_v37, %s2932_s23  ;;  %v3539_v37 = vsel %vm275_vm0, %v323_v28, %v4579_v35 }
  0x82   : > { %4631 = vst [vmem:[#allocation36_spill] sm:$0xff] %v3539_v37  ;;  %v3558_v28 = vpack.i.bf16 %v3539_v37, %v3542_v57 }
  0x83   : > { %v3505_v9 = vpop.permute.xlu2 %2321 }
  0x84   : > { %2481 = vrot.lane.b32.xlu1 %v3501_v62, %s2932_s23  ;;  %4633 = vst [vmem:[#allocation38_spill] sm:$0xff] %v3558_v28 }
  0x86   : > { %v3517_v48 = vpop.permute.xlu0 %2281 }
  0x87   : > { %2491 = vrot.lane.b32.xlu0 %v3509_v52, %s2932_s23 }
  0x89   : > { %2501 = vrot.lane.b32.xlu2 %v3521_v23, %s2932_s23 }
  0x8b   : > { %v2337_v62 = vpop.permute.xlu2 %2336 }
  0x8c   : > { %2496 = vrot.lane.b32.xlu1 %v3528_v1, %s2932_s23  ;;  %v2339_v52 = vunpack.i.h.bf16 %v2337_v62  ;;  %v2338_v29 = vunpack.i.l.bf16 %v2337_v62  ;;  %v3564_v62 = vpack.i.bf16 %v3278_v54, %v3281_v50 }
  0x8e   : > { %v3548_v23 = vsel %vm1383_vm3, %v3177_v55, %v2339_v52  ;;  %v3552_v11 = vsel %vm1383_vm3, %v3180_v56, %v2338_v29  ;;  %v3554_v58 = vpop.permute.xlu1 %2291  ;;  %4634 = vst [vmem:[#allocation39_spill] sm:$0xff] %v3564_v62 }
  0x8f   : > { %2506 = vrot.lane.b32.xlu0 %v3534_v18, %s2932_s23  ;;  %v2287_v35 = vpop.permute.xlu0 %2286 }
  0x91   : > { %2516 = vrot.lane.b32.xlu2 %v3558_v28, %s2932_s23 }
  0x93   : > { %v2352_v55 = vpop.permute.xlu2 %2351 }
  0x94   : > { %2511 = vrot.lane.b32.xlu1 %v3564_v62, %s2932_s23  ;;  %v2354_v56 = vunpack.i.h.bf16 %v2352_v55  ;;  %v2353_v29 = vunpack.i.l.bf16 %v2352_v55  ;;  %v2288_v62 = vunpack.i.l.bf16 %v2287_v35 }
  0x96   : > { %v2297_v52 = vpop.permute.xlu1 %2296  ;;  %v3572_v1 = vsel %vm1383_vm3, %v3237_v44, %v2354_v56  ;;  %v3576_v18 = vsel %vm1383_vm3, %v3240_v51, %v2353_v29  ;;  %v2289_v56 = vunpack.i.h.bf16 %v2287_v35  ;;  %v4635_v29 = vld [vmem:[#allocation8_spill] sm:$0xff] }
  0x97   : > { %v2299_v3 = vunpack.i.h.bf16 %v2297_v52  ;;  %v2298_v33 = vunpack.i.l.bf16 %v2297_v52  ;;  %2521 = vrot.lane.b32.xlu0 %v3071_v63, %s2933_s24 }
  0x98   : > { %v1387_v35 = vsel %vm1383_vm3, %v3028_v34, %v2289_v56 }
  0x99   : > { %v3582_v28 = vsel %vm1383_vm3, %v3081_v8, %v2299_v3  ;;  %v3586_v55 = vsel %vm1383_vm3, %v3076_v5, %v2298_v33  ;;  %v2312_v44 = vpop.permute.xlu0 %2311  ;;  %2531 = vrot.lane.b32.xlu2 %v4635_v29, %s2933_s24  ;;  %v4636_v8 = vld [vmem:[#allocation6_spill] sm:$0xff] }
  0x9a   : > { %v2314_v46 = vunpack.i.h.bf16 %v2312_v44  ;;  %v2313_v51 = vunpack.i.l.bf16 %v2312_v44  ;;  %v1386_v44 = vsel %vm1383_vm3, %v3040_v43, %v2288_v62  ;;  %v2304_v43 = vunpack.i.h.bf16 %v3465_v30 }
  0x9b   : > { %v2367_v5 = vpop.permute.xlu2 %2366  ;;  %v2303_v62 = vunpack.i.l.bf16 %v3465_v30 }
  0x9c   : > { %v3592_v52 = vsel %vm1383_vm3, %v3108_v36, %v2314_v46  ;;  %v3596_v63 = vsel %vm1383_vm3, %v3097_v20, %v2313_v51  ;;  %2526 = vrot.lane.b32.xlu1 %v4636_v8, %s2933_s24  ;;  %v2369_v33 = vunpack.i.h.bf16 %v2367_v5  ;;  %v2368_v3 = vunpack.i.l.bf16 %v2367_v5  ;;  %v4637_v51 = vld [vmem:[#allocation5_spill] sm:$0xff] }
  0x9e   : > { %v2317_v29 = vpop.permute.xlu1 %2316  ;;  %v3605_v49 = vsel %vm1416_vm4, %v1386_v44, %v2368_v3  ;;  %v3608_v20 = vsel %vm1416_vm4, %v1387_v35, %v2369_v33  ;;  %v4639_v33 = vld [vmem:[#allocation7_spill] sm:$0xff] }
  0x9f   : > { %v2319_v36 = vunpack.i.h.bf16 %v2317_v29  ;;  %v2318_v46 = vunpack.i.l.bf16 %v2317_v29  ;;  %2536 = vrot.lane.b32.xlu0 %v4637_v51, %s2933_s24  ;;  %v4638_v29 = vld [vmem:[#allocation9_spill] sm:$0xff] }
  0xa1   : > { %v1399_v5 = vsel %vm1383_vm3, %v3147_v14, %v2319_v36  ;;  %v1398_v34 = vsel %vm1383_vm3, %v3139_v6, %v2318_v46  ;;  %v3616_v56 = vpop.permute.xlu0 %2326  ;;  %2546 = vrot.lane.b32.xlu2 %v4638_v29, %s2933_s24  ;;  %v1393_v14 = vsel %vm1383_vm3, %v3007_v24, %v2304_v43  ;;  %v1392_v6 = vsel %vm1383_vm3, %v3010_v25, %v2303_v62  ;;  %v4643_v25 = vld [vmem:[#allocation12_spill] sm:$0xff]  ;;  %v4644_v62 = vld [vmem:[#allocation10_spill] sm:$0xff] }
  0xa3   : > { %v2382_v3 = vpop.permute.xlu2 %2381 }
  0xa4   : > { %2541 = vrot.lane.b32.xlu1 %v4639_v33, %s2933_s24  ;;  %v2384_v35 = vunpack.i.h.bf16 %v2382_v3  ;;  %v2383_v44 = vunpack.i.l.bf16 %v2382_v3  ;;  %v4642_v33 = vld [vmem:[#allocation11_spill] sm:$0xff] }
  0xa6   : > { %v2332_v36 = vpop.permute.xlu1 %2331  ;;  %v3629_v30 = vsel %vm1416_vm4, %v1393_v14, %v2384_v35  ;;  %v3632_v29 = vsel %vm1416_vm4, %v1392_v6, %v2383_v44 }
  0xa7   : > { %v2334_v46 = vunpack.i.h.bf16 %v2332_v36  ;;  %v2333_v51 = vunpack.i.l.bf16 %v2332_v36  ;;  %4640 = vst [vmem:[#allocation6_spill] sm:$0xff] %v3629_v30  ;;  %2551 = vrot.lane.b32.xlu0 %v4642_v33, %s2933_s24 }
  0xa8   : > { %4641 = vst [vmem:[#allocation40_spill] sm:$0xff] %v3632_v29 }
  0xa9   : > { %v1405_v3 = vsel %vm1383_vm3, %v3197_v19, %v2334_v46  ;;  %v1404_v24 = vsel %vm1383_vm3, %v3200_v21, %v2333_v51  ;;  %v3640_v43 = vpop.permute.xlu0 %2341  ;;  %2561 = vrot.lane.b32.xlu2 %v4643_v25, %s2933_s24  ;;  %v4647_v21 = vld [vmem:[#allocation14_spill] sm:$0xff] }
  0xab   : > { %v2397_v35 = vpop.permute.xlu2 %2396 }
  0xac   : > { %2556 = vrot.lane.b32.xlu1 %v4644_v62, %s2933_s24  ;;  %v2399_v44 = vunpack.i.h.bf16 %v2397_v35  ;;  %v2398_v14 = vunpack.i.l.bf16 %v2397_v35  ;;  %v4648_v35 = vrot.slane %v3515_v40, 7  ;;  %v2283_v62 = vunpack.i.l.bf16 %v3517_v48 }
  0xae   : > { %v2347_v6 = vpop.permute.xlu1 %2346  ;;  %v3647_v29 = vsel %vm1416_vm4, %v1399_v5, %v2399_v44  ;;  %v3650_v19 = vsel %vm1416_vm4, %v1398_v34, %v2398_v14  ;;  %v2284_v5 = vunpack.i.h.bf16 %v3517_v48  ;;  %v4650_v14 = vld [vmem:[#allocation15_spill] sm:$0xff] }
  0xaf   : > { %v2349_v36 = vunpack.i.h.bf16 %v2347_v6  ;;  %v2348_v33 = vunpack.i.l.bf16 %v2347_v6  ;;  %4645 = vst [vmem:[#allocation41_spill] sm:$0xff] %v3647_v29  ;;  %2566 = vrot.lane.b32.xlu0 %v4647_v21, %s2933_s24  ;;  %v3661_v6 = vsel %vm275_vm0, %v4648_v35, 0.0  ;;  %v4652_v21 = vld [vmem:[#allocation2_spill] sm:$0xff] }
  0xb0   : > { %4646 = vst [vmem:[#allocation42_spill] sm:$0xff] %v3650_v19  ;;  %v896_v35 = vrot.slane %v3661_v6, 1 }
  0xb1   : > { %v1411_v51 = vsel %vm1383_vm3, %v3257_v12, %v2349_v36  ;;  %v1410_v46 = vsel %vm1383_vm3, %v3260_v7, %v2348_v33  ;;  %v2357_v25 = vpop.permute.xlu0 %2356  ;;  %4649 = vst [vmem:[#allocation43_spill] sm:$0xff] %v3661_v6  ;;  %2576 = vrot.lane.b32.xlu2 %v4650_v14, %s2933_s24  ;;  %v893_v12 = vrot.slane %v3542_v57, 1  ;;  %v4651_v33 = vld [vmem:[#allocation13_spill] sm:$0xff]  ;;  %v1385_v57 = vsel %vm1383_vm3, %v4652_v21, %v2284_v5 }
  0xb2   : > { %v2359_v44 = vunpack.i.h.bf16 %v2357_v25  ;;  %v2358_v34 = vunpack.i.l.bf16 %v2357_v25  ;;  %v894_v25 = vrot.slane %v3539_v37, 1  ;;  %v4653_v6 = vld [vmem:[#allocation17_spill] sm:$0xff] }
  0xb3   : > { %v2412_v36 = vpop.permute.xlu2 %2411 }
  0xb4   : > { %v3670_v7 = vsel %vm1383_vm3, %v3278_v54, %v2359_v44  ;;  %v3674_v40 = vsel %vm1383_vm3, %v3281_v50, %v2358_v34  ;;  %2571 = vrot.lane.b32.xlu1 %v4651_v33, %s2933_s24  ;;  %v2414_v14 = vunpack.i.h.bf16 %v2412_v36  ;;  %v2413_v48 = vunpack.i.l.bf16 %v2412_v36  ;;  %v4654_v36 = vld [vmem:[#allocation3_spill] sm:$0xff] }
  0xb5   : > { %v2294_v54 = vunpack.i.h.bf16 %v3554_v58  ;;  %v2293_v44 = vunpack.i.l.bf16 %v3554_v58  ;;  %v1384_v37 = vsel %vm1383_vm3, %v4654_v36, %v2283_v62  ;;  %v895_v5 = vsel %vm441_vm1, %v893_v12, %v894_v25 }
  0xb6   : > { %v2362_v19 = vpop.permute.xlu1 %2361  ;;  %v3685_v29 = vsel %vm1416_vm4, %v1405_v3, %v2414_v14  ;;  %v3688_v33 = vsel %vm1416_vm4, %v1404_v24, %v2413_v48  ;;  %v897_v21 = vsel %vm441_vm1, %v894_v25, %v896_v35 }
  0xb7   : > { %v2364_v50 = vunpack.i.h.bf16 %v2362_v19  ;;  %v2363_v34 = vunpack.i.l.bf16 %v2362_v19  ;;  %2581 = vrot.lane.b32.xlu0 %v4653_v6, %s2933_s24  ;;  %v1389_v24 = vsel %vm1383_vm3, %v3019_v31, %v2294_v54  ;;  %v1388_v62 = vsel %vm1383_vm3, %v3022_v32, %v2293_v44 }
  0xb8   : > { %v3704_v48 = vpack.i.bf16 %v897_v21, %v895_v5  ;;  %v2308_v31 = vunpack.i.l.bf16 %v3485_v15 }
  0xb9   : > { %v1418_v58 = vsel %vm1416_vm4, %v1385_v57, %v2364_v50  ;;  %v1417_v19 = vsel %vm1416_vm4, %v1384_v37, %v2363_v34  ;;  %v2372_v30 = vpop.permute.xlu0 %2371  ;;  %2591 = vrot.lane.b32.xlu2 %v3303_v13, %s2933_s24  ;;  %v4655_v37 = vld [vmem:[#allocation16_spill] sm:$0xff]  ;;  %v2309_v50 = vunpack.i.h.bf16 %v3485_v15 }
  0xba   : > { %v2374_v3 = vunpack.i.h.bf16 %v2372_v30  ;;  %v2373_v14 = vunpack.i.l.bf16 %v2372_v30 }
  0xbb   : > { %v2427_v30 = vpop.permute.xlu2 %2426 }
  0xbc   : > { %v3707_v12 = vsel %vm1416_vm4, %v1389_v24, %v2374_v3  ;;  %v3710_v57 = vsel %vm1416_vm4, %v1388_v62, %v2373_v14  ;;  %2586 = vrot.lane.b32.xlu1 %v4655_v37, %s2933_s24  ;;  %v2429_v25 = vunpack.i.h.bf16 %v2427_v30  ;;  %v2428_v35 = vunpack.i.l.bf16 %v2427_v30 }
  0xbe   : > { %v2377_v54 = vpop.permute.xlu1 %2376  ;;  %v3717_v44 = vsel %vm1416_vm4, %v1411_v51, %v2429_v25  ;;  %v3720_v34 = vsel %vm1416_vm4, %v1410_v46, %v2428_v35  ;;  %v1395_v51 = vsel %vm1383_vm3, %v3064_v60, %v2309_v50  ;;  %v1394_v46 = vsel %vm1383_vm3, %v3055_v53, %v2308_v31 }
  0xbf   : > { %v2379_v32 = vunpack.i.h.bf16 %v2377_v54  ;;  %v2378_v21 = vunpack.i.l.bf16 %v2377_v54  ;;  %2596 = vrot.lane.b32.xlu0 %v3704_v48, %s2933_s24  ;;  %v2324_v35 = vunpack.i.h.bf16 %v3505_v9  ;;  %v2323_v60 = vunpack.i.l.bf16 %v3505_v9 }
  0xc1   : > { %v1423_v5 = vsel %vm1416_vm4, %v3586_v55, %v2378_v21  ;;  %v1424_v3 = vsel %vm1416_vm4, %v3582_v28, %v2379_v32  ;;  %v2387_v14 = vpop.permute.xlu0 %2386  ;;  %2606 = vrot.lane.b32.xlu2 %v3329_v2, %s2934_s25 }
  0xc2   : > { %v2389_v15 = vunpack.i.h.bf16 %v2387_v14  ;;  %v2388_v24 = vunpack.i.l.bf16 %v2387_v14 }
  0xc3   : > { %v2442_v28 = vpop.permute.xlu2 %2441 }
  0xc4   : > { %v3735_v62 = vsel %vm1416_vm4, %v1395_v51, %v2389_v15  ;;  %v3738_v55 = vsel %vm1416_vm4, %v1394_v46, %v2388_v24  ;;  %2601 = vrot.lane.b32.xlu1 %v3316_v16, %s2934_s25  ;;  %v2444_v30 = vunpack.i.h.bf16 %v2442_v28  ;;  %v2443_v25 = vunpack.i.l.bf16 %v2442_v28 }
  0xc5   : > { %v2329_v24 = vunpack.i.h.bf16 %v3616_v56  ;;  %v2328_v51 = vunpack.i.l.bf16 %v3616_v56 }
  0xc6   : > { %v2392_v50 = vpop.permute.xlu1 %2391  ;;  %v3745_v31 = vsel %vm1449_vm5, %v1418_v58, %v2444_v30  ;;  %v3748_v32 = vsel %vm1449_vm5, %v1417_v19, %v2443_v25  ;;  %v1401_v58 = vsel %vm1383_vm3, %v3121_v47, %v2324_v35  ;;  %v1400_v19 = vsel %vm1383_vm3, %v3114_v38, %v2323_v60 }
  0xc7   : > { %v2394_v54 = vunpack.i.h.bf16 %v2392_v50  ;;  %v2393_v53 = vunpack.i.l.bf16 %v2392_v50  ;;  %2611 = vrot.lane.b32.xlu0 %v3347_v59, %s2934_s25  ;;  %v1403_v60 = vsel %vm1383_vm3, %v3167_v45, %v2329_v24  ;;  %v1402_v50 = vsel %vm1383_vm3, %v3158_v22, %v2328_v51 }
  0xc9   : > { %v1429_v16 = vsel %vm1416_vm4, %v3596_v63, %v2393_v53  ;;  %v1430_v21 = vsel %vm1416_vm4, %v3592_v52, %v2394_v54  ;;  %v2402_v14 = vpop.permute.xlu0 %2401  ;;  %2621 = vrot.lane.b32.xlu2 %v3356_v26, %s2934_s25 }
  0xca   : > { %v2404_v9 = vunpack.i.h.bf16 %v2402_v14  ;;  %v2403_v15 = vunpack.i.l.bf16 %v2402_v14 }
  0xcb   : > { %v2457_v46 = vpop.permute.xlu2 %2456 }
  0xcc   : > { %v3765_v63 = vsel %vm1416_vm4, %v1401_v58, %v2404_v9  ;;  %v3768_v52 = vsel %vm1416_vm4, %v1400_v19, %v2403_v15  ;;  %2616 = vrot.lane.b32.xlu1 %v3340_v4, %s2934_s25  ;;  %v2459_v28 = vunpack.i.h.bf16 %v2457_v46  ;;  %v2458_v30 = vunpack.i.l.bf16 %v2457_v46 }
  0xcd   : > { %v2343_v15 = vunpack.i.l.bf16 %v3640_v43 }
  0xce   : > { %v2407_v47 = vpop.permute.xlu1 %2406  ;;  %v3773_v38 = vsel %vm1449_vm5, %v1424_v3, %v2459_v28  ;;  %v3776_v56 = vsel %vm1449_vm5, %v1423_v5, %v2458_v30  ;;  %v2344_v5 = vunpack.i.h.bf16 %v3640_v43 }
  0xcf   : > { %v2409_v25 = vunpack.i.h.bf16 %v2407_v47  ;;  %v2408_v35 = vunpack.i.l.bf16 %v2407_v47  ;;  %2626 = vrot.lane.b32.xlu0 %v3374_v39, %s2934_s25 }
  0xd1   : > { %v1435_v54 = vsel %vm1416_vm4, %v1402_v50, %v2408_v35  ;;  %v1436_v53 = vsel %vm1416_vm4, %v1403_v60, %v2409_v25  ;;  %v2417_v14 = vpop.permute.xlu0 %2416  ;;  %2636 = vrot.lane.b32.xlu2 %v3383_v27, %s2934_s25 }
  0xd2   : > { %v2419_v9 = vunpack.i.h.bf16 %v2417_v14  ;;  %v2418_v3 = vunpack.i.l.bf16 %v2417_v14 }
  0xd3   : > { %v2472_v58 = vpop.permute.xlu2 %2471 }
  0xd4   : > { %v3792_v45 = vsel %vm1416_vm4, %v3548_v23, %v2419_v9  ;;  %v3796_v22 = vsel %vm1416_vm4, %v3552_v11, %v2418_v3  ;;  %2631 = vrot.lane.b32.xlu1 %v3367_v42, %s2934_s25  ;;  %v2474_v19 = vunpack.i.h.bf16 %v2472_v58  ;;  %v2473_v24 = vunpack.i.l.bf16 %v2472_v58 }
  0xd5   : > { %v1409_v23 = vsel %vm1383_vm3, %v3223_v10, %v2344_v5  ;;  %v1408_v11 = vsel %vm1383_vm3, %v3226_v41, %v2343_v15 }
  0xd6   : > { %v2422_v51 = vpop.permute.xlu1 %2421  ;;  %v3801_v30 = vsel %vm1449_vm5, %v1429_v16, %v2473_v24  ;;  %v3804_v43 = vsel %vm1449_vm5, %v1430_v21, %v2474_v19 }
  0xd7   : > { %v2424_v46 = vunpack.i.h.bf16 %v2422_v51  ;;  %v2423_v28 = vunpack.i.l.bf16 %v2422_v51  ;;  %2641 = vrot.lane.b32.xlu0 %v3401_v0, %s2934_s25 }
  0xd9   : > { %v1441_v47 = vsel %vm1416_vm4, %v1408_v11, %v2423_v28  ;;  %v1442_v25 = vsel %vm1416_vm4, %v1409_v23, %v2424_v46  ;;  %v2432_v35 = vpop.permute.xlu0 %2431  ;;  %2651 = vrot.lane.b32.xlu2 %v3410_v61, %s2934_s25  ;;  %v4657_v28 = vld [vmem:[#allocation21_spill] sm:$0xff]  ;;  %v4658_v23 = vld [vmem:[#allocation19_spill] sm:$0xff] }
  0xda   : > { %v2434_v60 = vunpack.i.h.bf16 %v2432_v35  ;;  %v2433_v16 = vunpack.i.l.bf16 %v2432_v35 }
  0xdb   : > { %v2487_v41 = vpop.permute.xlu2 %2486 }
  0xdc   : > { %v3818_v21 = vsel %vm1416_vm4, %v3572_v1, %v2434_v60  ;;  %v3822_v10 = vsel %vm1416_vm4, %v3576_v18, %v2433_v16  ;;  %2646 = vrot.lane.b32.xlu1 %v3394_v17, %s2934_s25  ;;  %v2489_v50 = vunpack.i.h.bf16 %v2487_v41  ;;  %v2488_v14 = vunpack.i.l.bf16 %v2487_v41  ;;  %v4656_v1 = vld [vmem:[#allocation20_spill] sm:$0xff] }
  0xde   : > { %v2437_v9 = vpop.permute.xlu1 %2436  ;;  %v3827_v15 = vsel %vm1449_vm5, %v1435_v54, %v2488_v14  ;;  %v3830_v58 = vsel %vm1449_vm5, %v1436_v53, %v2489_v50 }
  0xdf   : > { %v2439_v3 = vunpack.i.h.bf16 %v2437_v9  ;;  %v2438_v5 = vunpack.i.l.bf16 %v2437_v9  ;;  %2656 = vrot.lane.b32.xlu0 %v4656_v1, %s2934_s25 }
  0xe1   : > { %v1447_v18 = vsel %vm1416_vm4, %v3674_v40, %v2438_v5  ;;  %v1448_v19 = vsel %vm1416_vm4, %v3670_v7, %v2439_v3  ;;  %v2447_v24 = vpop.permute.xlu0 %2446  ;;  %2666 = vrot.lane.b32.xlu2 %v4657_v28, %s2934_s25 }
  0xe2   : > { %v2449_v51 = vunpack.i.h.bf16 %v2447_v24  ;;  %v2448_v46 = vunpack.i.l.bf16 %v2447_v24  ;;  %v4661_v24 = vld [vmem:[#allocation40_spill] sm:$0xff] }
  0xe3   : > { %v2502_v40 = vpop.permute.xlu2 %2501 }
  0xe4   : > { %v3842_v54 = vsel %vm1449_vm5, %v3605_v49, %v2448_v46  ;;  %v3846_v53 = vsel %vm1449_vm5, %v3608_v20, %v2449_v51  ;;  %2661 = vrot.lane.b32.xlu1 %v4658_v23, %s2934_s25  ;;  %v2504_v11 = vunpack.i.h.bf16 %v2502_v40  ;;  %v2503_v7 = vunpack.i.l.bf16 %v2502_v40  ;;  %v4659_v49 = vld [vmem:[#allocation22_spill] sm:$0xff] }
  0xe6   : > { %v2452_v35 = vpop.permute.xlu1 %2451  ;;  %v3851_v41 = vsel %vm1449_vm5, %v1441_v47, %v2503_v7  ;;  %v3854_v50 = vsel %vm1449_vm5, %v1442_v25, %v2504_v11  ;;  %v4660_v47 = vld [vmem:[#allocation6_spill] sm:$0xff] }
  0xe7   : > { %v2454_v60 = vunpack.i.h.bf16 %v2452_v35  ;;  %v2453_v16 = vunpack.i.l.bf16 %v2452_v35  ;;  %2671 = vrot.lane.b32.xlu0 %v4659_v49, %s2934_s25 }
  0xe9   : > { %v1454_v20 = vsel %vm1449_vm5, %v3710_v57, %v2453_v16  ;;  %v1455_v14 = vsel %vm1449_vm5, %v3707_v12, %v2454_v60  ;;  %v2462_v9 = vpop.permute.xlu0 %2461  ;;  %2681 = vrot.lane.b32.xlu2 %v4636_v8, %s2935_s26  ;;  %v4662_v57 = vld [vmem:[#allocation23_spill] sm:$0xff] }
  0xea   : > { %v2464_v3 = vunpack.i.h.bf16 %v2462_v9  ;;  %v2463_v5 = vunpack.i.l.bf16 %v2462_v9 }
  0xeb   : > { %v2517_v12 = vpop.permute.xlu2 %2516 }
  0xec   : > { %v3866_v25 = vsel %vm1449_vm5, %v4660_v47, %v2464_v3  ;;  %v3870_v51 = vsel %vm1449_vm5, %v4661_v24, %v2463_v5  ;;  %2676 = vrot.lane.b32.xlu1 %v4662_v57, %s2936_s27  ;;  %v2519_v46 = vunpack.i.h.bf16 %v2517_v12  ;;  %v2518_v40 = vunpack.i.l.bf16 %v2517_v12  ;;  %v4663_v24 = vld [vmem:[#allocation28_spill] sm:$0xff]  ;;  %v4665_v57 = vld [vmem:[#allocation42_spill] sm:$0xff] }
  0xee   : > { %v2467_v11 = vpop.permute.xlu1 %2466  ;;  %v3875_v8 = vsel %vm1449_vm5, %v1447_v18, %v2518_v40  ;;  %v3878_v60 = vsel %vm1449_vm5, %v1448_v19, %v2519_v46  ;;  %v4664_v18 = vld [vmem:[#allocation41_spill] sm:$0xff] }
  0xef   : > { %v2469_v7 = vunpack.i.h.bf16 %v2467_v11  ;;  %v2468_v35 = vunpack.i.l.bf16 %v2467_v11  ;;  %2686 = vrot.lane.b32.xlu0 %v3329_v2, %s2937_s28  ;;  %v4666_v2 = vld [vmem:[#allocation25_spill] sm:$0xff] }
  0xf1   : > { %v1460_v16 = vsel %vm1449_vm5, %v3738_v55, %v2468_v35  ;;  %v1461_v9 = vsel %vm1449_vm5, %v3735_v62, %v2469_v7  ;;  %v2477_v3 = vpop.permute.xlu0 %2476  ;;  %2696 = vrot.lane.b32.xlu2 %v4663_v24, %s2936_s27 }
  0xf2   : > { %v2479_v5 = vunpack.i.h.bf16 %v2477_v3  ;;  %v2478_v47 = vunpack.i.l.bf16 %v2477_v3 }
  0xf3   : > { %v2532_v55 = vpop.permute.xlu2 %2531 }
  0xf4   : > { %v3890_v19 = vsel %vm1449_vm5, %v4664_v18, %v2479_v5  ;;  %v3894_v12 = vsel %vm1449_vm5, %v4665_v57, %v2478_v47  ;;  %2691 = vrot.lane.b32.xlu1 %v4666_v2, %s2936_s27  ;;  %v2534_v62 = vunpack.i.h.bf16 %v2532_v55  ;;  %v2533_v46 = vunpack.i.l.bf16 %v2532_v55  ;;  %v4667_v5 = vld [vmem:[#allocation8_spill] sm:$0xff]  ;;  %v4668_v55 = vld [vmem:[#allocation9_spill] sm:$0xff] }
  0xf6   : > { %v2482_v40 = vpop.permute.xlu1 %2481  ;;  %v3899_v35 = vsel %vm1482_vm6, %v1454_v20, %v2533_v46  ;;  %v3902_v3 = vsel %vm1482_vm6, %v1455_v14, %v2534_v62 }
  0xf7   : > { %v2484_v11 = vunpack.i.h.bf16 %v2482_v40  ;;  %v2483_v7 = vunpack.i.l.bf16 %v2482_v40  ;;  %2701 = vrot.lane.b32.xlu0 %v4667_v5, %s2935_s26 }
  0xf9   : > { %v1466_v47 = vsel %vm1449_vm5, %v3768_v52, %v2483_v7  ;;  %v1467_v24 = vsel %vm1449_vm5, %v3765_v63, %v2484_v11  ;;  %v2492_v18 = vpop.permute.xlu0 %2491  ;;  %2711 = vrot.lane.b32.xlu2 %v3347_v59, %s2937_s28 }
  0xfa   : > { %v2494_v57 = vunpack.i.h.bf16 %v2492_v18  ;;  %v2493_v2 = vunpack.i.l.bf16 %v2492_v18 }
  0xfb   : > { %v2547_v52 = vpop.permute.xlu2 %2546 }
  0xfc   : > { %v3914_v20 = vsel %vm1449_vm5, %v3685_v29, %v2494_v57  ;;  %v3918_v14 = vsel %vm1449_vm5, %v3688_v33, %v2493_v2  ;;  %2706 = vrot.lane.b32.xlu1 %v4668_v55, %s2935_s26  ;;  %v2549_v62 = vunpack.i.h.bf16 %v2547_v52  ;;  %v2548_v63 = vunpack.i.l.bf16 %v2547_v52  ;;  %v4669_v2 = vld [vmem:[#allocation14_spill] sm:$0xff] }
  0xfe   : > { %v2497_v46 = vpop.permute.xlu1 %2496  ;;  %v3923_v7 = vsel %vm1482_vm6, %v1460_v16, %v2548_v63  ;;  %v3926_v59 = vsel %vm1482_vm6, %v1461_v9, %v2549_v62 }
  0xff   : > { %v2499_v40 = vunpack.i.h.bf16 %v2497_v46  ;;  %v2498_v11 = vunpack.i.l.bf16 %v2497_v46  ;;  %2716 = vrot.lane.b32.xlu0 %v3374_v39, %s2937_s28  ;;  %v4670_v39 = vld [vmem:[#allocation30_spill] sm:$0xff] }
 0x101   : > { %v1472_v29 = vsel %vm1449_vm5, %v3796_v22, %v2498_v11  ;;  %v1473_v33 = vsel %vm1449_vm5, %v3792_v45, %v2499_v40  ;;  %v2507_v5 = vpop.permute.xlu0 %2506  ;;  %2726 = vrot.lane.b32.xlu2 %v4669_v2, %s2935_s26 }
 0x102   : > { %v2509_v18 = vunpack.i.h.bf16 %v2507_v5  ;;  %v2508_v57 = vunpack.i.l.bf16 %v2507_v5 }
 0x103   : > { %v2562_v22 = vpop.permute.xlu2 %2561 }
 0x104   : > { %v3938_v16 = vsel %vm1449_vm5, %v3717_v44, %v2509_v18  ;;  %v3942_v9 = vsel %vm1449_vm5, %v3720_v34, %v2508_v57  ;;  %2721 = vrot.lane.b32.xlu1 %v4670_v39, %s2936_s27  ;;  %v2564_v55 = vunpack.i.h.bf16 %v2562_v22  ;;  %v2563_v45 = vunpack.i.l.bf16 %v2562_v22  ;;  %v4671_v57 = vld [vmem:[#allocation27_spill] sm:$0xff] }
 0x106   : > { %v2512_v52 = vpop.permute.xlu1 %2511  ;;  %v3947_v46 = vsel %vm1482_vm6, %v1466_v47, %v2563_v45  ;;  %v3950_v40 = vsel %vm1482_vm6, %v1467_v24, %v2564_v55 }
 0x107   : > { %v2514_v62 = vunpack.i.h.bf16 %v2512_v52  ;;  %v2513_v63 = vunpack.i.l.bf16 %v2512_v52  ;;  %2731 = vrot.lane.b32.xlu0 %v3394_v17, %s2937_s28  ;;  %v4672_v17 = vld [vmem:[#allocation24_spill] sm:$0xff] }
 0x109   : > { %v1478_v44 = vsel %vm1449_vm5, %v3822_v10, %v2513_v63  ;;  %v1479_v34 = vsel %vm1449_vm5, %v3818_v21, %v2514_v62  ;;  %v2522_v11 = vpop.permute.xlu0 %2521  ;;  %2741 = vrot.lane.b32.xlu2 %v4671_v57, %s2936_s27 }
 0x10a   : > { %v2524_v5 = vunpack.i.h.bf16 %v2522_v11  ;;  %v2523_v18 = vunpack.i.l.bf16 %v2522_v11 }
 0x10b   : > { %v2577_v10 = vpop.permute.xlu2 %2576 }
 0x10c   : > { %v3962_v47 = vsel %vm1482_vm6, %v3745_v31, %v2524_v5  ;;  %v3966_v24 = vsel %vm1482_vm6, %v3748_v32, %v2523_v18  ;;  %2736 = vrot.lane.b32.xlu1 %v4672_v17, %s2936_s27  ;;  %v2579_v2 = vunpack.i.h.bf16 %v2577_v10  ;;  %v2578_v21 = vunpack.i.l.bf16 %v2577_v10  ;;  %v4673_v31 = vld [vmem:[#allocation5_spill] sm:$0xff] }
 0x10e   : > { %v2527_v39 = vpop.permute.xlu1 %2526  ;;  %v3971_v45 = vsel %vm1482_vm6, %v1472_v29, %v2578_v21  ;;  %v3974_v52 = vsel %vm1482_vm6, %v1473_v33, %v2579_v2 }
 0x10f   : > { %v2529_v22 = vunpack.i.h.bf16 %v2527_v39  ;;  %v2528_v55 = vunpack.i.l.bf16 %v2527_v39  ;;  %2746 = vrot.lane.b32.xlu0 %v4673_v31, %s2935_s26 }
 0x111   : > { %v3980_v32 = vsel %vm1482_vm6, %v3842_v54, %v2528_v55  ;;  %v3984_v62 = vsel %vm1482_vm6, %v3846_v53, %v2529_v22  ;;  %v2537_v63 = vpop.permute.xlu0 %2536  ;;  %2756 = vrot.lane.b32.xlu2 %v3340_v4, %s2937_s28  ;;  %v4674_v54 = vld [vmem:[#allocation11_spill] sm:$0xff] }
 0x112   : > { %v2539_v11 = vunpack.i.h.bf16 %v2537_v63  ;;  %v2538_v5 = vunpack.i.l.bf16 %v2537_v63 }
 0x113   : > { %v2592_v18 = vpop.permute.xlu2 %2591 }
 0x114   : > { %v3990_v29 = vsel %vm1482_vm6, %v3773_v38, %v2539_v11  ;;  %v3994_v33 = vsel %vm1482_vm6, %v3776_v56, %v2538_v5  ;;  %2751 = vrot.lane.b32.xlu1 %v4674_v54, %s2935_s26  ;;  %v2594_v53 = vunpack.i.h.bf16 %v2592_v18  ;;  %v2593_v57 = vunpack.i.l.bf16 %v2592_v18  ;;  %v4677_v5 = vld [vmem:[#allocation13_spill] sm:$0xff] }
 0x116   : > { %v2542_v17 = vpop.permute.xlu1 %2541  ;;  %v3999_v21 = vsel %vm1482_vm6, %v1478_v44, %v2593_v57  ;;  %v4002_v4 = vsel %vm1482_vm6, %v1479_v34, %v2594_v53  ;;  %v4675_v44 = vld [vmem:[#allocation35_spill] sm:$0xff] }
 0x117   : > { %v2544_v10 = vunpack.i.h.bf16 %v2542_v17  ;;  %v2543_v2 = vunpack.i.l.bf16 %v2542_v17  ;;  %2761 = vrot.lane.b32.xlu0 %v3367_v42, %s2937_s28 }
 0x119   : > { %v4008_v38 = vsel %vm1482_vm6, %v3870_v51, %v2543_v2  ;;  %v4012_v56 = vsel %vm1482_vm6, %v3866_v25, %v2544_v10  ;;  %v2552_v39 = vpop.permute.xlu0 %2551  ;;  %2771 = vrot.lane.b32.xlu2 %v4675_v44, %s2936_s27  ;;  %v4676_v51 = vld [vmem:[#allocation32_spill] sm:$0xff] }
 0x11a   : > { %v2554_v22 = vunpack.i.h.bf16 %v2552_v39  ;;  %v2553_v55 = vunpack.i.l.bf16 %v2552_v39 }
 0x11b   : > { %v4026_v31 = vpop.permute.xlu2 %2606 }
 0x11c   : > { %v4018_v34 = vsel %vm1482_vm6, %v3801_v30, %v2553_v55  ;;  %v4022_v42 = vsel %vm1482_vm6, %v3804_v43, %v2554_v22  ;;  %2766 = vrot.lane.b32.xlu1 %v4676_v51, %s2936_s27  ;;  %v4678_v55 = vld [vmem:[#allocation29_spill] sm:$0xff] }
 0x11e   : > { %v2557_v25 = vpop.permute.xlu1 %2556 }
 0x11f   : > { %v2559_v63 = vunpack.i.h.bf16 %v2557_v25  ;;  %v2558_v11 = vunpack.i.l.bf16 %v2557_v25  ;;  %2776 = vrot.lane.b32.xlu0 %v4677_v5, %s2935_s26 }
 0x121   : > { %v1497_v54 = vsel %vm1482_vm6, %v3894_v12, %v2558_v11  ;;  %v1498_v30 = vsel %vm1482_vm6, %v3890_v19, %v2559_v63  ;;  %v2567_v18 = vpop.permute.xlu0 %2566  ;;  %2786 = vrot.lane.b32.xlu2 %v3410_v61, %s2937_s28 }
 0x122   : > { %v2569_v43 = vunpack.i.h.bf16 %v2567_v18  ;;  %v2568_v53 = vunpack.i.l.bf16 %v2567_v18  ;;  %v4680_v18 = vld [vmem:[#allocation7_spill] sm:$0xff] }
 0x123   : > { %v4046_v12 = vpop.permute.xlu2 %2621 }
 0x124   : > { %v4038_v57 = vsel %vm1482_vm6, %v3827_v15, %v2568_v53  ;;  %v4042_v17 = vsel %vm1482_vm6, %v3830_v58, %v2569_v43  ;;  %2781 = vrot.lane.b32.xlu1 %v4655_v37, %s2935_s26 }
 0x126   : > { %v2572_v19 = vpop.permute.xlu1 %2571 }
 0x127   : > { %v2574_v10 = vunpack.i.h.bf16 %v2572_v19  ;;  %v2573_v2 = vunpack.i.l.bf16 %v2572_v19  ;;  %2791 = vrot.lane.b32.xlu0 %v4657_v28, %s2937_s28  ;;  %v4679_v28 = vld [vmem:[#allocation26_spill] sm:$0xff] }
 0x129   : > { %v1503_v61 = vsel %vm1482_vm6, %v3918_v14, %v2573_v2  ;;  %v1504_v15 = vsel %vm1482_vm6, %v3914_v20, %v2574_v10  ;;  %v2582_v39 = vpop.permute.xlu0 %2581  ;;  %2801 = vrot.lane.b32.xlu2 %v4678_v55, %s2936_s27  ;;  %v4681_v2 = vld [vmem:[#allocation10_spill] sm:$0xff] }
 0x12a   : > { %v2584_v58 = vunpack.i.h.bf16 %v2582_v39  ;;  %v2583_v22 = vunpack.i.l.bf16 %v2582_v39 }
 0x12b   : > { %v2637_v14 = vpop.permute.xlu2 %2636 }
 0x12c   : > { %v4058_v37 = vsel %vm1482_vm6, %v3851_v41, %v2583_v22  ;;  %v4062_v44 = vsel %vm1482_vm6, %v3854_v50, %v2584_v58  ;;  %2796 = vrot.lane.b32.xlu1 %v4679_v28, %s2936_s27  ;;  %v2639_v51 = vunpack.i.h.bf16 %v2637_v14  ;;  %v2638_v20 = vunpack.i.l.bf16 %v2637_v14 }
 0x12e   : > { %v2587_v25 = vpop.permute.xlu1 %2586  ;;  %v4067_v5 = vsel %vm1515_vm7, %v1497_v54, %v2638_v20  ;;  %v4070_v41 = vsel %vm1515_vm7, %v1498_v30, %v2639_v51  ;;  %v4682_v51 = vld [vmem:[#allocation39_spill] sm:$0xff] }
 0x12f   : > { %v2589_v63 = vunpack.i.h.bf16 %v2587_v25  ;;  %v2588_v11 = vunpack.i.l.bf16 %v2587_v25  ;;  %2806 = vrot.lane.b32.xlu0 %v4680_v18, %s2935_s26 }
 0x131   : > { %v1509_v50 = vsel %vm1482_vm6, %v3942_v9, %v2588_v11  ;;  %v1510_v43 = vsel %vm1482_vm6, %v3938_v16, %v2589_v63  ;;  %v2597_v53 = vpop.permute.xlu0 %2596  ;;  %2816 = vrot.lane.b32.xlu2 %v3356_v26, %s2937_s28  ;;  %v1667_v26 = vld [vmem:[%s4532_s1 + $0x10] sm:$0x3] }
 0x132   : > { %v2599_v19 = vunpack.i.h.bf16 %v2597_v53  ;;  %v2598_v10 = vunpack.i.l.bf16 %v2597_v53 }
 0x133   : > { %v2652_v9 = vpop.permute.xlu2 %2651 }
 0x134   : > { %v4082_v54 = vsel %vm1482_vm6, %v3875_v8, %v2598_v10  ;;  %v4086_v30 = vsel %vm1482_vm6, %v3878_v60, %v2599_v19  ;;  %2811 = vrot.lane.b32.xlu1 %v4681_v2, %s2935_s26  ;;  %v2654_v39 = vunpack.i.h.bf16 %v2652_v9  ;;  %v2653_v16 = vunpack.i.l.bf16 %v2652_v9  ;;  %v2158_v19 = vld [vmem:[%s4532_s1 + $0x8] sm:$0xff] }
 0x135   : > { %v1681_v60 = vunpack.c.l.b16 %v1667_v26  ;;  %v4684_v9 = vld [vmem:[#allocation15_spill] sm:$0xff] }
 0x136   : > { %v4090_v58 = vpop.permute.xlu1 %2601  ;;  %v4096_v22 = vsel %vm1515_vm7, %v1503_v61, %v2653_v16  ;;  %v4099_v8 = vsel %vm1515_vm7, %v1504_v15, %v2654_v39  ;;  %v4683_v15 = vld [vmem:[#allocation34_spill] sm:$0xff] }
 0x137   : > { %2821 = vrot.lane.b32.xlu0 %v3383_v27, %s2937_s28  ;;  %v1684_v20 = vpack.c.b16 %v1681_v60, %v1681_v60 }
 0x139   : > { %v2612_v55 = vpop.permute.xlu0 %2611  ;;  %2831 = vrot.lane.b32.xlu2 %v4682_v51, %s2936_s27  ;;  %v1738_v63 = vsel %vm1736_vm8, %v1684_v20, 0  ;;  %v4685_v51 = vld [vmem:[#allocation12_spill] sm:$0xff]  ;;  %v4686_v20 = vld [vmem:[#allocation31_spill] sm:$0xff] }
 0x13a   : > { %v2614_v28 = vunpack.i.h.bf16 %v2612_v55  ;;  %v2613_v14 = vunpack.i.l.bf16 %v2612_v55  ;;  %1745 = vmatpush.bf16.msra.mxu0 %v1738_v63  ;;  %2254 = vmatpush.bf16.msra.mxu1 %v1738_v63 }
 0x13b   : > { %v2667_v27 = vpop.permute.xlu2 %2666  ;;  %2255 = vmatpush.bf16.msra.mxu2 %v1738_v63  ;;  %2256 = vmatpush.bf16.msra.mxu3 %v1738_v63 }
 0x13c   : > { %v4107_v25 = vsel %vm1515_vm7, %v3899_v35, %v2613_v14  ;;  %v4111_v61 = vsel %vm1515_vm7, %v3902_v3, %v2614_v28  ;;  %2826 = vrot.lane.b32.xlu1 %v4683_v15, %s2936_s27  ;;  %v2669_v11 = vunpack.i.h.bf16 %v2667_v27  ;;  %v2668_v18 = vunpack.i.l.bf16 %v2667_v27 }
 0x13e   : > { %v2617_v53 = vpop.permute.xlu1 %2616  ;;  %v4119_v3 = vsel %vm1515_vm7, %v1509_v50, %v2668_v18  ;;  %v4122_v2 = vsel %vm1515_vm7, %v1510_v43, %v2669_v11  ;;  %1746 = vmatpush.bf16.msra.mxu0 %v2158_v19  ;;  %2257 = vmatpush.bf16.msra.mxu1 %v2158_v19  ;;  %v2157_v43 = vld [vmem:[%s4532_s1] sm:$0xff] }
 0x13f   : > { %v2619_v35 = vunpack.i.h.bf16 %v2617_v53  ;;  %v2618_v10 = vunpack.i.l.bf16 %v2617_v53  ;;  %2836 = vrot.lane.b32.xlu0 %v4684_v9, %s2935_s26  ;;  %2258 = vmatpush.bf16.msra.mxu2 %v2158_v19 }
 0x140   : > { %2259 = vmatpush.bf16.msra.mxu3 %v2158_v19  ;;  %v4687_v19 = vld [vmem:[#allocation38_spill] sm:$0xff] }
 0x141   : > { %v4128_v39 = vsel %vm1515_vm7, %v3994_v33, %v2618_v10  ;;  %v4132_v16 = vsel %vm1515_vm7, %v3990_v29, %v2619_v35  ;;  %v2627_v26 = vpop.permute.xlu0 %2626  ;;  %2846 = vrot.lane.b32.xlu2 %v4656_v1, %s2937_s28  ;;  %v4688_v35 = vld [vmem:[#allocation37_spill] sm:$0xff] }
 0x142   : > { %v2629_v60 = vunpack.i.h.bf16 %v2627_v26  ;;  %v2628_v50 = vunpack.i.l.bf16 %v2627_v26  ;;  %1747 = vmatpush.bf16.msra.mxu0 %v2157_v43  ;;  %2260 = vmatpush.bf16.msra.mxu1 %v2157_v43  ;;  %v994_v10 = vrot.slane %v4688_v35, 2  ;;  %v4690_v26 = vld [vmem:[#allocation36_spill] sm:$0xff] }
 0x143   : > { %v4149_v55 = vpop.permute.xlu2 %2681  ;;  %2261 = vmatpush.bf16.msra.mxu2 %v2157_v43 }
 0x144   : > { %v4141_v33 = vsel %vm1515_vm7, %v3923_v7, %v2628_v50  ;;  %v4145_v29 = vsel %vm1515_vm7, %v3926_v59, %v2629_v60  ;;  %2841 = vrot.lane.b32.xlu1 %v3303_v13, %s2935_s26  ;;  %2262 = vmatpush.bf16.msra.mxu3 %v2157_v43  ;;  %v995_v60 = vrot.slane %v4690_v26, 2  ;;  %v4691_v50 = vld [vmem:[#allocation43_spill] sm:$0xff] }
 0x145   : > { %v997_v43 = vrot.slane %v4691_v50, 2 }
 0x146   : > { %v2632_v1 = vpop.permute.xlu1 %2631 }
 0x147   : > { %v2634_v28 = vunpack.i.h.bf16 %v2632_v1  ;;  %v2633_v14 = vunpack.i.l.bf16 %v2632_v1  ;;  %2851 = vrot.lane.b32.xlu0 %v4659_v49, %s2937_s28 }
 0x149   : > { %v4155_v7 = vsel %vm1515_vm7, %v4018_v34, %v2633_v14  ;;  %v4159_v59 = vsel %vm1515_vm7, %v4022_v42, %v2634_v28  ;;  %v4161_v13 = vpop.permute.xlu0 %2641  ;;  %2861 = vrot.lane.b32.xlu2 %v4685_v51, %s2935_s26  ;;  %v998_v28 = vsel %vm618_vm2, %v995_v60, %v997_v43  ;;  %v2608_v43 = vunpack.i.l.bf16 %v4026_v31 }
 0x14b   : > { %v4167_v15 = vpop.permute.xlu2 %2696 }
 0x14c   : > { %2856 = vrot.lane.b32.xlu1 %v4686_v20, %s2936_s27 }
 0x14e   : > { %v2647_v49 = vpop.permute.xlu1 %2646 }
 0x14f   : > { %v2649_v27 = vunpack.i.h.bf16 %v2647_v49  ;;  %v2648_v63 = vunpack.i.l.bf16 %v2647_v49  ;;  %2866 = vrot.lane.b32.xlu0 %v3401_v0, %s2937_s28  ;;  %v2604_v49 = vunpack.i.h.bf16 %v4090_v58 }
 0x151   : > { %v4173_v34 = vsel %vm1515_vm7, %v4038_v57, %v2648_v63  ;;  %v4177_v42 = vsel %vm1515_vm7, %v4042_v17, %v2649_v27  ;;  %v2657_v11 = vpop.permute.xlu0 %2656  ;;  %2876 = vrot.lane.b32.xlu2 %v4687_v19, %s2936_s27  ;;  %v4689_v57 = vld [vmem:[#allocation33_spill] sm:$0xff]  ;;  %v2603_v27 = vunpack.i.l.bf16 %v4090_v58  ;;  %v4692_v58 = vld [vmem:[#allocation2_spill] sm:$0xff] }
 0x152   : > { %v2659_v18 = vunpack.i.h.bf16 %v2657_v11  ;;  %v2658_v53 = vunpack.i.l.bf16 %v2657_v11  ;;  %v2905_v19 = vpack.i.bf16 %v4692_v58, %v4654_v36 }
 0x153   : > { %v4192_v17 = vpop.permute.xlu2 %2711 }
 0x154   : > { %v4184_v9 = vsel %vm1515_vm7, %v3971_v45, %v2658_v53  ;;  %v4188_v0 = vsel %vm1515_vm7, %v3974_v52, %v2659_v18  ;;  %2871 = vrot.lane.b32.xlu1 %v4689_v57, %s2936_s27  ;;  %v996_v45 = vsel %vm618_vm2, %v994_v10, %v995_v60  ;;  %v2683_v18 = vunpack.i.l.bf16 %v4149_v55 }
 0x155   : > { %v2895_v20 = vpack.i.bf16 %v998_v28, %v996_v45 }
 0x156   : > { %v4196_v1 = vpop.permute.xlu1 %2661 }
 0x157   : > { %2881 = vrot.lane.b32.xlu0 %v4653_v6, %s2935_s26 }
 0x159   : > { %v2672_v52 = vpop.permute.xlu0 %2671  ;;  %2891 = vrot.lane.b32.xlu2 %v4658_v23, %s2937_s28  ;;  %v2684_v23 = vunpack.i.h.bf16 %v4149_v55 }
 0x15a   : > { %v2674_v14 = vunpack.i.h.bf16 %v2672_v52  ;;  %v2673_v51 = vunpack.i.l.bf16 %v2672_v52 }
 0x15b   : > { %v4216_v11 = vpop.permute.xlu2 %2726 }
 0x15c   : > { %v4208_v63 = vsel %vm1515_vm7, %v3999_v21, %v2673_v51  ;;  %v4212_v6 = vsel %vm1515_vm7, %v4002_v4, %v2674_v14  ;;  %2886 = vrot.lane.b32.xlu1 %v3704_v48, %s2935_s26  ;;  %v1516_v4 = vsel %vm1515_vm7, %v3966_v24, %v2603_v27  ;;  %v1517_v48 = vsel %vm1515_vm7, %v3962_v47, %v2604_v49  ;;  %v4693_v27 = vld [vmem:[#allocation4_spill] sm:$0xff] }
 0x15d   : > { %v2609_v24 = vunpack.i.h.bf16 %v4026_v31  ;;  %v1518_v31 = vsel %vm1515_vm7, %v3980_v32, %v2608_v43  ;;  %v2699_v32 = vunpack.i.h.bf16 %v4167_v15 }
 0x15e   : > { %v2677_v53 = vpop.permute.xlu1 %2676 }
 0x15f   : > { %v2679_v35 = vunpack.i.h.bf16 %v2677_v53  ;;  %v2678_v21 = vunpack.i.l.bf16 %v2677_v53  ;;  %2896 = vrot.lane.b32.xlu0 %v2895_v20, %s2937_s28 }
 0x161   : > { %v1549_v10 = vsel %vm1548_vm10, %v1516_v4, %v2678_v21  ;;  %v1550_v55 = vsel %vm1548_vm10, %v1517_v48, %v2679_v35  ;;  %v2687_v57 = vpop.permute.xlu0 %2686  ;;  %2906 = vrot.lane.b32.xlu2 %v2905_v19, %s2936_s27  ;;  %v2624_v4 = vunpack.i.h.bf16 %v4046_v12  ;;  %v2623_v48 = vunpack.i.l.bf16 %v4046_v12 }
 0x162   : > { %v2689_v26 = vunpack.i.h.bf16 %v2687_v57  ;;  %v2688_v36 = vunpack.i.l.bf16 %v2687_v57  ;;  %v1582_v60 = vsel %vm1581_vm9, %v1549_v10, %v2683_v18  ;;  %v1583_v50 = vsel %vm1581_vm9, %v1550_v55, %v2684_v23 }
 0x163   : > { %v4235_v47 = vpop.permute.xlu2 %2741  ;;  %v2714_v23 = vunpack.i.h.bf16 %v4192_v17  ;;  %v2713_v18 = vunpack.i.l.bf16 %v4192_v17  ;;  %v2698_v10 = vunpack.i.l.bf16 %v4167_v15  ;;  %v4694_v17 = vld [vmem:[#allocation18_spill] sm:$0xff]  ;;  %v1524_v12 = vsel %vm1515_vm7, %v4008_v38, %v2623_v48 }
 0x164   : > { %2901 = vrot.lane.b32.xlu1 %v2895_v20, %s2934_s25  ;;  %v1615_v45 = vsel %vm1614_vm11, %v1582_v60, %v2688_v36  ;;  %v1616_v28 = vsel %vm1614_vm11, %v1583_v50, %v2689_v26  ;;  %v1519_v20 = vsel %vm1515_vm7, %v3984_v62, %v2609_v24  ;;  %v1525_v15 = vsel %vm1515_vm7, %v4012_v56, %v2624_v4 }
 0x165   : > { %v1647_v52 = vpack.c.bf16 %v1616_v28, %v1615_v45  ;;  %v1557_v45 = vsel %vm1548_vm10, %v1524_v12, %v2698_v10  ;;  %v1558_v28 = vsel %vm1548_vm10, %v1525_v15, %v2699_v32  ;;  %v2643_v38 = vunpack.i.l.bf16 %v4161_v13 }
 0x166   : > { %v2692_v14 = vpop.permute.xlu1 %2691 }
 0x167   : > { %v2694_v51 = vunpack.i.h.bf16 %v2692_v14  ;;  %v2693_v49 = vunpack.i.l.bf16 %v2692_v14  ;;  %2911 = vrot.lane.b32.xlu0 %v4693_v27, %s2935_s26  ;;  %2137 = vmatmul.msk.bf16.vlgmr.msra.gmra.mxu0 %vm1687_vm12, %v1647_v52 }
 0x169   : > { %v1551_v53 = vsel %vm1548_vm10, %v1518_v31, %v2693_v49  ;;  %v1552_v58 = vsel %vm1548_vm10, %v1519_v20, %v2694_v51  ;;  %v2702_v19 = vpop.permute.xlu0 %2701  ;;  %v2644_v31 = vunpack.i.h.bf16 %v4161_v13 }
 0x16a   : > { %v2704_v35 = vunpack.i.h.bf16 %v2702_v19  ;;  %v2703_v21 = vunpack.i.l.bf16 %v2702_v19 }
 0x16b   : > { %v2757_v60 = vpop.permute.xlu2 %2756  ;;  %v1533_v13 = vsel %vm1515_vm7, %v3950_v40, %v2644_v31 }
 0x16c   : > { %v1584_v62 = vsel %vm1581_vm9, %v1551_v53, %v2703_v21  ;;  %v1585_v55 = vsel %vm1581_vm9, %v1552_v58, %v2704_v35  ;;  %2916 = vrot.lane.b32.xlu1 %v4694_v17, %s2937_s28  ;;  %v2728_v53 = vunpack.i.l.bf16 %v4216_v11  ;;  %v1532_v21 = vsel %vm1515_vm7, %v3947_v46, %v2643_v38 }
 0x16d   : > { %v1617_v57 = vsel %vm1614_vm11, %v1584_v62, %v2713_v18  ;;  %v1618_v26 = vsel %vm1614_vm11, %v1585_v55, %v2714_v23  ;;  %v2729_v18 = vunpack.i.h.bf16 %v4216_v11  ;;  %v2759_v12 = vunpack.i.h.bf16 %v2757_v60 }
 0x16e   : > { %v2707_v36 = vpop.permute.xlu1 %2706  ;;  %v1648_v50 = vpack.c.bf16 %v1618_v26, %v1617_v57  ;;  %v2758_v15 = vunpack.i.l.bf16 %v2757_v60 }
 0x16f   : > { %v2709_v24 = vunpack.i.h.bf16 %v2707_v36  ;;  %v2708_v43 = vunpack.i.l.bf16 %v2707_v36 }
 0x171   : > { %v1590_v52 = vsel %vm1581_vm9, %v1557_v45, %v2708_v43  ;;  %v1591_v14 = vsel %vm1581_vm9, %v1558_v28, %v2709_v24  ;;  %v2717_v51 = vpop.permute.xlu0 %2716 }
 0x172   : > { %v2719_v49 = vunpack.i.h.bf16 %v2717_v51  ;;  %v2718_v27 = vunpack.i.l.bf16 %v2717_v51  ;;  %v2744_v51 = vunpack.i.h.bf16 %v4235_v47 }
 0x173   : > { %v4280_v4 = vpop.permute.xlu2 %2771 }
 0x174   : > { %v1623_v20 = vsel %vm1614_vm11, %v1590_v52, %v2718_v27  ;;  %v1624_v56 = vsel %vm1614_vm11, %v1591_v14, %v2719_v49  ;;  %v2743_v49 = vunpack.i.l.bf16 %v4235_v47 }
 0x175   : > { %v1651_v23 = vpack.c.bf16 %v1624_v56, %v1623_v20 }
 0x176   : > { %v2722_v58 = vpop.permute.xlu1 %2721 }
 0x177   : > { %v2724_v19 = vunpack.i.h.bf16 %v2722_v58  ;;  %v2723_v35 = vunpack.i.l.bf16 %v2722_v58  ;;  %2138 = vmatmul.msk.bf16.gmra.mxu0 %vm1687_vm12, %v1648_v50  ;;  %2141 = vmatmul.msk.bf16.vlgmr.msra.gmra.mxu1 %vm1687_vm12, %v1651_v23  ;;  %v1559_v23 = vsel %vm1548_vm10, %v4141_v33, %v2743_v49 }
 0x179   : > { %v1565_v48 = vsel %vm1548_vm10, %v1532_v21, %v2723_v35  ;;  %v1566_v32 = vsel %vm1548_vm10, %v1533_v13, %v2724_v19  ;;  %v2732_v11 = vpop.permute.xlu0 %2731 }
 0x17a   : > { %v2734_v10 = vunpack.i.h.bf16 %v2732_v11  ;;  %v2733_v62 = vunpack.i.l.bf16 %v2732_v11  ;;  %v1598_v55 = vsel %vm1581_vm9, %v1565_v48, %v2728_v53  ;;  %v1599_v17 = vsel %vm1581_vm9, %v1566_v32, %v2729_v18 }
 0x17b   : > { %v2787_v28 = vpop.permute.xlu2 %2786  ;;  %v1560_v18 = vsel %vm1548_vm10, %v4145_v29, %v2744_v51 }
 0x17c   : > { %v1631_v57 = vsel %vm1614_vm11, %v1598_v55, %v2733_v62  ;;  %v1632_v46 = vsel %vm1614_vm11, %v1599_v17, %v2734_v10  ;;  %v2789_v29 = vunpack.i.h.bf16 %v2787_v28  ;;  %v2788_v62 = vunpack.i.l.bf16 %v2787_v28 }
 0x17d   : > { %v1655_v26 = vpack.c.bf16 %v1632_v46, %v1631_v57 }
 0x17e   : > { %v2737_v36 = vpop.permute.xlu1 %2736 }
 0x17f   : > { %v2739_v40 = vunpack.i.h.bf16 %v2737_v36  ;;  %v2738_v50 = vunpack.i.l.bf16 %v2737_v36  ;;  %2145 = vmatmul.msk.bf16.vlgmr.msra.gmra.mxu2 %vm1687_vm12, %v1655_v26  ;;  %v2664_v36 = vunpack.i.h.bf16 %v4196_v1 }
 0x181   : > { %v1553_v24 = vsel %vm1548_vm10, %v4107_v25, %v2738_v50  ;;  %v1554_v43 = vsel %vm1548_vm10, %v4111_v61, %v2739_v40  ;;  %v2747_v45 = vpop.permute.xlu0 %2746  ;;  %v2663_v40 = vunpack.i.l.bf16 %v4196_v1  ;;  %v2774_v50 = vunpack.i.h.bf16 %v4280_v4 }
 0x182   : > { %v2749_v52 = vunpack.i.h.bf16 %v2747_v45  ;;  %v2748_v14 = vunpack.i.l.bf16 %v2747_v45  ;;  %v1541_v1 = vsel %vm1515_vm7, %v4062_v44, %v2664_v36 }
 0x183   : > { %v4306_v21 = vpop.permute.xlu2 %2801  ;;  %v1574_v49 = vsel %vm1548_vm10, %v1541_v1, %v2774_v50 }
 0x184   : > { %v1586_v27 = vsel %vm1581_vm9, %v1553_v24, %v2748_v14  ;;  %v1587_v31 = vsel %vm1581_vm9, %v1554_v43, %v2749_v52  ;;  %v1540_v52 = vsel %vm1515_vm7, %v4058_v37, %v2663_v40 }
 0x185   : > { %v1619_v60 = vsel %vm1614_vm11, %v1586_v27, %v2758_v15  ;;  %v1620_v38 = vsel %vm1614_vm11, %v1587_v31, %v2759_v12  ;;  %v2773_v12 = vunpack.i.l.bf16 %v4280_v4 }
 0x186   : > { %v2752_v25 = vpop.permute.xlu1 %2751  ;;  %v1649_v20 = vpack.c.bf16 %v1620_v38, %v1619_v60 }
 0x187   : > { %v2754_v56 = vunpack.i.h.bf16 %v2752_v25  ;;  %v2753_v61 = vunpack.i.l.bf16 %v2752_v25  ;;  %v1573_v4 = vsel %vm1548_vm10, %v1540_v52, %v2773_v12 }
 0x188   : > { %2139 = vmatmul.msk.bf16.gmra.mxu0 %vm1687_vm12, %v1649_v20 }
 0x189   : > { %v1592_v47 = vsel %vm1581_vm9, %v1559_v23, %v2753_v61  ;;  %v1593_v53 = vsel %vm1581_vm9, %v1560_v18, %v2754_v56  ;;  %v2762_v58 = vpop.permute.xlu0 %2761 }
 0x18a   : > { %v2764_v19 = vunpack.i.h.bf16 %v2762_v58  ;;  %v2763_v35 = vunpack.i.l.bf16 %v2762_v58 }
 0x18c   : > { %v1625_v13 = vsel %vm1614_vm11, %v1592_v47, %v2763_v35  ;;  %v1626_v48 = vsel %vm1614_vm11, %v1593_v53, %v2764_v19 }
 0x18d   : > { %v1652_v32 = vpack.c.bf16 %v1626_v48, %v1625_v13 }
 0x18e   : > { %v2767_v33 = vpop.permute.xlu1 %2766 }
 0x18f   : > { %v2769_v11 = vunpack.i.h.bf16 %v2767_v33  ;;  %v2768_v10 = vunpack.i.l.bf16 %v2767_v33  ;;  %2142 = vmatmul.msk.bf16.gmra.mxu1 %vm1687_vm12, %v1652_v32  ;;  %v2804_v32 = vunpack.i.h.bf16 %v4306_v21  ;;  %v2803_v33 = vunpack.i.l.bf16 %v4306_v21 }
 0x191   : > { %v1567_v55 = vsel %vm1548_vm10, %v4173_v34, %v2768_v10  ;;  %v1568_v17 = vsel %vm1548_vm10, %v4177_v42, %v2769_v11  ;;  %v2777_v57 = vpop.permute.xlu0 %2776  ;;  %v2817_v42 = vpop.permute.xlu2 %2816 }
 0x192   : > { %v2779_v46 = vunpack.i.h.bf16 %v2777_v57  ;;  %v2778_v26 = vunpack.i.l.bf16 %v2777_v57  ;;  %v2819_v47 = vunpack.i.h.bf16 %v2817_v42  ;;  %v2818_v53 = vunpack.i.l.bf16 %v2817_v42 }
 0x194   : > { %v1600_v15 = vsel %vm1581_vm9, %v1567_v55, %v2778_v26  ;;  %v1601_v24 = vsel %vm1581_vm9, %v1568_v17, %v2779_v46  ;;  %v1562_v46 = vsel %vm1548_vm10, %v4159_v59, %v2804_v32 }
 0x195   : > { %v1633_v34 = vsel %vm1614_vm11, %v1600_v15, %v2788_v62  ;;  %v1634_v43 = vsel %vm1614_vm11, %v1601_v24, %v2789_v29 }
 0x196   : > { %v2782_v45 = vpop.permute.xlu1 %2781  ;;  %v1656_v28 = vpack.c.bf16 %v1634_v43, %v1633_v34 }
 0x197   : > { %v2784_v14 = vunpack.i.h.bf16 %v2782_v45  ;;  %v2783_v51 = vunpack.i.l.bf16 %v2782_v45 }
 0x198   : > { %2146 = vmatmul.msk.bf16.gmra.mxu2 %vm1687_vm12, %v1656_v28 }
 0x199   : > { %v1606_v27 = vsel %vm1581_vm9, %v1573_v4, %v2783_v51  ;;  %v1607_v31 = vsel %vm1581_vm9, %v1574_v49, %v2784_v14  ;;  %v2792_v60 = vpop.permute.xlu0 %2791  ;;  %v2832_v18 = vpop.permute.xlu2 %2831 }
 0x19a   : > { %v2794_v38 = vunpack.i.h.bf16 %v2792_v60  ;;  %v2793_v25 = vunpack.i.l.bf16 %v2792_v60  ;;  %v2834_v4 = vunpack.i.h.bf16 %v2832_v18  ;;  %v2833_v49 = vunpack.i.l.bf16 %v2832_v18 }
 0x19c   : > { %v1639_v37 = vsel %vm1614_vm11, %v1606_v27, %v2793_v25  ;;  %v1640_v20 = vsel %vm1614_vm11, %v1607_v31, %v2794_v38 }
 0x19d   : > { %v1659_v44 = vpack.c.bf16 %v1640_v20, %v1639_v37 }
 0x19e   : > { %v2797_v56 = vpop.permute.xlu1 %2796 }
 0x19f   : > { %v2799_v61 = vunpack.i.h.bf16 %v2797_v56  ;;  %v2798_v23 = vunpack.i.l.bf16 %v2797_v56  ;;  %2149 = vmatmul.msk.bf16.vlgmr.msra.gmra.mxu3 %vm1687_vm12, %v1659_v44  ;;  %v1576_v56 = vsel %vm1548_vm10, %v4122_v2, %v2834_v4 }
 0x1a1   : > { %v1555_v58 = vsel %vm1548_vm10, %v4128_v39, %v2798_v23  ;;  %v1556_v19 = vsel %vm1548_vm10, %v4132_v16, %v2799_v61  ;;  %v2807_v35 = vpop.permute.xlu0 %2806  ;;  %v1561_v16 = vsel %vm1548_vm10, %v4155_v7, %v2803_v33  ;;  %v2847_v40 = vpop.permute.xlu2 %2846 }
 0x1a2   : > { %v2809_v13 = vunpack.i.h.bf16 %v2807_v35  ;;  %v2808_v48 = vunpack.i.l.bf16 %v2807_v35  ;;  %v2849_v59 = vunpack.i.h.bf16 %v2847_v40  ;;  %v2848_v45 = vunpack.i.l.bf16 %v2847_v40 }
 0x1a4   : > { %v1588_v11 = vsel %vm1581_vm9, %v1555_v58, %v2808_v48  ;;  %v1589_v10 = vsel %vm1581_vm9, %v1556_v19, %v2809_v13 }
 0x1a5   : > { %v1621_v29 = vsel %vm1614_vm11, %v1588_v11, %v2818_v53  ;;  %v1622_v62 = vsel %vm1614_vm11, %v1589_v10, %v2819_v47 }
 0x1a6   : > { %v2812_v55 = vpop.permute.xlu1 %2811  ;;  %v1650_v39 = vpack.c.bf16 %v1622_v62, %v1621_v29 }
 0x1a7   : > { %v2814_v17 = vunpack.i.h.bf16 %v2812_v55  ;;  %v2813_v57 = vunpack.i.l.bf16 %v2812_v55 }
 0x1a8   : > { %2140 = vmatmul.msk.bf16.gmra.mxu0 %vm1687_vm12, %v1650_v39 }
 0x1a9   : > { %v1594_v21 = vsel %vm1581_vm9, %v1561_v16, %v2813_v57  ;;  %v1595_v26 = vsel %vm1581_vm9, %v1562_v46, %v2814_v17  ;;  %v2822_v36 = vpop.permute.xlu0 %2821  ;;  %v2862_v27 = vpop.permute.xlu2 %2861 }
 0x1aa   : > { %v2824_v50 = vunpack.i.h.bf16 %v2822_v36  ;;  %v2823_v12 = vunpack.i.l.bf16 %v2822_v36  ;;  %v2864_v13 = vunpack.i.h.bf16 %v2862_v27  ;;  %v2863_v48 = vunpack.i.l.bf16 %v2862_v27 }
 0x1ac   : > { %v1627_v15 = vsel %vm1614_vm11, %v1594_v21, %v2823_v12  ;;  %v1628_v24 = vsel %vm1614_vm11, %v1595_v26, %v2824_v50 }
 0x1ad   : > { %v1653_v34 = vpack.c.bf16 %v1628_v24, %v1627_v15 }
 0x1ae   : > { %v2827_v43 = vpop.permute.xlu1 %2826 }
 0x1af   : > { %v2829_v7 = vunpack.i.h.bf16 %v2827_v43  ;;  %v2828_v42 = vunpack.i.l.bf16 %v2827_v43  ;;  %2143 = vmatmul.msk.bf16.gmra.mxu1 %vm1687_vm12, %v1653_v34 }
 0x1b1   : > { %v1569_v28 = vsel %vm1548_vm10, %v4096_v22, %v2828_v42  ;;  %v1570_v52 = vsel %vm1548_vm10, %v4099_v8, %v2829_v7  ;;  %v2837_v1 = vpop.permute.xlu0 %2836  ;;  %v1575_v8 = vsel %vm1548_vm10, %v4119_v3, %v2833_v49  ;;  %v2877_v3 = vpop.permute.xlu2 %2876 }
 0x1b2   : > { %v2839_v14 = vunpack.i.h.bf16 %v2837_v1  ;;  %v2838_v51 = vunpack.i.l.bf16 %v2837_v1  ;;  %v2879_v43 = vunpack.i.h.bf16 %v2877_v3  ;;  %v2878_v7 = vunpack.i.l.bf16 %v2877_v3 }
 0x1b4   : > { %v1602_v31 = vsel %vm1581_vm9, %v1569_v28, %v2838_v51  ;;  %v1603_v60 = vsel %vm1581_vm9, %v1570_v52, %v2839_v14  ;;  %v1578_v51 = vsel %vm1548_vm10, %v4212_v6, %v2879_v43 }
 0x1b5   : > { %v1635_v38 = vsel %vm1614_vm11, %v1602_v31, %v2848_v45  ;;  %v1636_v25 = vsel %vm1614_vm11, %v1603_v60, %v2849_v59 }
 0x1b6   : > { %v2842_v37 = vpop.permute.xlu1 %2841  ;;  %v1657_v20 = vpack.c.bf16 %v1636_v25, %v1635_v38 }
 0x1b7   : > { %v2844_v22 = vunpack.i.h.bf16 %v2842_v37  ;;  %v2843_v44 = vunpack.i.l.bf16 %v2842_v37 }
 0x1b8   : > { %2147 = vmatmul.msk.bf16.gmra.mxu2 %vm1687_vm12, %v1657_v20 }
 0x1b9   : > { %v1608_v61 = vsel %vm1581_vm9, %v1575_v8, %v2843_v44  ;;  %v1609_v23 = vsel %vm1581_vm9, %v1576_v56, %v2844_v22  ;;  %v2852_v18 = vpop.permute.xlu0 %2851  ;;  %v2892_v26 = vpop.permute.xlu2 %2891 }
 0x1ba   : > { %v2854_v47 = vunpack.i.h.bf16 %v2852_v18  ;;  %v2853_v53 = vunpack.i.l.bf16 %v2852_v18  ;;  %v2894_v12 = vunpack.i.h.bf16 %v2892_v26  ;;  %v2893_v15 = vunpack.i.l.bf16 %v2892_v26 }
 0x1bc   : > { %v1641_v58 = vsel %vm1614_vm11, %v1608_v61, %v2853_v53  ;;  %v1642_v19 = vsel %vm1614_vm11, %v1609_v23, %v2854_v47 }
 0x1bd   : > { %v1660_v35 = vpack.c.bf16 %v1642_v19, %v1641_v58 }
 0x1be   : > { %v2857_v32 = vpop.permute.xlu1 %2856 }
 0x1bf   : > { %v2859_v33 = vunpack.i.h.bf16 %v2857_v32  ;;  %v2858_v2 = vunpack.i.l.bf16 %v2857_v32  ;;  %2150 = vmatmul.msk.bf16.gmra.mxu3 %vm1687_vm12, %v1660_v35 }
 0x1c1   : > { %v1563_v11 = vsel %vm1548_vm10, %v4067_v5, %v2858_v2  ;;  %v1564_v10 = vsel %vm1548_vm10, %v4070_v41, %v2859_v33  ;;  %v2867_v29 = vpop.permute.xlu0 %2866  ;;  %v2907_v22 = vpop.permute.xlu2 %2906  ;;  %v4413_v2 = vld [vmem:[%s4533_s2] ss:$0 sm:$0xff] }
 0x1c2   : > { %v2869_v62 = vunpack.i.h.bf16 %v2867_v29  ;;  %v2868_v55 = vunpack.i.l.bf16 %v2867_v29  ;;  %v1596_v39 = vsel %vm1581_vm9, %v1563_v11, %v2863_v48  ;;  %v1597_v17 = vsel %vm1581_vm9, %v1564_v10, %v2864_v13 }
 0x1c3   : > { %v2909_v6 = vunpack.i.h.bf16 %v2907_v22  ;;  %v2908_v8 = vunpack.i.l.bf16 %v2907_v22 }
 0x1c4   : > { %v1629_v57 = vsel %vm1614_vm11, %v1596_v39, %v2868_v55  ;;  %v1630_v16 = vsel %vm1614_vm11, %v1597_v17, %v2869_v62 }
 0x1c5   : > { %v1654_v46 = vpack.c.bf16 %v1630_v16, %v1629_v57 }
 0x1c6   : > { %v2872_v21 = vpop.permute.xlu1 %2871 }
 0x1c7   : > { %v2874_v36 = vunpack.i.h.bf16 %v2872_v21  ;;  %v2873_v40 = vunpack.i.l.bf16 %v2872_v21  ;;  %2144 = vmatmul.msk.bf16.gmra.mxu1 %vm1687_vm12, %v1654_v46 }
 0x1c9   : > { %v1571_v5 = vsel %vm1548_vm10, %v4184_v9, %v2873_v40  ;;  %v1572_v41 = vsel %vm1548_vm10, %v4188_v0, %v2874_v36  ;;  %v2882_v50 = vpop.permute.xlu0 %2881  ;;  %v1577_v0 = vsel %vm1548_vm10, %v4208_v63, %v2878_v7 }
 0x1ca   : > { %v2884_v24 = vunpack.i.h.bf16 %v2882_v50  ;;  %v2883_v34 = vunpack.i.l.bf16 %v2882_v50 }
 0x1cc   : > { %v1604_v42 = vsel %vm1581_vm9, %v1571_v5, %v2883_v34  ;;  %v1605_v59 = vsel %vm1581_vm9, %v1572_v41, %v2884_v24 }
 0x1cd   : > { %v1637_v45 = vsel %vm1614_vm11, %v1604_v42, %v2893_v15  ;;  %v1638_v28 = vsel %vm1614_vm11, %v1605_v59, %v2894_v12 }
 0x1ce   : > { %v2887_v52 = vpop.permute.xlu1 %2886  ;;  %v1658_v9 = vpack.c.bf16 %v1638_v28, %v1637_v45 }
 0x1cf   : > { %v2889_v1 = vunpack.i.h.bf16 %v2887_v52  ;;  %v2888_v14 = vunpack.i.l.bf16 %v2887_v52 }
 0x1d0   : > { %2148 = vmatmul.msk.bf16.gmra.mxu2 %vm1687_vm12, %v1658_v9 }
 0x1d1   : > { %v1610_v4 = vsel %vm1581_vm9, %v1577_v0, %v2888_v14  ;;  %v1611_v49 = vsel %vm1581_vm9, %v1578_v51, %v2889_v1  ;;  %v2897_v27 = vpop.permute.xlu0 %2896 }
 0x1d2   : > { %v2899_v31 = vunpack.i.h.bf16 %v2897_v27  ;;  %v2898_v60 = vunpack.i.l.bf16 %v2897_v27 }
 0x1d4   : > { %v1643_v38 = vsel %vm1614_vm11, %v1610_v4, %v2898_v60  ;;  %v1644_v25 = vsel %vm1614_vm11, %v1611_v49, %v2899_v31 }
 0x1d5   : > { %v1661_v37 = vpack.c.bf16 %v1644_v25, %v1643_v38 }
 0x1d6   : > { %v2902_v20 = vpop.permute.xlu1 %2901 }
 0x1d7   : > { %v2904_v63 = vunpack.i.h.bf16 %v2902_v20  ;;  %v2903_v44 = vunpack.i.l.bf16 %v2902_v20  ;;  %2151 = vmatmul.msk.bf16.gmra.mxu3 %vm1687_vm12, %v1661_v37 }
 0x1d9   : > { %v2912_v56 = vpop.permute.xlu0 %2911  ;;  %v1546_v61 = vsel %vm1515_vm7, %v4082_v54, %v2903_v44  ;;  %v1547_v23 = vsel %vm1515_vm7, %v4086_v30, %v2904_v63 }
 0x1da   : > { %v2914_v18 = vunpack.i.h.bf16 %v2912_v56  ;;  %v2913_v47 = vunpack.i.l.bf16 %v2912_v56  ;;  %v1579_v53 = vsel %vm1548_vm10, %v1546_v61, %v2908_v8  ;;  %v1580_v58 = vsel %vm1548_vm10, %v1547_v23, %v2909_v6 }
 0x1dc   : > { %v1612_v48 = vsel %vm1581_vm9, %v1579_v53, %v2913_v47  ;;  %v1613_v3 = vsel %vm1581_vm9, %v1580_v58, %v2914_v18 }
 0x1de   : > { %v2917_v19 = vpop.permute.xlu1 %2916 }
 0x1df   : > { %v2919_v35 = vunpack.i.h.bf16 %v2917_v19  ;;  %v2918_v13 = vunpack.i.l.bf16 %v2917_v19 }
 0x1e1   : > { %v1645_v32 = vsel %vm1614_vm11, %v1612_v48, %v2918_v13  ;;  %v1646_v54 = vsel %vm1614_vm11, %v1613_v3, %v2919_v35 }
 0x1e2   : > { %v1662_v33 = vpack.c.bf16 %v1646_v54, %v1645_v32 }
 0x1e4   : > { %v1749_v30 = vpop.f32.mrf.mxu0 }
 0x1e5   : > { %v1750_v11 = vadd.f32 %v4413_v2, %v1749_v30 }
 0x1e7   : > { %2152 = vmatmul.msk.bf16.gmra.mxu3 %vm1687_vm12, %v1662_v33  ;;  %v1829_v29 = vmax.f32 %v1750_v11, 0.0 }
 0x1e9   : > { %v1899_v39 = vmul.f32 %v1829_v29, %v1829_v29 }
 0x1ec   : > { %v1751_v10 = vpop.f32.mrf.mxu0 }
 0x1ed   : > { %v1752_v62 = vadd.f32 %v4413_v2, %v1751_v10 }
 0x1ef   : > { %v1830_v55 = vmax.f32 %v1752_v62, 0.0 }
 0x1f1   : > { %v1861_v17 = vadd.f32 %v1830_v55, %v1829_v29  ;;  %v1900_v57 = vmul.f32 %v1830_v55, %v1830_v55  ;;  %v2162_v16 = vpack.c.bf16 %v1830_v55, %v1829_v29 }
 0x1f3   : > { %v1931_v46 = vadd.f32 %v1900_v57, %v1899_v39  ;;  %2163 = vst [vmem:[%s4422_s14] sm:$0xff] %v2162_v16  }
 0x1f4   : > { %v1754_v21 = vpop.f32.mrf.mxu0  ;;  %v1769_v26 = vpop.f32.mrf.mxu1 }
 0x1f5   : > { %v1755_v36 = vadd.f32 %v4413_v2, %v1754_v21  ;;  %v1770_v40 = vadd.f32 %v4413_v2, %v1769_v26 }
 0x1f7   : > { %v1831_v15 = vmax.f32 %v1755_v36, 0.0  ;;  %v4431_v43 = vmax.f32 %v1770_v40, 0.0 }
 0x1f9   : > { %v1901_v47 = vmul.f32 %v1831_v15, %v1831_v15  ;;  %v1862_v35 = vadd.f32 %v1861_v17, %v1831_v15 }
 0x1fb   : > { %v1932_v32 = vadd.f32 %v1931_v46, %v1901_v47 }
 0x1fc   : > { %v1756_v5 = vpop.f32.mrf.mxu0  ;;  %v1771_v41 = vpop.f32.mrf.mxu1 }
 0x1fd   : > { %v1757_v50 = vadd.f32 %v4413_v2, %v1756_v5  ;;  %v1772_v12 = vadd.f32 %v4413_v2, %v1771_v41 }
 0x1ff   : > { %v1832_v24 = vmax.f32 %v1757_v50, 0.0  ;;  %v4429_v34 = vmax.f32 %v1772_v12, 0.0 }
 0x201   : > { %v2167_v7 = vpack.c.bf16 %v1832_v24, %v1831_v15  ;;  %v2182_v42 = vpack.c.bf16 %v4429_v34, %v4431_v43  ;;  %v1902_v13 = vmul.f32 %v1832_v24, %v1832_v24  ;;  %v1863_v54 = vadd.f32 %v1862_v35, %v1832_v24 }
 0x202   : > { %v1789_v59 = vpop.f32.mrf.mxu2 }
 0x203   : > { %2239 = vst [vmem:[%s4422_s14 + $0x8] sm:$0xff] %v2167_v7   ;;  %v1790_v28 = vadd.f32 %v4413_v2, %v1789_v59  ;;  %v1933_v29 = vadd.f32 %v1932_v32, %v1902_v13  ;;  %v1907_v59 = vmul.f32 %v4431_v43, %v4431_v43 }
 0x204   : > { %2242 = vst [vmem:[%s4422_s14 + $0x20] sm:$0xff] %v2182_v42  }
 0x205   : > { %v1759_v45 = vpop.f32.mrf.mxu0  ;;  %v4440_v0 = vmax.f32 %v1790_v28, 0.0 }
 0x206   : > { %v1760_v1 = vadd.f32 %v4413_v2, %v1759_v45 }
 0x208   : > { %v1833_v31 = vmax.f32 %v1760_v1, 0.0  ;;  %v1908_v1 = vmul.f32 %v4429_v34, %v4429_v34 }
 0x20a   : > { %v1791_v52 = vpop.f32.mrf.mxu2  ;;  %v1903_v33 = vmul.f32 %v1833_v31, %v1833_v31  ;;  %v1864_v62 = vadd.f32 %v1863_v54, %v1833_v31 }
 0x20b   : > { %v1792_v9 = vadd.f32 %v4413_v2, %v1791_v52 }
 0x20c   : > { %v1774_v14 = vpop.f32.mrf.mxu1  ;;  %v1934_v21 = vadd.f32 %v1933_v29, %v1903_v33 }
 0x20d   : > { %v4442_v51 = vmax.f32 %v1792_v9, 0.0  ;;  %v1761_v4 = vpop.f32.mrf.mxu0  ;;  %v1775_v25 = vadd.f32 %v4413_v2, %v1774_v14 }
 0x20e   : > { %v1762_v49 = vadd.f32 %v4413_v2, %v1761_v4 }
 0x20f   : > { %v2202_v27 = vpack.c.bf16 %v4442_v51, %v4440_v0  ;;  %v1839_v22 = vmax.f32 %v1775_v25, 0.0 }
 0x210   : > { %v1834_v60 = vmax.f32 %v1762_v49, 0.0 }
 0x211   : > { %2246 = vst [vmem:[%s4422_s14 + $0x40] sm:$0xff] %v2202_v27  }
 0x212   : > { %v2172_v38 = vpack.c.bf16 %v1834_v60, %v1833_v31  ;;  %v1904_v55 = vmul.f32 %v1834_v60, %v1834_v60  ;;  %v1865_v26 = vadd.f32 %v1864_v62, %v1834_v60 }
 0x214   : > { %2240 = vst [vmem:[%s4422_s14 + $0x10] sm:$0xff] %v2172_v38   ;;  %v1776_v37 = vpop.f32.mrf.mxu1  ;;  %v1935_v5 = vadd.f32 %v1934_v21, %v1904_v55 }
 0x215   : > { %v1777_v20 = vadd.f32 %v4413_v2, %v1776_v37  ;;  %v1909_v37 = vmul.f32 %v1839_v22, %v1839_v22 }
 0x217   : > { %v4451_v63 = vmax.f32 %v1777_v20, 0.0 }
 0x219   : > { %v2187_v44 = vpack.c.bf16 %v4451_v63, %v1839_v22 }
 0x21b   : > { %2243 = vst [vmem:[%s4422_s14 + $0x28] sm:$0xff] %v2187_v44   ;;  %v1794_v6 = vpop.f32.mrf.mxu2 }
 0x21c   : > { %v1795_v8 = vadd.f32 %v4413_v2, %v1794_v6 }
 0x21e   : > { %v4457_v53 = vmax.f32 %v1795_v8, 0.0 }
 0x222   : > { %v1809_v56 = vpop.f32.mrf.mxu3 }
 0x223   : > { %v1796_v61 = vpop.f32.mrf.mxu2  ;;  %v1810_v3 = vadd.f32 %v4413_v2, %v1809_v56 }
 0x224   : > { %v1797_v23 = vadd.f32 %v4413_v2, %v1796_v61  ;;  %v1910_v61 = vmul.f32 %v4451_v63, %v4451_v63 }
 0x225   : > { %v1764_v18 = vpop.f32.mrf.mxu0  ;;  %v4467_v17 = vmax.f32 %v1810_v3, 0.0 }
 0x226   : > { %v4459_v58 = vmax.f32 %v1797_v23, 0.0  ;;  %v1765_v19 = vadd.f32 %v4413_v2, %v1764_v18 }
 0x228   : > { %v2207_v48 = vpack.c.bf16 %v4459_v58, %v4457_v53  ;;  %v1835_v30 = vmax.f32 %v1765_v19, 0.0 }
 0x22a   : > { %2247 = vst [vmem:[%s4422_s14 + $0x48] sm:$0xff] %v2207_v48   ;;  %v1811_v11 = vpop.f32.mrf.mxu3  ;;  %v1905_v46 = vmul.f32 %v1835_v30, %v1835_v30  ;;  %v1866_v41 = vadd.f32 %v1865_v26, %v1835_v30 }
 0x22b   : > { %v1812_v10 = vadd.f32 %v4413_v2, %v1811_v11 }
 0x22c   : > { %v1779_v39 = vpop.f32.mrf.mxu1  ;;  %v1936_v12 = vadd.f32 %v1935_v5, %v1905_v46 }
 0x22d   : > { %v4469_v57 = vmax.f32 %v1812_v10, 0.0  ;;  %v1766_v16 = vpop.f32.mrf.mxu0  ;;  %v1780_v42 = vadd.f32 %v4413_v2, %v1779_v39 }
 0x22e   : > { %v1767_v36 = vadd.f32 %v4413_v2, %v1766_v16 }
 0x22f   : > { %v2222_v40 = vpack.c.bf16 %v4469_v57, %v4467_v17  ;;  %v1841_v49 = vmax.f32 %v1780_v42, 0.0 }
 0x230   : > { %v1836_v50 = vmax.f32 %v1767_v36, 0.0 }
 0x231   : > { %2250 = vst [vmem:[%s4422_s14 + $0x60] sm:$0xff] %v2222_v40   ;;  %v1911_v13 = vmul.f32 %v1841_v49, %v1841_v49 }
 0x232   : > { %v1867_v15 = vadd.f32 %v1866_v41, %v1836_v50  ;;  %v1906_v24 = vmul.f32 %v1836_v50, %v1836_v50  ;;  %v2177_v7 = vpack.c.bf16 %v1836_v50, %v1835_v30  ;;  %v1915_v41 = vmul.f32 %v4440_v0, %v4440_v0 }
 0x234   : > { %v1868_v45 = vadd.f32 %v1867_v15, %v4431_v43  ;;  %v1937_v28 = vadd.f32 %v1936_v12, %v1906_v24  ;;  %2241 = vst [vmem:[%s4422_s14 + $0x18] sm:$0xff] %v2177_v7   ;;  %v1781_v52 = vpop.f32.mrf.mxu1  ;;  %v1916_v24 = vmul.f32 %v4442_v51, %v4442_v51 }
 0x235   : > { %v1782_v9 = vadd.f32 %v4413_v2, %v1781_v52 }
 0x236   : > { %v1869_v14 = vadd.f32 %v1868_v45, %v4429_v34  ;;  %v1938_v4 = vadd.f32 %v1937_v28, %v1907_v59  ;;  %v1917_v59 = vmul.f32 %v4457_v53, %v4457_v53 }
 0x237   : > { %v1842_v27 = vmax.f32 %v1782_v9, 0.0 }
 0x238   : > { %v1939_v31 = vadd.f32 %v1938_v4, %v1908_v1  ;;  %v1870_v25 = vadd.f32 %v1869_v14, %v1839_v22 }
 0x239   : > { %v2192_v60 = vpack.c.bf16 %v1842_v27, %v1841_v49  ;;  %v1912_v11 = vmul.f32 %v1842_v27, %v1842_v27 }
 0x23a   : > { %v1940_v44 = vadd.f32 %v1939_v31, %v1909_v37  ;;  %v1871_v8 = vadd.f32 %v1870_v25, %v4451_v63 }
 0x23b   : > { %2244 = vst [vmem:[%s4422_s14 + $0x30] sm:$0xff] %v2192_v60   ;;  %v1799_v38 = vpop.f32.mrf.mxu2 }
 0x23c   : > { %v1800_v43 = vadd.f32 %v4413_v2, %v1799_v38  ;;  %v1941_v19 = vadd.f32 %v1940_v44, %v1910_v61  ;;  %v1872_v22 = vadd.f32 %v1871_v8, %v1841_v49 }
 0x23e   : > { %v1849_v18 = vmax.f32 %v1800_v43, 0.0  ;;  %v1942_v54 = vadd.f32 %v1941_v19, %v1911_v13  ;;  %v1873_v30 = vadd.f32 %v1872_v22, %v1842_v27  ;;  %v1924_v22 = vmul.f32 %v4469_v57, %v4469_v57 }
 0x240   : > { %v1943_v39 = vadd.f32 %v1942_v54, %v1912_v11  ;;  %v1919_v4 = vmul.f32 %v1849_v18, %v1849_v18 }
 0x242   : > { %v1814_v20 = vpop.f32.mrf.mxu3 }
 0x243   : > { %v1801_v6 = vpop.f32.mrf.mxu2  ;;  %v1815_v48 = vadd.f32 %v4413_v2, %v1814_v20 }
 0x244   : > { %v1802_v56 = vadd.f32 %v4413_v2, %v1801_v6  ;;  %v1784_v34 = vpop.f32.mrf.mxu1 }
 0x245   : > { %v1785_v23 = vadd.f32 %v4413_v2, %v1784_v34  ;;  %v1855_v10 = vmax.f32 %v1815_v48, 0.0 }
 0x246   : > { %v1850_v47 = vmax.f32 %v1802_v56, 0.0 }
 0x247   : > { %v1843_v3 = vmax.f32 %v1785_v23, 0.0  ;;  %v1923_v23 = vmul.f32 %v4467_v17, %v4467_v17 }
 0x248   : > { %v2212_v35 = vpack.c.bf16 %v1850_v47, %v1849_v18  ;;  %v1920_v38 = vmul.f32 %v1850_v47, %v1850_v47 }
 0x249   : > { %v1913_v29 = vmul.f32 %v1843_v3, %v1843_v3  ;;  %v1874_v16 = vadd.f32 %v1873_v30, %v1843_v3 }
 0x24a   : > { %2248 = vst [vmem:[%s4422_s14 + $0x50] sm:$0xff] %v2212_v35   ;;  %v1816_v32 = vpop.f32.mrf.mxu3 }
 0x24b   : > { %v1817_v33 = vadd.f32 %v4413_v2, %v1816_v32  ;;  %v1944_v46 = vadd.f32 %v1943_v39, %v1913_v29  ;;  %v1925_v32 = vmul.f32 %v1855_v10, %v1855_v10 }
 0x24c   : > { %v1786_v63 = vpop.f32.mrf.mxu1 }
 0x24d   : > { %v1856_v62 = vmax.f32 %v1817_v33, 0.0  ;;  %v1787_v55 = vadd.f32 %v4413_v2, %v1786_v63 }
 0x24f   : > { %v2227_v21 = vpack.c.bf16 %v1856_v62, %v1855_v10  ;;  %v1844_v26 = vmax.f32 %v1787_v55, 0.0  ;;  %v1926_v11 = vmul.f32 %v1856_v62, %v1856_v62 }
 0x251   : > { %2251 = vst [vmem:[%s4422_s14 + $0x68] sm:$0xff] %v2227_v21   ;;  %v1875_v36 = vadd.f32 %v1874_v16, %v1844_v26  ;;  %v1914_v40 = vmul.f32 %v1844_v26, %v1844_v26  ;;  %v2197_v5 = vpack.c.bf16 %v1844_v26, %v1843_v3 }
 0x253   : > { %v1876_v50 = vadd.f32 %v1875_v36, %v4440_v0  ;;  %v1945_v12 = vadd.f32 %v1944_v46, %v1914_v40  ;;  %2245 = vst [vmem:[%s4422_s14 + $0x38] sm:$0xff] %v2197_v5   ;;  %v1804_v15 = vpop.f32.mrf.mxu2  ;;  %v1918_v0 = vmul.f32 %v4459_v58, %v4459_v58 }
 0x254   : > { %v1805_v52 = vadd.f32 %v4413_v2, %v1804_v15 }
 0x255   : > { %v1877_v7 = vadd.f32 %v1876_v50, %v4442_v51  ;;  %v1946_v42 = vadd.f32 %v1945_v12, %v1915_v41 }
 0x256   : > { %v1851_v49 = vmax.f32 %v1805_v52, 0.0 }
 0x257   : > { %v1878_v45 = vadd.f32 %v1877_v7, %v4457_v53  ;;  %v1947_v28 = vadd.f32 %v1946_v42, %v1916_v24 }
 0x258   : > { %v1921_v20 = vmul.f32 %v1851_v49, %v1851_v49 }
 0x259   : > { %v1948_v9 = vadd.f32 %v1947_v28, %v1917_v59  ;;  %v1879_v1 = vadd.f32 %v1878_v45, %v4459_v58 }
 0x25a   : > { %v1819_v14 = vpop.f32.mrf.mxu3 }
 0x25b   : > { %v1880_v27 = vadd.f32 %v1879_v1, %v1849_v18  ;;  %v1949_v51 = vadd.f32 %v1948_v9, %v1918_v0  ;;  %v1806_v31 = vpop.f32.mrf.mxu2  ;;  %v1820_v58 = vadd.f32 %v4413_v2, %v1819_v14 }
 0x25c   : > { %v1807_v60 = vadd.f32 %v4413_v2, %v1806_v31 }
 0x25d   : > { %v1881_v53 = vadd.f32 %v1880_v27, %v1850_v47  ;;  %v1950_v25 = vadd.f32 %v1949_v51, %v1919_v4  ;;  %v1857_v35 = vmax.f32 %v1820_v58, 0.0 }
 0x25e   : > { %v1852_v37 = vmax.f32 %v1807_v60, 0.0 }
 0x25f   : > { %v1882_v43 = vadd.f32 %v1881_v53, %v1851_v49  ;;  %v1951_v44 = vadd.f32 %v1950_v25, %v1920_v38  ;;  %v1927_v16 = vmul.f32 %v1857_v35, %v1857_v35 }
 0x260   : > { %v1922_v6 = vmul.f32 %v1852_v37, %v1852_v37  ;;  %v2217_v8 = vpack.c.bf16 %v1852_v37, %v1851_v49 }
 0x261   : > { %v1952_v56 = vadd.f32 %v1951_v44, %v1921_v20  ;;  %v1883_v34 = vadd.f32 %v1882_v43, %v1852_v37 }
 0x262   : > { %2249 = vst [vmem:[%s4422_s14 + $0x58] sm:$0xff] %v2217_v8   ;;  %v1821_v61 = vpop.f32.mrf.mxu3 }
 0x263   : > { %v1884_v18 = vadd.f32 %v1883_v34, %v4467_v17  ;;  %v1953_v47 = vadd.f32 %v1952_v56, %v1922_v6  ;;  %v1822_v19 = vadd.f32 %v4413_v2, %v1821_v61 }
 0x265   : > { %v1885_v13 = vadd.f32 %v1884_v18, %v4469_v57  ;;  %v1954_v48 = vadd.f32 %v1953_v47, %v1923_v23  ;;  %v1858_v3 = vmax.f32 %v1822_v19, 0.0 }
 0x267   : > { %v1955_v54 = vadd.f32 %v1954_v48, %v1924_v22  ;;  %v1886_v33 = vadd.f32 %v1885_v13, %v1855_v10  ;;  %v2232_v30 = vpack.c.bf16 %v1858_v3, %v1857_v35  ;;  %v1928_v36 = vmul.f32 %v1858_v3, %v1858_v3 }
 0x269   : > { %v1887_v63 = vadd.f32 %v1886_v33, %v1856_v62  ;;  %v1956_v29 = vadd.f32 %v1955_v54, %v1925_v32  ;;  %2252 = vst [vmem:[%s4422_s14 + $0x70] sm:$0xff] %v2232_v30  }
 0x26a   : > { %v1824_v17 = vpop.f32.mrf.mxu3 }
 0x26b   : > { %v1957_v55 = vadd.f32 %v1956_v29, %v1926_v11  ;;  %v1825_v39 = vadd.f32 %v4413_v2, %v1824_v17  ;;  %v1888_v21 = vadd.f32 %v1887_v63, %v1857_v35 }
 0x26d   : > { %v1958_v26 = vadd.f32 %v1957_v55, %v1927_v16  ;;  %v1859_v46 = vmax.f32 %v1825_v39, 0.0  ;;  %v1889_v57 = vadd.f32 %v1888_v21, %v1858_v3 }
 0x26f   : > { %v1959_v5 = vadd.f32 %v1958_v26, %v1928_v36  ;;  %v1929_v10 = vmul.f32 %v1859_v46, %v1859_v46  ;;  %v1890_v62 = vadd.f32 %v1889_v57, %v1859_v46 }
 0x271   : > { %v1960_v12 = vadd.f32 %v1959_v5, %v1929_v10 }
 0x272   : > { %v1826_v40 = vpop.f32.mrf.mxu3 }
 0x273   : > { %v1827_v41 = vadd.f32 %v4413_v2, %v1826_v40 }
 0x275   : > { %v1860_v50 = vmax.f32 %v1827_v41, 0.0 }
 0x277   : > { %v1891_v15 = vadd.f32 %v1890_v62, %v1860_v50  ;;  %v1930_v24 = vmul.f32 %v1860_v50, %v1860_v50  ;;  %v2237_v7 = vpack.c.bf16 %v1860_v50, %v1859_v46 }
 0x279   : > { %v1892_v42 = vrot.slane %v1891_v15, 4  ;;  %v1961_v59 = vadd.f32 %v1960_v12, %v1930_v24  ;;  %2253 = vst [vmem:[%s4422_s14 + $0x78] sm:$0xff] %v2237_v7  }
 0x27b   : > { %v1893_v45 = vadd.f32 %v1892_v42, %v1891_v15  ;;  %v1962_v28 = vrot.slane %v1961_v59, 4 }
 0x27d   : > { %v1894_v52 = vrot.slane %v1893_v45, 2  ;;  %v1963_v0 = vadd.f32 %v1962_v28, %v1961_v59 }
 0x27f   : > { %v1895_v9 = vadd.f32 %v1894_v52, %v1893_v45  ;;  %v1964_v1 = vrot.slane %v1963_v0, 2 }
 0x281   : > { %v1896_v14 = vrot.slane %v1895_v9, 1  ;;  %v1965_v4 = vadd.f32 %v1964_v1, %v1963_v0 }
 0x283   : > { %v1897_v2 = vadd.f32 %v1896_v14, %v1895_v9  ;;  %v1966_v49 = vrot.slane %v1965_v4, 1 }
 0x285   : > { %1898 = vst [vmem:[%s208_s20] sm:$0x1] %v1897_v2  ;;  %v1967_v27 = vadd.f32 %v1966_v49, %v1965_v4 }
 0x287   : > { %1968 = vst [vmem:[%s208_s20 + $0x1] sm:$0x1] %v1967_v27 }
 0x288 PF: > { %s15_s15 = sadd.s32 1, %s2927_s15  }
 0x289   : > { %p12_p4 = scmp.ge.s32.totalorder %s15_s15, 4  }
 0x28b   :  { %14 = sbr.rel (!%p12_p4) target bundleno = 1 (0x1), region = 74 }

// kernel: block_forward.3
= control target key start
LH: loop header
LB: loop body
LE: loop exit
PB: predicated region body
PF: predicated region fallthrough
CT: control target
= control target key end

     0   :  { %s3077_s18 = smov 0   ;;  %s4422_s0 = inlined_call_operand.vmem [shape: bf16[2,256,128], index: 0, kind: input, shape index: {}]   ;;  %s4423_s1 = inlined_call_operand.vmem [shape: f32[1,128], index: 1, kind: input, shape index: {}]   ;;  %s4424_s2 = inlined_call_operand.vmem [shape: f32[1,128], index: 2, kind: input, shape index: {}]   ;;  %s4425_s3 = inlined_call_operand.vmem [shape: bf16[1152,128], index: 3, kind: input, shape index: {}]   ;;  %s4426_s4 = inlined_call_operand.vmem [shape: f32[1,128], index: 4, kind: input, shape index: {}]   ;;  %s4427_s5 = inlined_call_operand.vmem [shape: f32[2,256,128], index: 5, kind: output, shape index: {}]  }
   0x1 LB: > { %s2354_s19 = sadd.s32 4294967295, %s3043_s18   ;;  %p2358_p0 = scmp.ge.s32.totalorder %s3043_s18, 1  ;;  %s3043_s18 = sphi %s3077_s18, %s15_s18  }
   0x2   : > { %p187_p1 = scmp.lt.s32.totalorder %s3043_s18, 3 }
   0x4   : > { %p188_p2 = pnand %p2358_p0, %p187_p1 }
   0x6   : > { %191 = sbr.rel (%p188_p2) target bundleno = 752 (0x2f0), region = 40 }
   0xb   : > { %v2854_v0 = vld [vmem:[%s4425_s3 + $0x38] sm:$0xff]  ;;  %p215_p3 = scmp.lt.s32.totalorder %s2354_s19, 1  ;;  %v2853_v1 = vld [vmem:[%s4425_s3 + $0x30] sm:$0xff]  ;;  %v2852_v2 = vld [vmem:[%s4425_s3 + $0x28] sm:$0xff]  ;;  %vm394_vm0 = vcmask 1040384   ;;  %v3045_v39 = vmov 0.0  }
   0xc   : > { %2998 = vmatpush.bf16.msra.mxu1 %v2854_v0  ;;  %2999 = vmatpush.bf16.msra.mxu2 %v2854_v0  ;;  %v3108_v7 = vld [vmem:[%s4423_s1] ss:$0 sm:$0xff]  ;;  %v2850_v16 = vld [vmem:[%s4425_s3 + $0x18] sm:$0xff]  ;;  %v2849_v23 = vld [vmem:[%s4425_s3 + $0x10] sm:$0xff]  ;;  %v3157_v40 = vrot.slane %v3045_v39, 7  ;;  %vm3046_vm2 = vmmov 1  }
   0xd   : > { %s4613_s19 = smov (!%p215_p3, %s2354_s19), 1  ;;  %3000 = vmatpush.bf16.msra.mxu3 %v2854_v0  ;;  %1434 = vmatpush.bf16.msra.mxu0 %v2854_v0  ;;  %v2851_v8 = vld [vmem:[%s4425_s3 + $0x20] sm:$0xff]  ;;  %v2848_v30 = vld [vmem:[%s4425_s3 + $0x8] sm:$0xff]  ;;  %vm3176_vm1 = vmneg %vm394_vm0  ;;  %vm561_vm4 = vcmask 1046528   ;;  %vm674_vm5 = vcmask 1045504  }
   0xe   : > { %s2845_s24 = sshll.u32 %s4613_s19, 7  ;;  %v3117_v15 = vld [vmem:[%s4424_s2] ss:$0 sm:$0xff]  ;;  %v2870_v55 = vld [vmem:[%s4425_s3 + $0xb8] sm:$0xff]  ;;  %v3191_v56 = vpack.c.bf16 %v3157_v40, %v3157_v40  ;;  %vm3209_vm3 = vmpackc.low %vm3046_vm2, %vm3176_vm1  ;;  %s2846_s22 = sshll.u32 %s4613_s19, 8 }
   0xf   : > { %s3097_s27 = scalar_lea.vmem %s4422_s0, %s2845_s24  ;;  %v2847_v45 = vld [vmem:[%s4425_s3] sm:$0xff]  ;;  %v2878_v57 = vld [vmem:[%s4425_s3 + $0xf8] sm:$0xff]  ;;  %s4309_s25 = scalar_lea.vmem %s4427_s5, %s2846_s22 }
  0x10   : > { %3001 = vmatpush.bf16.msra.mxu1 %v2853_v1  ;;  %3002 = vmatpush.bf16.msra.mxu2 %v2853_v1  ;;  %v2985_v3 = vld [vmem:[%s3097_s27 + $0x18] sm:$0xff]   ;;  %v2986_v29 = vld [vmem:[%s3097_s27 + $0x20] sm:$0xff]   ;;  %4493 = vst [vmem:[#allocation4_spill] sm:$0xff] %v3191_v56  ;;  %v2991_v39 = vld [vmem:[%s3097_s27 + $0x48] sm:$0xff]  }
  0x11   : > { %3003 = vmatpush.bf16.msra.mxu3 %v2853_v1  ;;  %1435 = vmatpush.bf16.msra.mxu0 %v2853_v1  ;;  %v2989_v4 = vld [vmem:[%s3097_s27 + $0x38] sm:$0xff]   ;;  %v2933_v6 = vunpack.c.l.bf16 %v2985_v3  ;;  %v2934_v9 = vunpack.c.h.bf16 %v2985_v3  ;;  %v2990_v35 = vld [vmem:[%s3097_s27 + $0x40] sm:$0xff]   ;;  %v2937_v41 = vunpack.c.l.bf16 %v2986_v29  ;;  %v2938_v43 = vunpack.c.h.bf16 %v2986_v29  ;;  %v2987_v29 = vld [vmem:[%s3097_s27 + $0x28] sm:$0xff]  }
  0x12   : > { %v2993_v5 = vld [vmem:[%s3097_s27 + $0x58] sm:$0xff]   ;;  %v2949_v10 = vunpack.c.l.bf16 %v2989_v4  ;;  %v2950_v11 = vunpack.c.h.bf16 %v2989_v4  ;;  %v2994_v38 = vld [vmem:[%s3097_s27 + $0x60] sm:$0xff]   ;;  %v2953_v44 = vunpack.c.l.bf16 %v2990_v35  ;;  %v2954_v48 = vunpack.c.h.bf16 %v2990_v35 }
  0x13   : > { %v2965_v12 = vunpack.c.l.bf16 %v2993_v5  ;;  %v2966_v13 = vunpack.c.h.bf16 %v2993_v5  ;;  %v299_v14 = vmul.f32 %v3108_v7, %v2933_v6  ;;  %v300_v17 = vmul.f32 %v3108_v7, %v2934_v9  ;;  %v2920_v42 = vld [vmem:[%s3097_s27] sm:$0xff]   ;;  %v2862_v3 = vld [vmem:[%s4425_s3 + $0x78] sm:$0xff]  ;;  %v2869_v9 = vld [vmem:[%s4425_s3 + $0xb0] sm:$0xff] }
  0x14   : > { %3004 = vmatpush.bf16.msra.mxu1 %v2852_v2  ;;  %3005 = vmatpush.bf16.msra.mxu2 %v2852_v2  ;;  %v307_v18 = vmul.f32 %v3108_v7, %v2949_v10  ;;  %v308_v19 = vmul.f32 %v3108_v7, %v2950_v11  ;;  %v2969_v49 = vunpack.c.l.bf16 %v2994_v38  ;;  %v2970_v52 = vunpack.c.h.bf16 %v2994_v38  ;;  %v2886_v4 = vld [vmem:[%s4425_s3 + $0x138] sm:$0xff]  ;;  %v2877_v10 = vld [vmem:[%s4425_s3 + $0xf0] sm:$0xff]  ;;  %v2860_v38 = vld [vmem:[%s4425_s3 + $0x68] sm:$0xff] }
  0x15   : > { %3006 = vmatpush.bf16.msra.mxu3 %v2852_v2  ;;  %1436 = vmatpush.bf16.msra.mxu0 %v2852_v2  ;;  %v315_v20 = vmul.f32 %v3108_v7, %v2965_v12  ;;  %v316_v21 = vmul.f32 %v3108_v7, %v2966_v13  ;;  %v335_v22 = vadd.f32 %v3117_v15, %v299_v14  ;;  %v2921_v53 = vunpack.c.l.bf16 %v2920_v42  ;;  %v2875_v50 = vld [vmem:[%s4425_s3 + $0xe0] sm:$0xff] }
  0x16   : > { %v3132_v24 = vadd.f32 %v3117_v15, %v300_v17  ;;  %v343_v25 = vadd.f32 %v3117_v15, %v307_v18  ;;  %v3136_v26 = vadd.f32 %v3117_v15, %v308_v19  ;;  %v2922_v54 = vunpack.c.h.bf16 %v2920_v42  ;;  %v2861_v17 = vld [vmem:[%s4425_s3 + $0x70] sm:$0xff] }
  0x17   : > { %v351_v27 = vadd.f32 %v3117_v15, %v315_v20  ;;  %v3140_v28 = vadd.f32 %v3117_v15, %v316_v21  ;;  %v3146_v31 = vrot.slane %v335_v22, 7  ;;  %v301_v58 = vmul.f32 %v3108_v7, %v2937_v41  ;;  %v2885_v21 = vld [vmem:[%s4425_s3 + $0x130] sm:$0xff]  ;;  %v2868_v22 = vld [vmem:[%s4425_s3 + $0xa8] sm:$0xff] }
  0x18   : > { %3007 = vmatpush.bf16.msra.mxu1 %v2851_v8  ;;  %3008 = vmatpush.bf16.msra.mxu2 %v2851_v8  ;;  %v4435_v32 = vrot.slane %v3132_v24, 7  ;;  %v3149_v33 = vrot.slane %v343_v25, 7  ;;  %v4431_v34 = vrot.slane %v3136_v26, 7  ;;  %v302_v61 = vmul.f32 %v3108_v7, %v2938_v43 }
  0x19   : > { %3009 = vmatpush.bf16.msra.mxu3 %v2851_v8  ;;  %1437 = vmatpush.bf16.msra.mxu0 %v2851_v8  ;;  %4489 = vst [vmem:[#allocation2_spill] sm:$0xff] %v3140_v28  ;;  %v3153_v36 = vrot.slane %v351_v27, 7  ;;  %v4429_v37 = vrot.slane %v3140_v28, 7  ;;  %v309_v62 = vmul.f32 %v3108_v7, %v2953_v44  ;;  %v310_v1 = vmul.f32 %v3108_v7, %v2954_v48  ;;  %v2995_v48 = vld [vmem:[%s3097_s27 + $0x68] sm:$0xff]  }
  0x1a   : > { %v3167_v46 = vsel %vm394_vm0, %v3146_v31, %v4435_v32  ;;  %v3173_v47 = vsel %vm394_vm0, %v3149_v33, %v4431_v34  ;;  %v317_v2 = vmul.f32 %v3108_v7, %v2969_v49  ;;  %v318_v5 = vmul.f32 %v3108_v7, %v2970_v52  ;;  %v2867_v49 = vld [vmem:[%s4425_s3 + $0xa0] sm:$0xff] }
  0x1b   : > { %v3184_v51 = vsel %vm394_vm0, %v3153_v36, %v4429_v37  ;;  %v3199_v59 = vpack.c.bf16 %v3167_v46, %v3146_v31  ;;  %v3203_v60 = vpack.c.bf16 %v3173_v47, %v3149_v33  ;;  %v293_v6 = vmul.f32 %v3108_v7, %v2921_v53  ;;  %v2983_v53 = vld [vmem:[%s3097_s27 + $0x8] sm:$0xff]  }
  0x1c   : > { %3010 = vmatpush.bf16.msra.mxu1 %v2850_v16  ;;  %3011 = vmatpush.bf16.msra.mxu2 %v2850_v16  ;;  %4492 = vst [vmem:[#allocation3_spill] sm:$0xff] %v3184_v51  ;;  %v3215_v0 = vpack.c.bf16 %v3184_v51, %v3153_v36  ;;  %v294_v8 = vmul.f32 %v3108_v7, %v2922_v54  ;;  %v2941_v52 = vunpack.c.l.bf16 %v2987_v29 }
  0x1d   : > { %3012 = vmatpush.bf16.msra.mxu3 %v2850_v16  ;;  %1438 = vmatpush.bf16.msra.mxu0 %v2850_v16  ;;  %4494 = vst [vmem:[#allocation5_spill] sm:$0xff] %v3203_v60  ;;  %v337_v11 = vadd.f32 %v3117_v15, %v301_v58  ;;  %v3242_v12 = vadd.f32 %v3117_v15, %v302_v61  ;;  %v2958_v58 = vunpack.c.h.bf16 %v2991_v39 }
  0x1e   : > { %4497 = vst [vmem:[#allocation6_spill] sm:$0xff] %v3215_v0  ;;  %v345_v13 = vadd.f32 %v3117_v15, %v309_v62  ;;  %v3252_v14 = vadd.f32 %v3117_v15, %v310_v1  ;;  %v353_v16 = vadd.f32 %v3117_v15, %v317_v2  ;;  %v3259_v18 = vadd.f32 %v3117_v15, %v318_v5 }
  0x1f   : > { %v329_v19 = vadd.f32 %v3117_v15, %v293_v6  ;;  %v3263_v20 = vadd.f32 %v3117_v15, %v294_v8  ;;  %v3274_v25 = vrot.slane %v337_v11, 7  ;;  %v4433_v27 = vrot.slane %v3242_v12, 7  ;;  %v2883_v8 = vld [vmem:[%s4425_s3 + $0x120] sm:$0xff]  ;;  %v2866_v11 = vld [vmem:[%s4425_s3 + $0x98] sm:$0xff] }
  0x20   : > { %3013 = vmatpush.bf16.msra.mxu1 %v2849_v23  ;;  %3014 = vmatpush.bf16.msra.mxu2 %v2849_v23  ;;  %4498 = vst [vmem:[#allocation7_spill] sm:$0xff] %v3259_v18  ;;  %v4430_v35 = vrot.slane %v3252_v14, 7  ;;  %v3285_v41 = vrot.slane %v353_v16, 7  ;;  %v4428_v42 = vrot.slane %v3259_v18, 7  ;;  %v2973_v62 = vunpack.c.l.bf16 %v2995_v48 }
  0x21   : > { %3015 = vmatpush.bf16.msra.mxu3 %v2849_v23  ;;  %1439 = vmatpush.bf16.msra.mxu0 %v2849_v23  ;;  %v2876_v23 = vld [vmem:[%s4425_s3 + $0xe8] sm:$0xff]  ;;  %v3288_v43 = vrot.slane %v329_v19, 7  ;;  %v4438_v44 = vrot.slane %v3263_v20, 7  ;;  %v3306_v54 = vsel %vm394_vm0, %v3274_v25, %v4433_v27  ;;  %v2974_v1 = vunpack.c.h.bf16 %v2995_v48  ;;  %v2858_v48 = vld [vmem:[%s4425_s3 + $0x58] sm:$0xff] }
  0x22   : > { %4499 = vst [vmem:[#allocation8_spill] sm:$0xff] %v3285_v41  ;;  %v3318_v2 = vsel %vm394_vm0, %v3285_v41, %v4428_v42  ;;  %v2925_v5 = vunpack.c.l.bf16 %v2983_v53  ;;  %v2926_v6 = vunpack.c.h.bf16 %v2983_v53  ;;  %v2873_v53 = vld [vmem:[%s4425_s3 + $0xd0] sm:$0xff] }
  0x23   : > { %4500 = vst [vmem:[#allocation9_spill] sm:$0xff] %v3318_v2 }
  0x24   : > { %3016 = vmatpush.bf16.msra.mxu1 %v2848_v30  ;;  %3017 = vmatpush.bf16.msra.mxu2 %v2848_v30 }
  0x25   : > { %3018 = vmatpush.bf16.msra.mxu3 %v2848_v30  ;;  %1440 = vmatpush.bf16.msra.mxu0 %v2848_v30  ;;  %v3278_v30 = vrot.slane %v345_v13, 7  ;;  %v2874_v13 = vld [vmem:[%s4425_s3 + $0xd8] sm:$0xff] }
  0x27   : > { %v3312_v61 = vsel %vm394_vm0, %v3278_v30, %v4430_v35 }
  0x28   : > { %3019 = vmatpush.bf16.msra.mxu1 %v2847_v45  ;;  %3020 = vmatpush.bf16.msra.mxu2 %v2847_v45  ;;  %v3345_v16 = vpack.c.bf16 %v3312_v61, %v3278_v30 }
  0x29   : > { %3021 = vmatpush.bf16.msra.mxu3 %v2847_v45  ;;  %1441 = vmatpush.bf16.msra.mxu0 %v2847_v45  ;;  %v2884_v45 = vld [vmem:[%s4425_s3 + $0x128] sm:$0xff] }
  0x2a   : > { %4502 = vst [vmem:[#allocation11_spill] sm:$0xff] %v3345_v16 }
  0x2b   : > { %2670 = vmatmul.msk.bf16.vlgmr.msra.gmra.mxu1 %vm3209_vm3, %v3199_v59  ;;  %2686 = vmatmul.msk.bf16.vlgmr.msra.gmra.mxu2 %vm3209_vm3, %v3203_v60 }
  0x2c   : > { %1612 = vmatpush.bf16.msrb.mxu2 %v2870_v55  ;;  %2702 = vmatmul.msk.bf16.vlgmr.msra.gmra.mxu3 %vm3209_vm3, %v3215_v0  ;;  %v2942_v55 = vunpack.c.h.bf16 %v2987_v29  ;;  %v319_v29 = vmul.f32 %v3108_v7, %v2973_v62 }
  0x2d   : > { %1701 = vmatpush.bf16.msrb.mxu3 %v2878_v57  ;;  %2654 = vmatmul.msk.bf16.vlgmr.msra.gmra.mxu0 %vm3209_vm3, %v3191_v56  ;;  %v2957_v57 = vunpack.c.l.bf16 %v2991_v39  ;;  %v295_v39 = vmul.f32 %v3108_v7, %v2925_v5 }
  0x2e   : > { %1523 = vmatpush.bf16.msrb.mxu1 %v2862_v3  ;;  %1790 = vmatpush.bf16.msrb.mxu0 %v2886_v4  ;;  %v3324_v3 = vsel %vm394_vm0, %v3288_v43, %v4438_v44  ;;  %v2859_v4 = vld [vmem:[%s4425_s3 + $0x60] sm:$0xff]  ;;  %v355_v62 = vadd.f32 %v3117_v15, %v319_v29 }
  0x2f   : > { %v311_v19 = vmul.f32 %v3108_v7, %v2957_v57 }
  0x30   : > { %1613 = vmatpush.bf16.msrb.mxu2 %v2869_v9  ;;  %v3334_v9 = vpack.c.bf16 %v3306_v54, %v3274_v25  ;;  %v3420_v29 = vrot.slane %v355_v62, 7  ;;  %v2863_v62 = vld [vmem:[%s4425_s3 + $0x80] sm:$0xff] }
  0x31   : > { %1702 = vmatpush.bf16.msrb.mxu3 %v2877_v10  ;;  %v303_v10 = vmul.f32 %v3108_v7, %v2941_v52  ;;  %v2865_v52 = vld [vmem:[%s4425_s3 + $0x90] sm:$0xff]  ;;  %v347_v57 = vadd.f32 %v3117_v15, %v311_v19 }
  0x32   : > { %1524 = vmatpush.bf16.msrb.mxu1 %v2861_v17  ;;  %1791 = vmatpush.bf16.msrb.mxu0 %v2885_v21  ;;  %4501 = vst [vmem:[#allocation10_spill] sm:$0xff] %v3334_v9  ;;  %v304_v17 = vmul.f32 %v3108_v7, %v2942_v55  ;;  %v312_v21 = vmul.f32 %v3108_v7, %v2958_v58 }
  0x33   : > { %v3417_v19 = vrot.slane %v347_v57, 7  ;;  %4505 = vst [vmem:[#allocation14_spill] sm:$0xff] %v3420_v29  ;;  %v2984_v57 = vld [vmem:[%s3097_s27 + $0x10] sm:$0xff]  }
  0x34   : > { %1614 = vmatpush.bf16.msrb.mxu2 %v2868_v22  ;;  %v3352_v22 = vpack.c.bf16 %v3318_v2, %v3285_v41  ;;  %v3382_v55 = vadd.f32 %v3117_v15, %v304_v17  ;;  %v3386_v58 = vadd.f32 %v3117_v15, %v312_v21  ;;  %v2930_v32 = vunpack.c.h.bf16 %v2984_v57 }
  0x35   : > { %1703 = vmatpush.bf16.msrb.mxu3 %v2876_v23  ;;  %v3356_v23 = vpack.c.bf16 %v3324_v3, %v3288_v43 }
  0x36   : > { %1525 = vmatpush.bf16.msrb.mxu1 %v2860_v38  ;;  %1792 = vmatpush.bf16.msrb.mxu0 %v2884_v45  ;;  %4503 = vst [vmem:[#allocation12_spill] sm:$0xff] %v3352_v22  ;;  %v320_v38 = vmul.f32 %v3108_v7, %v2974_v1  ;;  %v296_v45 = vmul.f32 %v3108_v7, %v2926_v6  ;;  %v2857_v6 = vld [vmem:[%s4425_s3 + $0x50] sm:$0xff]  ;;  %v4432_v17 = vrot.slane %v3382_v55, 7  ;;  %v4434_v21 = vrot.slane %v3386_v58, 7 }
  0x38   : > { %1615 = vmatpush.bf16.msrb.mxu2 %v2867_v49  ;;  %v2882_v49 = vld [vmem:[%s4425_s3 + $0x118] sm:$0xff]  ;;  %v3396_v1 = vadd.f32 %v3117_v15, %v320_v38  ;;  %v3400_v5 = vadd.f32 %v3117_v15, %v296_v45  ;;  %v2992_v45 = vld [vmem:[%s3097_s27 + $0x50] sm:$0xff]  }
  0x39   : > { %1704 = vmatpush.bf16.msrb.mxu3 %v2875_v50  ;;  %v339_v50 = vadd.f32 %v3117_v15, %v303_v10  ;;  %v2864_v10 = vld [vmem:[%s4425_s3 + $0x88] sm:$0xff]  ;;  %v2961_v37 = vunpack.c.l.bf16 %v2992_v45  ;;  %v2962_v35 = vunpack.c.h.bf16 %v2992_v45  ;;  %v2879_v45 = vld [vmem:[%s4425_s3 + $0x100] sm:$0xff] }
  0x3a   : > { %1526 = vmatpush.bf16.msrb.mxu1 %v2859_v4  ;;  %1793 = vmatpush.bf16.msrb.mxu0 %v2883_v8  ;;  %4504 = vst [vmem:[#allocation13_spill] sm:$0xff] %v3396_v1  ;;  %v331_v4 = vadd.f32 %v3117_v15, %v295_v39  ;;  %v2881_v8 = vld [vmem:[%s4425_s3 + $0x110] sm:$0xff]  ;;  %v4436_v38 = vrot.slane %v3396_v1, 7 }
  0x3b   : > { %2674 = vmatmul.msk.bf16.gmra.mxu1 %vm3209_vm3, %v3334_v9  ;;  %2690 = vmatmul.msk.bf16.gmra.mxu2 %vm3209_vm3, %v3345_v16  ;;  %v2988_v39 = vld [vmem:[%s3097_s27 + $0x30] sm:$0xff]   ;;  %v313_v44 = vmul.f32 %v3108_v7, %v2961_v37 }
  0x3c   : > { %1616 = vmatpush.bf16.msrb.mxu2 %v2866_v11  ;;  %2706 = vmatmul.msk.bf16.gmra.mxu3 %vm3209_vm3, %v3352_v22  ;;  %v2872_v11 = vld [vmem:[%s4425_s3 + $0xc8] sm:$0xff]  ;;  %v3458_v42 = vsel %vm394_vm0, %v3420_v29, %v4436_v38  ;;  %v676_v22 = vrot.slane %v3157_v40, 2 }
  0x3d   : > { %1705 = vmatpush.bf16.msrb.mxu3 %v2874_v13  ;;  %2658 = vmatmul.msk.bf16.gmra.mxu0 %vm3209_vm3, %v3356_v23  ;;  %v3414_v13 = vrot.slane %v339_v50, 7  ;;  %v2996_v50 = vld [vmem:[%s3097_s27 + $0x70] sm:$0xff]   ;;  %4506 = vst [vmem:[#allocation15_spill] sm:$0xff] %v3458_v42 }
  0x3e   : > { %1527 = vmatpush.bf16.msrb.mxu1 %v2858_v48  ;;  %1794 = vmatpush.bf16.msrb.mxu0 %v2882_v49  ;;  %v3425_v48 = vrot.slane %v331_v4, 7  ;;  %v4437_v49 = vrot.slane %v3400_v5, 7  ;;  %v2871_v4 = vld [vmem:[%s4425_s3 + $0xc0] sm:$0xff]  ;;  %v2977_v34 = vunpack.c.l.bf16 %v2996_v50  ;;  %v2978_v27 = vunpack.c.h.bf16 %v2996_v50 }
  0x40   : > { %1617 = vmatpush.bf16.msrb.mxu2 %v2865_v52  ;;  %v2856_v52 = vld [vmem:[%s4425_s3 + $0x48] sm:$0xff]  ;;  %v322_v56 = vmul.f32 %v3108_v7, %v2978_v27  ;;  %v2902_v27 = vld [vmem:[%s4425_s3 + $0x1b8] sm:$0xff] }
  0x41   : > { %1706 = vmatpush.bf16.msrb.mxu3 %v2873_v53  ;;  %v2880_v53 = vld [vmem:[%s4425_s3 + $0x108] sm:$0xff] }
  0x42   : > { %1528 = vmatpush.bf16.msrb.mxu1 %v2857_v6  ;;  %1795 = vmatpush.bf16.msrb.mxu0 %v2881_v8  ;;  %v3446_v6 = vsel %vm394_vm0, %v3414_v13, %v4432_v17  ;;  %v3452_v8 = vsel %vm394_vm0, %v3417_v19, %v4434_v21  ;;  %v3464_v17 = vsel %vm394_vm0, %v3425_v48, %v4437_v49  ;;  %v2929_v21 = vunpack.c.l.bf16 %v2984_v57 }
  0x43   : > { %v3474_v38 = vpack.c.bf16 %v3446_v6, %v3414_v13  ;;  %v3478_v50 = vpack.c.bf16 %v3452_v8, %v3417_v19  ;;  %v3488_v49 = vpack.c.bf16 %v3464_v17, %v3425_v48 }
  0x44   : > { %1618 = vmatpush.bf16.msrb.mxu2 %v2864_v10  ;;  %v2945_v10 = vunpack.c.l.bf16 %v2988_v39  ;;  %v297_v1 = vmul.f32 %v3108_v7, %v2929_v21  ;;  %v2894_v21 = vld [vmem:[%s4425_s3 + $0x178] sm:$0xff] }
  0x45   : > { %1707 = vmatpush.bf16.msrb.mxu3 %v2872_v11  ;;  %v2946_v11 = vunpack.c.h.bf16 %v2988_v39  ;;  %v2855_v39 = vld [vmem:[%s4425_s3 + $0x40] sm:$0xff]  ;;  %4507 = vst [vmem:[#allocation16_spill] sm:$0xff] %v3474_v38 }
  0x46   : > { %1529 = vmatpush.bf16.msrb.mxu1 %v2856_v52  ;;  %1796 = vmatpush.bf16.msrb.mxu0 %v2880_v53  ;;  %v3482_v52 = vpack.c.bf16 %v3458_v42, %v3420_v29  ;;  %v305_v53 = vmul.f32 %v3108_v7, %v2945_v10  ;;  %v298_v42 = vmul.f32 %v3108_v7, %v2930_v32 }
  0x47   : > { %v306_v57 = vmul.f32 %v3108_v7, %v2946_v11  ;;  %v349_v32 = vadd.f32 %v3117_v15, %v313_v44  ;;  %v3527_v11 = vadd.f32 %v3117_v15, %v322_v56  ;;  %v333_v44 = vadd.f32 %v3117_v15, %v297_v1 }
  0x48   : > { %1619 = vmatpush.bf16.msrb.mxu2 %v2863_v62  ;;  %4508 = vst [vmem:[#allocation17_spill] sm:$0xff] %v3482_v52  ;;  %v314_v62 = vmul.f32 %v3108_v7, %v2962_v35  ;;  %v341_v37 = vadd.f32 %v3117_v15, %v305_v53  ;;  %v2910_v35 = vld [vmem:[%s4425_s3 + $0x1f8] sm:$0xff] }
  0x49   : > { %1708 = vmatpush.bf16.msrb.mxu3 %v2871_v4  ;;  %v321_v4 = vmul.f32 %v3108_v7, %v2977_v34  ;;  %v3510_v7 = vadd.f32 %v3117_v15, %v306_v57  ;;  %4509 = vst [vmem:[#allocation18_spill] sm:$0xff] %v3527_v11 }
  0x4a   : > { %1530 = vmatpush.bf16.msrb.mxu1 %v2855_v39  ;;  %1797 = vmatpush.bf16.msrb.mxu0 %v2879_v45  ;;  %v3514_v34 = vadd.f32 %v3117_v15, %v314_v62  ;;  %v3531_v39 = vadd.f32 %v3117_v15, %v298_v42  ;;  %v2918_v45 = vld [vmem:[%s4425_s3 + $0x238] sm:$0xff]  ;;  %v3536_v53 = vrot.slane %v341_v37, 7  ;;  %v3539_v62 = vrot.slane %v349_v32, 7 }
  0x4b   : > { %2678 = vmatmul.msk.bf16.gmra.mxu1 %vm3209_vm3, %v3474_v38  ;;  %2694 = vmatmul.msk.bf16.gmra.mxu2 %vm3209_vm3, %v3478_v50  ;;  %v357_v10 = vadd.f32 %v3117_v15, %v321_v4  ;;  %v4445_v57 = vrot.slane %v3510_v7, 7  ;;  %v4443_v15 = vrot.slane %v3527_v11, 7  ;;  %v3545_v42 = vrot.slane %v333_v44, 7 }
  0x4c   : > { %2710 = vmatmul.msk.bf16.gmra.mxu3 %vm3209_vm3, %v3482_v52  ;;  %1968 = vmatpush.bf16.msra.mxu2 %v2902_v27  ;;  %v4444_v56 = vrot.slane %v3514_v34, 7  ;;  %v4446_v4 = vrot.slane %v3531_v39, 7  ;;  %v568_v11 = vrot.slane %v3324_v3, 1 }
  0x4d   : > { %2662 = vmatmul.msk.bf16.gmra.mxu0 %vm3209_vm3, %v3488_v49  ;;  %2057 = vmatpush.bf16.msra.mxu3 %v2910_v35  ;;  %v3542_v1 = vrot.slane %v357_v10, 7  ;;  %v3552_v37 = vsel %vm394_vm0, %v3536_v53, %v4445_v57  ;;  %v496_v57 = vsel %vm394_vm0, 0.0, %v3288_v43 }
  0x4e   : > { %1879 = vmatpush.bf16.msra.mxu1 %v2894_v21  ;;  %2146 = vmatpush.bf16.msra.mxu0 %v2918_v45  ;;  %v3558_v32 = vsel %vm394_vm0, %v3539_v62, %v4444_v56  ;;  %v3570_v35 = vsel %vm394_vm0, %v3545_v42, %v4446_v4  ;;  %v3574_v21 = vpack.c.bf16 %v3552_v37, %v3536_v53  ;;  %v512_v56 = vsel %vm394_vm0, %v3157_v40, 0.0 }
  0x4f   : > { %4510 = vst [vmem:[#allocation19_spill] sm:$0xff] %v3542_v1  ;;  %v3564_v27 = vsel %vm394_vm0, %v3542_v1, %v4443_v15  ;;  %v3578_v10 = vpack.c.bf16 %v3558_v32, %v3539_v62  ;;  %v3586_v45 = vpack.c.bf16 %v3570_v35, %v3545_v42  ;;  %v495_v15 = vsel %vm394_vm0, 0.0, %v3157_v40 }
  0x50   : > { %4511 = vst [vmem:[#allocation20_spill] sm:$0xff] %v3564_v27  ;;  %v3582_v44 = vpack.c.bf16 %v3564_v27, %v3542_v1  ;;  %v4514_v4 = vrot.slane %v3263_v20, 7  ;;  %v563_v1 = vrot.slane %v3157_v40, 1  ;;  %v565_v52 = vrot.slane %v512_v56, 1 }
  0x51   : > { %4512 = vst [vmem:[#allocation21_spill] sm:$0xff] %v3574_v21  ;;  %v675_v29 = vrot.slane %v495_v15, 2  ;;  %v678_v2 = vrot.slane %v512_v56, 2  ;;  %v567_v18 = vrot.slane %v496_v57, 1 }
  0x52   : > { %4513 = vst [vmem:[#allocation22_spill] sm:$0xff] %v3582_v44  ;;  %v513_v27 = vsel %vm394_vm0, %v4514_v4, 0.0  ;;  %v566_v20 = vsel %vm561_vm4, %v563_v1, %v565_v52 }
  0x53   : > { %v570_v41 = vrot.slane %v513_v27, 1  ;;  %v677_v4 = vsel %vm674_vm5, %v675_v29, %v676_v22  ;;  %v679_v0 = vsel %vm674_vm5, %v676_v22, %v678_v2  ;;  %v569_v51 = vsel %vm561_vm4, %v567_v18, %v568_v11  ;;  %v2901_v18 = vld [vmem:[%s4425_s3 + $0x1b0] sm:$0xff] }
  0x54   : > { %v3620_v40 = vpack.c.bf16 %v679_v0, %v677_v4  ;;  %v497_v0 = vsel %vm394_vm0, 0.0, %v3425_v48  ;;  %v4517_v2 = vrot.slane %v3400_v5, 7  ;;  %1969 = vmatpush.bf16.msra.mxu2 %v2901_v18  ;;  %v681_v29 = vrot.slane %v3324_v3, 2 }
  0x55   : > { %v571_v28 = vsel %vm561_vm4, %v568_v11, %v570_v41  ;;  %v2909_v41 = vld [vmem:[%s4425_s3 + $0x1f0] sm:$0xff]  ;;  %v683_v52 = vrot.slane %v513_v27, 2  ;;  %v573_v11 = vrot.slane %v3464_v17, 1  ;;  %v498_v3 = vsel %vm394_vm0, 0.0, %v3545_v42 }
  0x56   : > { %4516 = vst [vmem:[#allocation24_spill] sm:$0xff] %v3620_v40  ;;  %v807_v56 = vpack.c.bf16 %v571_v28, %v569_v51  ;;  %v2893_v28 = vld [vmem:[%s4425_s3 + $0x170] sm:$0xff]  ;;  %v514_v22 = vsel %vm394_vm0, %v4517_v2, 0.0  ;;  %2058 = vmatpush.bf16.msra.mxu3 %v2909_v41  ;;  %v686_v41 = vrot.slane %v3464_v17, 2  ;;  %v577_v2 = vrot.slane %v498_v3, 1  ;;  %v2900_v17 = vld [vmem:[%s4425_s3 + $0x1a8] sm:$0xff] }
  0x57   : > { %v2917_v51 = vld [vmem:[%s4425_s3 + $0x230] sm:$0xff]  ;;  %1880 = vmatpush.bf16.msra.mxu1 %v2893_v28  ;;  %v684_v48 = vsel %vm674_vm5, %v681_v29, %v683_v52  ;;  %v685_v28 = vrot.slane %v497_v0, 2 }
  0x58   : > { %2147 = vmatpush.bf16.msra.mxu0 %v2917_v51  ;;  %v688_v51 = vrot.slane %v514_v22, 2  ;;  %1970 = vmatpush.bf16.msra.mxu2 %v2900_v17 }
  0x5a   : > { %v689_v52 = vsel %vm674_vm5, %v686_v41, %v688_v51 }
  0x5b   : > { %2682 = vmatmul.msk.bf16.gmra.mxu1 %vm3209_vm3, %v3574_v21  ;;  %2698 = vmatmul.msk.bf16.gmra.mxu2 %vm3209_vm3, %v3578_v10 }
  0x5c   : > { %2714 = vmatmul.msk.bf16.gmra.mxu3 %vm3209_vm3, %v3582_v44  ;;  %v562_v44 = vrot.slane %v495_v15, 1 }
  0x5d   : > { %2666 = vmatmul.msk.bf16.gmra.mxu0 %vm3209_vm3, %v3586_v45 }
  0x5e   : > { %v564_v43 = vsel %vm561_vm4, %v562_v44, %v563_v1  ;;  %v572_v1 = vrot.slane %v497_v0, 1  ;;  %v575_v44 = vrot.slane %v514_v22, 1  ;;  %v2908_v0 = vld [vmem:[%s4425_s3 + $0x1e8] sm:$0xff]  ;;  %v499_v22 = vsel %vm394_vm0, 0.0, %v3146_v31 }
  0x5f   : > { %v3618_v15 = vpack.c.bf16 %v566_v20, %v564_v43  ;;  %2059 = vmatpush.bf16.msra.mxu3 %v2908_v0  ;;  %v588_v0 = vrot.slane %v3306_v54, 1 }
  0x60   : > { %v574_v5 = vsel %vm561_vm4, %v572_v1, %v573_v11  ;;  %v576_v20 = vsel %vm561_vm4, %v573_v11, %v575_v44  ;;  %v4519_v44 = vrot.slane %v3132_v24, 7  ;;  %v2916_v24 = vld [vmem:[%s4425_s3 + $0x228] sm:$0xff] }
  0x61   : > { %4515 = vst [vmem:[#allocation23_spill] sm:$0xff] %v3618_v15  ;;  %v3652_v18 = vpack.c.bf16 %v576_v20, %v574_v5  ;;  %v690_v5 = vrot.slane %v498_v3, 2  ;;  %2148 = vmatpush.bf16.msra.mxu0 %v2916_v24  ;;  %v2907_v24 = vld [vmem:[%s4425_s3 + $0x1e0] sm:$0xff] }
  0x63   : > { %2060 = vmatpush.bf16.msra.mxu3 %v2907_v24 }
  0x6b   : > { %1531 = vmatmul.bf16.vlgmr.msrb.gmra.mxu1 %v3618_v15  ;;  %1620 = vmatmul.bf16.vlgmr.msrb.gmra.mxu2 %v3620_v40 }
  0x6c   : > { %2718 = vmatmul.msk.bf16.vlgmr.msrb.gmra.mxu3 %vm3209_vm3, %v3356_v23  ;;  %v680_v23 = vrot.slane %v496_v57, 2  ;;  %v4518_v57 = vrot.slane %v3531_v39, 7 }
  0x6d   : > { %1798 = vmatmul.bf16.vlgmr.msrb.gmra.mxu0 %v807_v56 }
  0x6e   : > { %v682_v43 = vsel %vm674_vm5, %v680_v23, %v681_v29  ;;  %v515_v27 = vsel %vm394_vm0, %v4518_v57, 0.0  ;;  %v687_v29 = vsel %vm674_vm5, %v685_v28, %v686_v41  ;;  %v2892_v57 = vld [vmem:[%s4425_s3 + $0x168] sm:$0xff]  ;;  %v583_v41 = vrot.slane %v3167_v46, 1 }
  0x6f   : > { %v3650_v4 = vpack.c.bf16 %v684_v48, %v682_v43  ;;  %v580_v23 = vrot.slane %v515_v27, 1  ;;  %v3670_v1 = vpack.c.bf16 %v689_v52, %v687_v29  ;;  %v516_v43 = vsel %vm394_vm0, %v4519_v44, 0.0  ;;  %1881 = vmatpush.bf16.msra.mxu1 %v2892_v57 }
  0x70   : > { %v691_v48 = vrot.slane %v3570_v35, 2  ;;  %v693_v20 = vrot.slane %v515_v27, 2  ;;  %v582_v28 = vrot.slane %v499_v22, 1  ;;  %v585_v51 = vrot.slane %v516_v43, 1 }
  0x71   : > { %v4520_v29 = vrot.slane %v3242_v12, 7  ;;  %v698_v17 = vrot.slane %v516_v43, 2 }
  0x72   : > { %v692_v31 = vsel %vm674_vm5, %v690_v5, %v691_v48  ;;  %v586_v3 = vsel %vm561_vm4, %v583_v41, %v585_v51  ;;  %v2899_v51 = vld [vmem:[%s4425_s3 + $0x1a0] sm:$0xff] }
  0x73   : > { %v517_v52 = vsel %vm394_vm0, %v4520_v29, 0.0  ;;  %1971 = vmatpush.bf16.msra.mxu2 %v2899_v51 }
  0x7b   : > { %1536 = vmatmul.bf16.gmra.mxu1 %v807_v56  ;;  %1625 = vmatmul.bf16.gmra.mxu2 %v3650_v4  ;;  %v578_v56 = vrot.slane %v3570_v35, 1  ;;  %v584_v35 = vsel %vm561_vm4, %v582_v28, %v583_v41 }
  0x7c   : > { %2722 = vmatmul.msk.bf16.gmra.mxu3 %vm3209_vm3, %v3488_v49 }
  0x7d   : > { %1803 = vmatmul.bf16.gmra.mxu0 %v3652_v18  ;;  %v579_v11 = vsel %vm561_vm4, %v577_v2, %v578_v56  ;;  %v581_v42 = vsel %vm561_vm4, %v578_v56, %v580_v23  ;;  %v694_v56 = vsel %vm674_vm5, %v691_v48, %v693_v20  ;;  %v3705_v2 = vpack.c.bf16 %v586_v3, %v584_v35 }
  0x7e   : > { %v3672_v39 = vpack.c.bf16 %v581_v42, %v579_v11  ;;  %v3703_v27 = vpack.c.bf16 %v694_v56, %v692_v31  ;;  %v500_v23 = vsel %vm394_vm0, 0.0, %v3274_v25  ;;  %v696_v11 = vrot.slane %v3167_v46, 2  ;;  %v3725_v25 = vld [vmem:[%s4426_s4] ss:$0 sm:$0xff] }
  0x7f   : > { %v695_v42 = vrot.slane %v499_v22, 2  ;;  %v587_v44 = vrot.slane %v500_v23, 1  ;;  %v590_v48 = vrot.slane %v517_v52, 1  ;;  %v501_v56 = vsel %vm394_vm0, 0.0, %v3414_v13 }
  0x80   : > { %v699_v20 = vsel %vm674_vm5, %v696_v11, %v698_v17  ;;  %v4522_v35 = vrot.slane %v3382_v55, 7  ;;  %v2891_v55 = vld [vmem:[%s4425_s3 + $0x160] sm:$0xff]  ;;  %v593_v13 = vrot.slane %v3446_v6, 1 }
  0x81   : > { %v697_v5 = vsel %vm674_vm5, %v695_v42, %v696_v11  ;;  %v589_v12 = vsel %vm561_vm4, %v587_v44, %v588_v0  ;;  %v591_v57 = vsel %vm561_vm4, %v588_v0, %v590_v48  ;;  %v701_v42 = vrot.slane %v3306_v54, 2  ;;  %1882 = vmatpush.bf16.msra.mxu1 %v2891_v55  ;;  %v2915_v54 = vld [vmem:[%s4425_s3 + $0x220] sm:$0xff] }
  0x82   : > { %v3729_v46 = vpack.c.bf16 %v699_v20, %v697_v5  ;;  %v3731_v43 = vpack.c.bf16 %v591_v57, %v589_v12  ;;  %v518_v3 = vsel %vm394_vm0, %v4522_v35, 0.0  ;;  %v700_v44 = vrot.slane %v500_v23, 2  ;;  %2149 = vmatpush.bf16.msra.mxu0 %v2915_v54 }
  0x83   : > { %v703_v48 = vrot.slane %v517_v52, 2  ;;  %v592_v12 = vrot.slane %v501_v56, 1  ;;  %v595_v57 = vrot.slane %v518_v3, 1 }
  0x84   : > { %4521 = vst [vmem:[#allocation25_spill] sm:$0xff] %v3731_v43  ;;  %v702_v23 = vsel %vm674_vm5, %v700_v44, %v701_v42 }
  0x85   : > { %v704_v52 = vsel %vm674_vm5, %v701_v42, %v703_v48  ;;  %v596_v51 = vsel %vm561_vm4, %v593_v13, %v595_v57 }
  0x8b   : > { %1541 = vmatmul.bf16.gmra.mxu1 %v3652_v18  ;;  %1630 = vmatmul.bf16.gmra.mxu2 %v3670_v1 }
  0x8c   : > { %2726 = vmatmul.msk.bf16.gmra.mxu3 %vm3209_vm3, %v3586_v45 }
  0x8d   : > { %1808 = vmatmul.bf16.gmra.mxu0 %v3672_v39 }
  0x9b   : > { %1546 = vmatmul.bf16.gmra.mxu1 %v3672_v39  ;;  %1635 = vmatmul.bf16.gmra.mxu2 %v3703_v27 }
  0x9c   : > { %2730 = vmatmul.msk.bf16.gmra.mxu3 %vm3209_vm3, %v3199_v59 }
  0x9d   : > { %1813 = vmatmul.bf16.gmra.mxu0 %v3705_v2 }
  0xa8   : > { %v1463_v22 = vpop.f32.mrf.mxu1 }
  0xa9   : > { %v3734_v41 = vadd.f32 %v3725_v25, %v1463_v22  ;;  %v594_v22 = vsel %vm561_vm4, %v592_v12, %v593_v13  ;;  %v502_v13 = vsel %vm394_vm0, 0.0, %v3536_v53  ;;  %v4527_v12 = vrot.slane %v3510_v7, 7 }
  0xaa   : > { %v3736_v28 = vpop.f32.mrf.mxu0  ;;  %v3786_v40 = vpack.c.bf16 %v596_v51, %v594_v22 }
  0xab   : > { %1551 = vmatmul.bf16.gmra.mxu1 %v3705_v2  ;;  %1640 = vmatmul.bf16.gmra.mxu2 %v3729_v46  ;;  %v519_v57 = vsel %vm394_vm0, %v4527_v12, 0.0  ;;  %v597_v12 = vrot.slane %v502_v13, 1 }
  0xac   : > { %2734 = vmatmul.msk.bf16.gmra.mxu3 %vm3209_vm3, %v3334_v9  ;;  %4526 = vst [vmem:[#allocation29_spill] sm:$0xff] %v3786_v40  ;;  %v600_v15 = vrot.slane %v519_v57, 1 }
  0xad   : > { %1818 = vmatmul.bf16.gmra.mxu0 %v3731_v43 }
  0xae   : > { %v1483_v31 = vpop.f32.mrf.mxu2 }
  0xaf   : > { %v3756_v29 = vadd.f32 %v3725_v25, %v1483_v31  ;;  %v1503_v11 = vpop.f32.mrf.mxu3 }
  0xb0   : > { %v3760_v17 = vadd.f32 %v3725_v25, %v1503_v11  ;;  %v1465_v0 = vpop.f32.mrf.mxu1  ;;  %v3781_v11 = vpack.c.bf16 %v704_v52, %v702_v23  ;;  %v706_v52 = vrot.slane %v3446_v6, 2 }
  0xb1   : > { %v3767_v5 = vadd.f32 %v3725_v25, %v1465_v0 }
  0xb2   : > { %4523 = vst [vmem:[#allocation26_spill] sm:$0xff] %v3760_v17  ;;  %v3769_v20 = vpop.f32.mrf.mxu0 }
  0xb3   : > { %4524 = vst [vmem:[#allocation27_spill] sm:$0xff] %v3781_v11 }
  0xb6   : > { %v1485_v24 = vpop.f32.mrf.mxu2 }
  0xb7   : > { %v3779_v31 = vadd.f32 %v3725_v25, %v1485_v24  ;;  %v1505_v35 = vpop.f32.mrf.mxu3  ;;  %v705_v24 = vrot.slane %v501_v56, 2 }
  0xb8   : > { %v3784_v0 = vadd.f32 %v3725_v25, %v1505_v35  ;;  %v1468_v55 = vpop.f32.mrf.mxu1  ;;  %v708_v35 = vrot.slane %v518_v3, 2 }
  0xb9   : > { %v3789_v42 = vadd.f32 %v3725_v25, %v1468_v55  ;;  %v598_v55 = vrot.slane %v3552_v37, 1 }
  0xba   : > { %4525 = vst [vmem:[#allocation28_spill] sm:$0xff] %v3784_v0  ;;  %v3791_v44 = vpop.f32.mrf.mxu0  ;;  %v709_v0 = vsel %vm674_vm5, %v706_v52, %v708_v35  ;;  %v4532_v35 = vrot.slane %v3136_v26, 7 }
  0xbb   : > { %1556 = vmatmul.bf16.gmra.mxu1 %v3731_v43  ;;  %1645 = vmatmul.bf16.gmra.mxu2 %v3781_v11  ;;  %v599_v6 = vsel %vm561_vm4, %v597_v12, %v598_v55 }
  0xbc   : > { %2738 = vmatmul.msk.bf16.gmra.mxu3 %vm3209_vm3, %v3474_v38 }
  0xbd   : > { %1823 = vmatmul.bf16.gmra.mxu0 %v3786_v40 }
  0xbe   : > { %v1488_v48 = vpop.f32.mrf.mxu2 }
  0xbf   : > { %v3805_v54 = vadd.f32 %v3725_v25, %v1488_v48  ;;  %v1508_v23 = vpop.f32.mrf.mxu3  ;;  %v707_v48 = vsel %vm674_vm5, %v705_v24, %v706_v52 }
  0xc0   : > { %v3809_v22 = vadd.f32 %v3725_v25, %v1508_v23  ;;  %v1470_v51 = vpop.f32.mrf.mxu1  ;;  %v601_v23 = vsel %vm561_vm4, %v598_v55, %v600_v15  ;;  %v3824_v38 = vpack.c.bf16 %v709_v0, %v707_v48  ;;  %v2898_v15 = vld [vmem:[%s4425_s3 + $0x198] sm:$0xff]  ;;  %v520_v55 = vsel %vm394_vm0, %v4532_v35, 0.0 }
  0xc1   : > { %v3813_v53 = vadd.f32 %v3725_v25, %v1470_v51  ;;  %v3829_v11 = vpack.c.bf16 %v601_v23, %v599_v6  ;;  %1972 = vmatpush.bf16.msra.mxu2 %v2898_v15  ;;  %v711_v6 = vrot.slane %v3552_v37, 2  ;;  %v2914_v37 = vld [vmem:[%s4425_s3 + $0x218] sm:$0xff] }
  0xc2   : > { %4528 = vst [vmem:[#allocation30_spill] sm:$0xff] %v3809_v22  ;;  %v3815_v7 = vpop.f32.mrf.mxu0  ;;  %2150 = vmatpush.bf16.msra.mxu0 %v2914_v37 }
  0xc3   : > { %4529 = vst [vmem:[#allocation31_spill] sm:$0xff] %v3824_v38 }
  0xc4   : > { %4531 = vst [vmem:[#allocation33_spill] sm:$0xff] %v3829_v11 }
  0xc6   : > { %v1490_v22 = vpop.f32.mrf.mxu2 }
  0xc7   : > { %v3822_v56 = vadd.f32 %v3725_v25, %v1490_v22  ;;  %v1510_v3 = vpop.f32.mrf.mxu3  ;;  %v503_v22 = vsel %vm394_vm0, 0.0, %v3149_v33  ;;  %v603_v33 = vrot.slane %v3173_v47, 1 }
  0xc8   : > { %v3827_v51 = vadd.f32 %v3725_v25, %v1510_v3  ;;  %v1473_v17 = vpop.f32.mrf.mxu1  ;;  %v602_v15 = vrot.slane %v503_v22, 1 }
  0xc9   : > { %v3832_v24 = vadd.f32 %v3725_v25, %v1473_v17  ;;  %v2906_v17 = vld [vmem:[%s4425_s3 + $0x1d8] sm:$0xff] }
  0xca   : > { %4530 = vst [vmem:[#allocation32_spill] sm:$0xff] %v3827_v51  ;;  %v3834_v52 = vpop.f32.mrf.mxu0  ;;  %2061 = vmatpush.bf16.msra.mxu3 %v2906_v17  ;;  %v710_v51 = vrot.slane %v502_v13, 2  ;;  %v605_v17 = vrot.slane %v520_v55, 1 }
  0xcb   : > { %1561 = vmatmul.bf16.gmra.mxu1 %v3786_v40  ;;  %1650 = vmatmul.bf16.gmra.mxu2 %v3824_v38 }
  0xcc   : > { %2742 = vmatmul.msk.bf16.gmra.mxu3 %vm3209_vm3, %v3574_v21  ;;  %v713_v21 = vrot.slane %v519_v57, 2  ;;  %v712_v13 = vsel %vm674_vm5, %v710_v51, %v711_v6 }
  0xcd   : > { %1828 = vmatmul.bf16.gmra.mxu0 %v3829_v11 }
  0xce   : > { %v1493_v0 = vpop.f32.mrf.mxu2  ;;  %v714_v57 = vsel %vm674_vm5, %v711_v6, %v713_v21  ;;  %v504_v6 = vsel %vm394_vm0, 0.0, %v3278_v30 }
  0xcf   : > { %v3854_v12 = vadd.f32 %v3725_v25, %v1493_v0  ;;  %v1513_v48 = vpop.f32.mrf.mxu3  ;;  %v2890_v0 = vld [vmem:[%s4425_s3 + $0x158] sm:$0xff]  ;;  %v3879_v43 = vpack.c.bf16 %v714_v57, %v712_v13  ;;  %v716_v13 = vrot.slane %v3173_v47, 2 }
  0xd0   : > { %v3858_v23 = vadd.f32 %v3725_v25, %v1513_v48  ;;  %v1475_v3 = vpop.f32.mrf.mxu1  ;;  %1883 = vmatpush.bf16.msra.mxu1 %v2890_v0  ;;  %v604_v48 = vsel %vm561_vm4, %v602_v15, %v603_v33 }
  0xd1   : > { %v3862_v26 = vadd.f32 %v3725_v25, %v1475_v3  ;;  %v606_v3 = vsel %vm561_vm4, %v603_v33, %v605_v17  ;;  %4535 = vst [vmem:[#allocation36_spill] sm:$0xff] %v3879_v43 }
  0xd2   : > { %4533 = vst [vmem:[#allocation34_spill] sm:$0xff] %v3858_v23  ;;  %v3864_v35 = vpop.f32.mrf.mxu0  ;;  %v3884_v37 = vpack.c.bf16 %v606_v3, %v604_v48  ;;  %v715_v3 = vrot.slane %v503_v22, 2  ;;  %v1444_v22 = vadd.f32 %v3725_v25, %v3736_v28  ;;  %v505_v28 = vsel %vm394_vm0, 0.0, %v3417_v19 }
  0xd4   : > { %4537 = vst [vmem:[#allocation38_spill] sm:$0xff] %v3884_v37 }
  0xd6   : > { %v1495_v23 = vpop.f32.mrf.mxu2 }
  0xd7   : > { %v3877_v38 = vadd.f32 %v3725_v25, %v1495_v23  ;;  %v1515_v40 = vpop.f32.mrf.mxu3  ;;  %v4538_v23 = vrot.slane %v3252_v14, 7 }
  0xd8   : > { %v3882_v9 = vadd.f32 %v3725_v25, %v1515_v40  ;;  %v1478_v0 = vpop.f32.mrf.mxu1 }
  0xd9   : > { %4534 = vst [vmem:[#allocation35_spill] sm:$0xff] %v3877_v38  ;;  %v3887_v51 = vadd.f32 %v3725_v25, %v1478_v0  ;;  %v521_v33 = vsel %vm394_vm0, %v4538_v23, 0.0  ;;  %v718_v0 = vrot.slane %v520_v55, 2  ;;  %v607_v23 = vrot.slane %v504_v6, 1 }
  0xda   : > { %4536 = vst [vmem:[#allocation37_spill] sm:$0xff] %v3882_v9  ;;  %v3889_v21 = vpop.f32.mrf.mxu0  ;;  %v608_v9 = vrot.slane %v3312_v61, 1 }
  0xdb   : > { %1566 = vmatmul.bf16.gmra.mxu1 %v3829_v11  ;;  %1655 = vmatmul.bf16.gmra.mxu2 %v3879_v43  ;;  %v719_v43 = vsel %vm674_vm5, %v716_v13, %v718_v0 }
  0xdc   : > { %2746 = vmatmul.msk.bf16.gmra.mxu3 %vm3209_vm3, %v3203_v60  ;;  %v610_v60 = vrot.slane %v521_v33, 1  ;;  %v609_v47 = vsel %vm561_vm4, %v607_v23, %v608_v9 }
  0xdd   : > { %1833 = vmatmul.bf16.gmra.mxu0 %v3884_v37 }
  0xde   : > { %v1498_v40 = vpop.f32.mrf.mxu2 }
  0xdf   : > { %v3903_v15 = vadd.f32 %v3725_v25, %v1498_v40  ;;  %v1518_v17 = vpop.f32.mrf.mxu3  ;;  %v717_v40 = vsel %vm674_vm5, %v715_v3, %v716_v13 }
  0xe0   : > { %v3907_v57 = vadd.f32 %v3725_v25, %v1518_v17  ;;  %v1480_v48 = vpop.f32.mrf.mxu1  ;;  %v611_v17 = vsel %vm561_vm4, %v608_v9, %v610_v60  ;;  %v3924_v11 = vpack.c.bf16 %v719_v43, %v717_v40  ;;  %v2897_v60 = vld [vmem:[%s4425_s3 + $0x190] sm:$0xff]  ;;  %v1446_v40 = vadd.f32 %v3725_v25, %v3769_v20 }
  0xe1   : > { %4539 = vst [vmem:[#allocation39_spill] sm:$0xff] %v3903_v15  ;;  %v3911_v30 = vadd.f32 %v3725_v25, %v1480_v48  ;;  %v3929_v38 = vpack.c.bf16 %v611_v17, %v609_v47  ;;  %v2905_v9 = vld [vmem:[%s4425_s3 + $0x1d0] sm:$0xff]  ;;  %1973 = vmatpush.bf16.msra.mxu2 %v2897_v60 }
  0xe2   : > { %4540 = vst [vmem:[#allocation40_spill] sm:$0xff] %v3907_v57  ;;  %v3913_v14 = vpop.f32.mrf.mxu0  ;;  %2062 = vmatpush.bf16.msra.mxu3 %v2905_v9  ;;  %v2889_v60 = vld [vmem:[%s4425_s3 + $0x150] sm:$0xff] }
  0xe3   : > { %4542 = vst [vmem:[#allocation42_spill] sm:$0xff] %v3924_v11  ;;  %v2913_v20 = vld [vmem:[%s4425_s3 + $0x210] sm:$0xff]  ;;  %1884 = vmatpush.bf16.msra.mxu1 %v2889_v60 }
  0xe4   : > { %2151 = vmatpush.bf16.msra.mxu0 %v2913_v20  ;;  %v726_v20 = vrot.slane %v3452_v8, 2 }
  0xe6   : > { %v1500_v57 = vpop.f32.mrf.mxu2 }
  0xe7   : > { %v3922_v55 = vadd.f32 %v3725_v25, %v1500_v57  ;;  %v1520_v48 = vpop.f32.mrf.mxu3  ;;  %v4544_v57 = vrot.slane %v3386_v58, 7  ;;  %v612_v58 = vrot.slane %v505_v28, 1 }
  0xe8   : > { %v3927_v15 = vadd.f32 %v3725_v25, %v1520_v48  ;;  %v1532_v3 = vpop.f32.mrf.mxu1  ;;  %v613_v48 = vrot.slane %v3452_v8, 1 }
  0xe9   : > { %4541 = vst [vmem:[#allocation41_spill] sm:$0xff] %v3922_v55  ;;  %v1533_v13 = vadd.f32 %v1532_v3, %v1444_v22  ;;  %v522_v23 = vsel %vm394_vm0, %v4544_v57, 0.0  ;;  %v721_v22 = vrot.slane %v3312_v61, 2  ;;  %v1449_v57 = vadd.f32 %v3725_v25, %v3791_v44 }
  0xea   : > { %4543 = vst [vmem:[#allocation43_spill] sm:$0xff] %v3927_v15  ;;  %v1799_v0 = vpop.f32.mrf.mxu0  ;;  %v720_v15 = vrot.slane %v504_v6, 2  ;;  %v615_v55 = vrot.slane %v522_v23, 1 }
  0xeb   : > { %1571 = vmatmul.bf16.gmra.mxu1 %v3884_v37  ;;  %1660 = vmatmul.bf16.gmra.mxu2 %v3924_v11 }
  0xec   : > { %2750 = vmatmul.msk.bf16.gmra.mxu3 %vm3209_vm3, %v3345_v16  ;;  %v723_v16 = vrot.slane %v521_v33, 2  ;;  %v722_v6 = vsel %vm674_vm5, %v720_v15, %v721_v22  ;;  %v616_v9 = vsel %vm561_vm4, %v613_v48, %v615_v55  ;;  %v506_v55 = vsel %vm394_vm0, 0.0, %v3539_v62 }
  0xed   : > { %1838 = vmatmul.bf16.gmra.mxu0 %v3929_v38  ;;  %v617_v62 = vrot.slane %v506_v55, 1 }
  0xee   : > { %v1621_v43 = vpop.f32.mrf.mxu2  ;;  %v724_v33 = vsel %vm674_vm5, %v721_v22, %v723_v16  ;;  %v4545_v22 = vrot.slane %v3514_v34, 7 }
  0xef   : > { %v1622_v47 = vadd.f32 %v1621_v43, %v1533_v13  ;;  %v1710_v17 = vpop.f32.mrf.mxu3  ;;  %v614_v13 = vsel %vm561_vm4, %v612_v58, %v613_v48 }
  0xf0   : > { %v1534_v3 = vpop.f32.mrf.mxu1  ;;  %v3968_v60 = vpack.c.bf16 %v616_v9, %v614_v13  ;;  %v523_v48 = vsel %vm394_vm0, %v4545_v22, 0.0  ;;  %v725_v13 = vrot.slane %v505_v28, 2  ;;  %v728_v9 = vrot.slane %v522_v23, 2 }
  0xf1   : > { %v1711_v11 = vadd.f32 %v1710_v17, %v1622_v47  ;;  %v1535_v19 = vadd.f32 %v1534_v3, %v1446_v40  ;;  %v3966_v17 = vpack.c.bf16 %v724_v33, %v722_v6  ;;  %v618_v6 = vrot.slane %v3558_v32, 1 }
  0xf2   : > { %v1801_v37 = vpop.f32.mrf.mxu0  ;;  %v1454_v28 = vadd.f32 %v3725_v25, %v3834_v52  ;;  %v2896_v52 = vld [vmem:[%s4425_s3 + $0x188] sm:$0xff] }
  0xf3   : > { %v3958_v61 = vadd.f32 %v1799_v0, %v1711_v11  ;;  %1974 = vmatpush.bf16.msra.mxu2 %v2896_v52  ;;  %v2888_v52 = vld [vmem:[%s4425_s3 + $0x148] sm:$0xff] }
  0xf4   : > { %1885 = vmatpush.bf16.msra.mxu1 %v2888_v52 }
  0xf6   : > { %v1623_v43 = vpop.f32.mrf.mxu2 }
  0xf7   : > { %v1624_v40 = vadd.f32 %v1623_v43, %v1535_v19  ;;  %v1712_v47 = vpop.f32.mrf.mxu3  ;;  %v1451_v19 = vadd.f32 %v3725_v25, %v3815_v7  ;;  %v729_v7 = vsel %vm674_vm5, %v726_v20, %v728_v9  ;;  %v507_v9 = vsel %vm394_vm0, 0.0, %v3153_v36 }
  0xf8   : > { %v1537_v3 = vpop.f32.mrf.mxu1 }
  0xf9   : > { %v1713_v11 = vadd.f32 %v1712_v47, %v1624_v40  ;;  %v1538_v0 = vadd.f32 %v1537_v3, %v1449_v57  ;;  %v620_v47 = vrot.slane %v523_v48, 1  ;;  %v727_v3 = vsel %vm674_vm5, %v725_v13, %v726_v20 }
  0xfa   : > { %v1804_v15 = vpop.f32.mrf.mxu0  ;;  %v3995_v22 = vpack.c.bf16 %v729_v7, %v727_v3  ;;  %v4548_v7 = vld [vmem:[#allocation3_spill] sm:$0xff] }
  0xfb   : > { %1576 = vmatmul.bf16.gmra.mxu1 %v3929_v38  ;;  %1665 = vmatmul.bf16.gmra.mxu2 %v3966_v17  ;;  %v3972_v16 = vadd.f32 %v1801_v37, %v1713_v11  ;;  %v619_v11 = vsel %vm561_vm4, %v617_v62, %v618_v6  ;;  %v621_v8 = vsel %vm561_vm4, %v618_v6, %v620_v47  ;;  %v2904_v6 = vld [vmem:[%s4425_s3 + $0x1c8] sm:$0xff] }
  0xfc   : > { %2754 = vmatmul.msk.bf16.gmra.mxu3 %vm3209_vm3, %v3478_v50  ;;  %v1456_v62 = vadd.f32 %v3725_v25, %v3864_v35  ;;  %v2912_v35 = vld [vmem:[%s4425_s3 + $0x208] sm:$0xff] }
  0xfd   : > { %1843 = vmatmul.bf16.gmra.mxu0 %v3968_v60  ;;  %2063 = vmatpush.bf16.msra.mxu3 %v2904_v6 }
  0xfe   : > { %v1626_v44 = vpop.f32.mrf.mxu2  ;;  %2152 = vmatpush.bf16.msra.mxu0 %v2912_v35 }
  0xff   : > { %v1627_v58 = vadd.f32 %v1626_v44, %v1538_v0  ;;  %v1715_v37 = vpop.f32.mrf.mxu3 }
 0x100   : > { %v1539_v33 = vpop.f32.mrf.mxu1 }
 0x101   : > { %v1716_v43 = vadd.f32 %v1715_v37, %v1627_v58  ;;  %v1540_v57 = vadd.f32 %v1539_v33, %v1451_v19  ;;  %v3997_v58 = vpack.c.bf16 %v621_v8, %v619_v11  ;;  %v623_v11 = vrot.slane %v4548_v7, 1 }
 0x102   : > { %v1806_v40 = vpop.f32.mrf.mxu0  ;;  %v731_v8 = vrot.slane %v3558_v32, 2 }
 0x103   : > { %v3987_v34 = vadd.f32 %v1804_v15, %v1716_v43  ;;  %v4546_v43 = vld [vmem:[#allocation2_spill] sm:$0xff] }
 0x106   : > { %v1628_v0 = vpop.f32.mrf.mxu2 }
 0x107   : > { %v1629_v23 = vadd.f32 %v1628_v0, %v1540_v57  ;;  %v1717_v44 = vpop.f32.mrf.mxu3  ;;  %v4547_v57 = vrot.slane %v4546_v43, 7 }
 0x108   : > { %v1542_v19 = vpop.f32.mrf.mxu1 }
 0x109   : > { %v1718_v15 = vadd.f32 %v1717_v44, %v1629_v23  ;;  %v1543_v37 = vadd.f32 %v1542_v19, %v1454_v28  ;;  %v730_v28 = vrot.slane %v506_v55, 2  ;;  %v733_v23 = vrot.slane %v523_v48, 2 }
 0x10a   : > { %v1809_v33 = vpop.f32.mrf.mxu0 }
 0x10b   : > { %1581 = vmatmul.bf16.gmra.mxu1 %v3968_v60  ;;  %1670 = vmatmul.bf16.gmra.mxu2 %v3995_v22  ;;  %v4001_v20 = vadd.f32 %v1806_v40, %v1718_v15  ;;  %v524_v40 = vsel %vm394_vm0, %v4547_v57, 0.0  ;;  %v622_v15 = vrot.slane %v507_v9, 1  ;;  %v732_v32 = vsel %vm674_vm5, %v730_v28, %v731_v8 }
 0x10c   : > { %2758 = vmatmul.msk.bf16.gmra.mxu3 %vm3209_vm3, %v3578_v10  ;;  %v625_v43 = vrot.slane %v524_v40, 1  ;;  %v734_v55 = vsel %vm674_vm5, %v731_v8, %v733_v23  ;;  %v1459_v57 = vadd.f32 %v3725_v25, %v3889_v21  ;;  %v4552_v23 = vld [vmem:[#allocation8_spill] sm:$0xff] }
 0x10d   : > { %1848 = vmatmul.bf16.gmra.mxu0 %v3997_v58  ;;  %v624_v48 = vsel %vm561_vm4, %v622_v15, %v623_v11  ;;  %v4553_v15 = vld [vmem:[#allocation7_spill] sm:$0xff] }
 0x10e   : > { %v1631_v13 = vpop.f32.mrf.mxu2  ;;  %v626_v6 = vsel %vm561_vm4, %v623_v11, %v625_v43  ;;  %v4551_v11 = vld [vmem:[#allocation6_spill] sm:$0xff]  ;;  %v4554_v43 = vrot.slane %v4553_v15, 7 }
 0x10f   : > { %v1632_v47 = vadd.f32 %v1631_v13, %v1543_v37  ;;  %v1720_v3 = vpop.f32.mrf.mxu3  ;;  %v4038_v52 = vpack.c.bf16 %v626_v6, %v624_v48  ;;  %v736_v48 = vrot.slane %v4548_v7, 2  ;;  %v4555_v6 = vld [vmem:[#allocation9_spill] sm:$0xff] }
 0x110   : > { %v1544_v0 = vpop.f32.mrf.mxu1  ;;  %v525_v35 = vsel %vm394_vm0, %v4554_v43, 0.0 }
 0x111   : > { %v1721_v44 = vadd.f32 %v1720_v3, %v1632_v47  ;;  %v1545_v36 = vadd.f32 %v1544_v0, %v1456_v62  ;;  %v4036_v3 = vpack.c.bf16 %v734_v55, %v732_v32  ;;  %v1461_v32 = vadd.f32 %v3725_v25, %v3913_v14 }
 0x112   : > { %v1811_v19 = vpop.f32.mrf.mxu0 }
 0x113   : > { %v4028_v37 = vadd.f32 %v1809_v33, %v1721_v44 }
 0x115   : > { %4549 = vst [vmem:[#allocation2_spill] sm:$0xff] %v4028_v37  ;;  %v630_v37 = vrot.slane %v525_v35, 1 }
 0x116   : > { %v1633_v13 = vpop.f32.mrf.mxu2 }
 0x117   : > { %v1634_v62 = vadd.f32 %v1633_v13, %v1545_v36  ;;  %v1722_v47 = vpop.f32.mrf.mxu3  ;;  %v508_v36 = vsel %vm394_vm0, 0.0, %v4552_v23  ;;  %v628_v13 = vrot.slane %v4555_v6, 1 }
 0x118   : > { %v1547_v0 = vpop.f32.mrf.mxu1  ;;  %v627_v23 = vrot.slane %v508_v36, 1 }
 0x119   : > { %v1723_v33 = vadd.f32 %v1722_v47, %v1634_v62  ;;  %v1548_v44 = vadd.f32 %v1547_v0, %v1459_v57  ;;  %v735_v62 = vrot.slane %v507_v9, 2  ;;  %v738_v47 = vrot.slane %v524_v40, 2 }
 0x11a   : > { %v1814_v28 = vpop.f32.mrf.mxu0  ;;  %v629_v14 = vsel %vm561_vm4, %v627_v23, %v628_v13  ;;  %v631_v7 = vsel %vm561_vm4, %v628_v13, %v630_v37  ;;  %v2895_v37 = vld [vmem:[%s4425_s3 + $0x180] sm:$0xff] }
 0x11b   : > { %1586 = vmatmul.bf16.gmra.mxu1 %v3997_v58  ;;  %1675 = vmatmul.bf16.gmra.mxu2 %v4036_v3  ;;  %v4042_v8 = vadd.f32 %v1811_v19, %v1723_v33  ;;  %v737_v43 = vsel %vm674_vm5, %v735_v62, %v736_v48  ;;  %v739_v25 = vsel %vm674_vm5, %v736_v48, %v738_v47  ;;  %v4560_v13 = vld [vmem:[#allocation14_spill] sm:$0xff] }
 0x11c   : > { %2762 = vmatmul.msk.bf16.gmra.mxu3 %vm3209_vm3, %v4551_v11  ;;  %v4063_v9 = vpack.c.bf16 %v739_v25, %v737_v43  ;;  %v4084_v62 = vsel %vm394_vm0, 0.0, %v4560_v13  ;;  %1975 = vmatpush.bf16.msra.mxu2 %v2895_v37  ;;  %v741_v43 = vrot.slane %v4555_v6, 2  ;;  %v4563_v25 = vld [vmem:[#allocation15_spill] sm:$0xff]  ;;  %v2911_v6 = vld [vmem:[%s4425_s3 + $0x200] sm:$0xff] }
 0x11d   : > { %4550 = vst [vmem:[#allocation3_spill] sm:$0xff] %v4042_v8  ;;  %1853 = vmatmul.bf16.gmra.mxu0 %v4038_v52 }
 0x11e   : > { %v1636_v21 = vpop.f32.mrf.mxu2  ;;  %2153 = vmatpush.bf16.msra.mxu0 %v2911_v6  ;;  %v2997_v6 = vld [vmem:[%s3097_s27 + $0x78] sm:$0xff]  }
 0x11f   : > { %v1637_v55 = vadd.f32 %v1636_v21, %v1548_v44  ;;  %v1725_v19 = vpop.f32.mrf.mxu3 }
 0x120   : > { %v1549_v57 = vpop.f32.mrf.mxu1 }
 0x121   : > { %v1726_v0 = vadd.f32 %v1725_v19, %v1637_v55  ;;  %v1550_v33 = vadd.f32 %v1549_v57, %v1461_v32  ;;  %v4065_v32 = vpack.c.bf16 %v631_v7, %v629_v14  ;;  %v4559_v57 = vld [vmem:[#allocation12_spill] sm:$0xff]  ;;  %v633_v14 = vrot.slane %v4563_v25, 1 }
 0x122   : > { %v1816_v8 = vpop.f32.mrf.mxu0 }
 0x123   : > { %v4057_v15 = vadd.f32 %v1814_v28, %v1726_v0  ;;  %4557 = vst [vmem:[#allocation7_spill] sm:$0xff] %v4065_v32 }
 0x125   : > { %4556 = vst [vmem:[#allocation8_spill] sm:$0xff] %v4057_v15 }
 0x126   : > { %v1638_v44 = vpop.f32.mrf.mxu2 }
 0x127   : > { %v1639_v21 = vadd.f32 %v1638_v44, %v1550_v33  ;;  %v1727_v11 = vpop.f32.mrf.mxu3  ;;  %v740_v44 = vrot.slane %v508_v36, 2 }
 0x128   : > { %v1552_v40 = vpop.f32.mrf.mxu1 }
 0x129   : > { %v1728_v55 = vadd.f32 %v1727_v11, %v1639_v21  ;;  %v1553_v28 = vadd.f32 %v1552_v40, %v3734_v41  ;;  %v2903_v41 = vld [vmem:[%s4425_s3 + $0x1c0] sm:$0xff]  ;;  %v743_v21 = vrot.slane %v525_v35, 2 }
 0x12a   : > { %v1819_v19 = vpop.f32.mrf.mxu0  ;;  %2064 = vmatpush.bf16.msra.mxu3 %v2903_v41 }
 0x12b   : > { %1591 = vmatmul.bf16.gmra.mxu1 %v4038_v52  ;;  %1680 = vmatmul.bf16.gmra.mxu2 %v4063_v9  ;;  %v4070_v48 = vadd.f32 %v1816_v8, %v1728_v55  ;;  %v4561_v8 = vld [vmem:[#allocation13_spill] sm:$0xff]  ;;  %v744_v35 = vsel %vm674_vm5, %v741_v43, %v743_v21 }
 0x12c   : > { %2766 = vmatmul.msk.bf16.gmra.mxu3 %vm3209_vm3, %v4559_v57  ;;  %v4562_v47 = vrot.slane %v4561_v8, 7  ;;  %v632_v8 = vrot.slane %v4084_v62, 1 }
 0x12d   : > { %4558 = vst [vmem:[#allocation9_spill] sm:$0xff] %v4070_v48  ;;  %1858 = vmatmul.bf16.gmra.mxu0 %v4065_v32 }
 0x12e   : > { %v1641_v11 = vpop.f32.mrf.mxu2  ;;  %v4089_v0 = vsel %vm394_vm0, %v4562_v47, 0.0  ;;  %v634_v37 = vsel %vm561_vm4, %v632_v8, %v633_v14 }
 0x12f   : > { %v1642_v33 = vadd.f32 %v1641_v11, %v1553_v28  ;;  %v1730_v23 = vpop.f32.mrf.mxu3  ;;  %v635_v47 = vrot.slane %v4089_v0, 1  ;;  %v2887_v28 = vld [vmem:[%s4425_s3 + $0x140] sm:$0xff] }
 0x130   : > { %v1554_v7 = vpop.f32.mrf.mxu1  ;;  %1886 = vmatpush.bf16.msra.mxu1 %v2887_v28 }
 0x131   : > { %v1731_v40 = vadd.f32 %v1730_v23, %v1642_v33  ;;  %v1555_v55 = vadd.f32 %v1554_v7, %v3767_v5  ;;  %v742_v5 = vsel %vm674_vm5, %v740_v44, %v741_v43  ;;  %v636_v41 = vsel %vm561_vm4, %v633_v14, %v635_v47  ;;  %v4567_v14 = vld [vmem:[#allocation17_spill] sm:$0xff]  ;;  %v4568_v44 = vld [vmem:[#allocation19_spill] sm:$0xff] }
 0x132   : > { %v1821_v13 = vpop.f32.mrf.mxu0  ;;  %v4108_v7 = vpack.c.bf16 %v744_v35, %v742_v5  ;;  %v4110_v15 = vpack.c.bf16 %v636_v41, %v634_v37  ;;  %v4124_v21 = vsel %vm394_vm0, 0.0, %v4568_v44  ;;  %v2982_v5 = vunpack.c.h.bf16 %v2997_v6  ;;  %v4571_v41 = vld [vmem:[#allocation20_spill] sm:$0xff] }
 0x133   : > { %v4102_v36 = vadd.f32 %v1819_v19, %v1731_v40  ;;  %v637_v44 = vrot.slane %v4124_v21, 1 }
 0x134   : > { %4565 = vst [vmem:[#allocation14_spill] sm:$0xff] %v4108_v7 }
 0x135   : > { %4564 = vst [vmem:[#allocation12_spill] sm:$0xff] %v4102_v36 }
 0x136   : > { %v1643_v11 = vpop.f32.mrf.mxu2 }
 0x137   : > { %v1644_v33 = vadd.f32 %v1643_v11, %v1555_v55  ;;  %v1732_v23 = vpop.f32.mrf.mxu3  ;;  %v2981_v55 = vunpack.c.l.bf16 %v2997_v6  ;;  %v638_v11 = vrot.slane %v4571_v41, 1 }
 0x138   : > { %v1557_v48 = vpop.f32.mrf.mxu1 }
 0x139   : > { %v1733_v28 = vadd.f32 %v1732_v23, %v1644_v33  ;;  %v1558_v19 = vadd.f32 %v1557_v48, %v3789_v42  ;;  %v4569_v48 = vld [vmem:[#allocation18_spill] sm:$0xff]  ;;  %v745_v23 = vrot.slane %v4084_v62, 2 }
 0x13a   : > { %v1824_v40 = vpop.f32.mrf.mxu0  ;;  %v4570_v8 = vrot.slane %v4569_v48, 7 }
 0x13b   : > { %1596 = vmatmul.bf16.gmra.mxu1 %v4065_v32  ;;  %1685 = vmatmul.bf16.gmra.mxu2 %v4108_v7  ;;  %v4116_v43 = vadd.f32 %v1821_v13, %v1733_v28  ;;  %v746_v13 = vrot.slane %v4563_v25, 2  ;;  %v748_v28 = vrot.slane %v4089_v0, 2  ;;  %v3035_v25 = vld [vmem:[%s4423_s1] ss:$0 sm:$0xff]  ;;  %v639_v0 = vsel %vm561_vm4, %v637_v44, %v638_v11 }
 0x13c   : > { %2770 = vmatmul.msk.bf16.gmra.mxu3 %vm3209_vm3, %v4567_v14  ;;  %v527_v47 = vsel %vm394_vm0, %v4570_v8, 0.0  ;;  %v324_v6 = vmul.f32 %v3035_v25, %v2982_v5 }
 0x13d   : > { %4566 = vst [vmem:[#allocation13_spill] sm:$0xff] %v4116_v43  ;;  %1863 = vmatmul.bf16.gmra.mxu0 %v4110_v15  ;;  %v640_v14 = vrot.slane %v527_v47, 1  ;;  %v747_v8 = vsel %vm674_vm5, %v745_v23, %v746_v13  ;;  %v749_v62 = vsel %vm674_vm5, %v746_v13, %v748_v28 }
 0x13e   : > { %v1646_v42 = vpop.f32.mrf.mxu2  ;;  %v4147_v5 = vpack.c.bf16 %v749_v62, %v747_v8  ;;  %v750_v62 = vrot.slane %v4124_v21, 2 }
 0x13f   : > { %v1647_v35 = vadd.f32 %v1646_v42, %v1558_v19  ;;  %v1735_v37 = vpop.f32.mrf.mxu3  ;;  %v323_v19 = vmul.f32 %v3035_v25, %v2981_v55  ;;  %v4573_v25 = vld [vmem:[#allocation22_spill] sm:$0xff] }
 0x140   : > { %v1559_v33 = vpop.f32.mrf.mxu1 }
 0x141   : > { %v1736_v43 = vadd.f32 %v1735_v37, %v1647_v35  ;;  %v1560_v36 = vadd.f32 %v1559_v33, %v3813_v53  ;;  %v641_v35 = vsel %vm561_vm4, %v638_v11, %v640_v14  ;;  %v3036_v53 = vld [vmem:[%s4424_s2] ss:$0 sm:$0xff] }
 0x142   : > { %v1826_v48 = vpop.f32.mrf.mxu0  ;;  %v359_v37 = vadd.f32 %v3036_v53, %v323_v19  ;;  %v360_v7 = vadd.f32 %v3036_v53, %v324_v6 }
 0x143   : > { %v4138_v42 = vadd.f32 %v1824_v40, %v1736_v43  ;;  %v4149_v43 = vpack.c.bf16 %v641_v35, %v639_v0  ;;  %v753_v0 = vrot.slane %v527_v47, 2 }
 0x144   : > { %v442_v44 = vrot.slane %v359_v37, 7  ;;  %v443_v14 = vrot.slane %v360_v7, 7 }
 0x146   : > { %v1648_v33 = vpop.f32.mrf.mxu2  ;;  %v4167_v7 = vsel %vm394_vm0, %v443_v14, 0.0 }
 0x147   : > { %v1649_v32 = vadd.f32 %v1648_v33, %v1560_v36  ;;  %v1737_v55 = vpop.f32.mrf.mxu3  ;;  %v4161_v36 = vsel %vm394_vm0, 0.0, %v442_v44 }
 0x148   : > { %v1562_v40 = vpop.f32.mrf.mxu1  ;;  %v789_v35 = vrot.slane %v4161_v36, 1 }
 0x149   : > { %v1738_v23 = vadd.f32 %v1737_v55, %v1649_v32  ;;  %v1563_v13 = vadd.f32 %v1562_v40, %v3832_v24  ;;  %v4164_v24 = vsel %vm394_vm0, %v442_v44, %v443_v14  ;;  %v792_v40 = vrot.slane %v4167_v7, 1 }
 0x14a   : > { %v1829_v28 = vpop.f32.mrf.mxu0  ;;  %v790_v55 = vrot.slane %v4164_v24, 1 }
 0x14b   : > { %1601 = vmatmul.bf16.gmra.mxu1 %v4110_v15  ;;  %1690 = vmatmul.bf16.gmra.mxu2 %v4147_v5  ;;  %v4154_v11 = vadd.f32 %v1826_v48, %v1738_v23  ;;  %v751_v48 = vrot.slane %v4571_v41, 2 }
 0x14c   : > { %2774 = vmatmul.msk.bf16.gmra.mxu3 %vm3209_vm3, %v4573_v25  ;;  %v791_v14 = vsel %vm561_vm4, %v789_v35, %v790_v55  ;;  %v793_v21 = vsel %vm561_vm4, %v790_v55, %v792_v40 }
 0x14d   : > { %4572 = vst [vmem:[#allocation15_spill] sm:$0xff] %v4154_v11  ;;  %1868 = vmatmul.bf16.gmra.mxu0 %v4149_v43  ;;  %v754_v41 = vsel %vm674_vm5, %v751_v48, %v753_v0  ;;  %v4186_v11 = vpack.c.bf16 %v793_v21, %v791_v14 }
 0x14e   : > { %v1651_v32 = vpop.f32.mrf.mxu2 }
 0x14f   : > { %v1652_v19 = vadd.f32 %v1651_v32, %v1563_v13  ;;  %v1740_v6 = vpop.f32.mrf.mxu3  ;;  %v752_v13 = vsel %vm674_vm5, %v750_v62, %v751_v48 }
 0x150   : > { %v1564_v8 = vpop.f32.mrf.mxu1 }
 0x151   : > { %v1741_v53 = vadd.f32 %v1740_v6, %v1652_v19  ;;  %v1565_v37 = vadd.f32 %v1564_v8, %v3862_v26  ;;  %v4181_v6 = vpack.c.bf16 %v754_v41, %v752_v13  ;;  %v4184_v8 = vpack.c.bf16 %v4164_v24, %v442_v44 }
 0x152   : > { %v1831_v33 = vpop.f32.mrf.mxu0 }
 0x153   : > { %v4175_v23 = vadd.f32 %v1829_v28, %v1741_v53 }
 0x156   : > { %v1653_v47 = vpop.f32.mrf.mxu2 }
 0x157   : > { %v1654_v32 = vadd.f32 %v1653_v47, %v1565_v37  ;;  %v1742_v19 = vpop.f32.mrf.mxu3 }
 0x158   : > { %v1567_v26 = vpop.f32.mrf.mxu1 }
 0x159   : > { %v1743_v28 = vadd.f32 %v1742_v19, %v1654_v32  ;;  %v1568_v62 = vadd.f32 %v1567_v26, %v3887_v51 }
 0x15a   : > { %v1834_v53 = vpop.f32.mrf.mxu0 }
 0x15b   : > { %1606 = vmatmul.bf16.gmra.mxu1 %v4149_v43  ;;  %1695 = vmatmul.bf16.gmra.mxu2 %v4181_v6  ;;  %v4191_v48 = vadd.f32 %v1831_v33, %v1743_v28 }
 0x15c   : > { %2778 = vmatmul.msk.bf16.gmra.mxu3 %vm3209_vm3, %v4184_v8 }
 0x15d   : > { %1873 = vmatmul.bf16.gmra.mxu0 %v4186_v11 }
 0x15e   : > { %v1656_v44 = vpop.f32.mrf.mxu2 }
 0x15f   : > { %v1657_v0 = vadd.f32 %v1656_v44, %v1568_v62  ;;  %v1745_v35 = vpop.f32.mrf.mxu3 }
 0x160   : > { %v1569_v37 = vpop.f32.mrf.mxu1 }
 0x161   : > { %v1746_v55 = vadd.f32 %v1745_v35, %v1657_v0  ;;  %v1570_v51 = vadd.f32 %v1569_v37, %v3911_v30 }
 0x162   : > { %v1836_v40 = vpop.f32.mrf.mxu0 }
 0x163   : > { %v4198_v13 = vadd.f32 %v1834_v53, %v1746_v55 }
 0x166   : > { %v1658_v41 = vpop.f32.mrf.mxu2 }
 0x167   : > { %v1659_v14 = vadd.f32 %v1658_v41, %v1570_v51  ;;  %v1747_v33 = vpop.f32.mrf.mxu3 }
 0x168   : > { %v1572_v21 = vpop.f32.mrf.mxu1 }
 0x169   : > { %v1748_v47 = vadd.f32 %v1747_v33, %v1659_v14  ;;  %v1573_v32 = vadd.f32 %v1572_v21, %v3756_v29 }
 0x16a   : > { %v1839_v19 = vpop.f32.mrf.mxu0 }
 0x16b   : > { %1887 = vmatmul.bf16.vlgmr.msra.gmra.mxu1 %v3650_v4  ;;  %2782 = vmatmul.msk.bf16.vlgmr.msra.gmra.mxu2 %vm3209_vm3, %v3488_v49  ;;  %v4205_v26 = vadd.f32 %v1836_v40, %v1748_v47 }
 0x16c   : > { %2065 = vmatmul.bf16.vlgmr.msra.gmra.mxu3 %v3652_v18 }
 0x16d   : > { %2154 = vmatmul.bf16.vlgmr.msra.gmra.mxu0 %v3670_v1 }
 0x16e   : > { %v1661_v30 = vpop.f32.mrf.mxu2 }
 0x16f   : > { %v1662_v28 = vadd.f32 %v1661_v30, %v1573_v32  ;;  %v1750_v62 = vpop.f32.mrf.mxu3 }
 0x170   : > { %v1574_v53 = vpop.f32.mrf.mxu1 }
 0x171   : > { %v1751_v44 = vadd.f32 %v1750_v62, %v1662_v28  ;;  %v1575_v29 = vadd.f32 %v1574_v53, %v3779_v31 }
 0x172   : > { %v1841_v0 = vpop.f32.mrf.mxu0 }
 0x173   : > { %v4210_v35 = vadd.f32 %v1839_v19, %v1751_v44 }
 0x176   : > { %v1663_v4 = vpop.f32.mrf.mxu2 }
 0x177   : > { %v1664_v37 = vadd.f32 %v1663_v4, %v1575_v29  ;;  %v1752_v55 = vpop.f32.mrf.mxu3 }
 0x178   : > { %v1577_v49 = vpop.f32.mrf.mxu1 }
 0x179   : > { %v1753_v51 = vadd.f32 %v1752_v55, %v1664_v37  ;;  %v1578_v40 = vadd.f32 %v1577_v49, %v3805_v54  ;;  %v4574_v55 = vld [vmem:[#allocation35_spill] sm:$0xff] }
 0x17a   : > { %v1844_v18 = vpop.f32.mrf.mxu0 }
 0x17b   : > { %1892 = vmatmul.bf16.gmra.mxu1 %v3670_v1  ;;  %2786 = vmatmul.msk.bf16.gmra.mxu2 %vm3209_vm3, %v3586_v45  ;;  %v4217_v41 = vadd.f32 %v1841_v0, %v1753_v51 }
 0x17c   : > { %2070 = vmatmul.bf16.gmra.mxu3 %v3672_v39 }
 0x17d   : > { %2159 = vmatmul.bf16.gmra.mxu0 %v3703_v27 }
 0x17e   : > { %v1666_v31 = vpop.f32.mrf.mxu2 }
 0x17f   : > { %v1667_v14 = vadd.f32 %v1666_v31, %v1578_v40  ;;  %v1755_v33 = vpop.f32.mrf.mxu3 }
 0x180   : > { %v1579_v21 = vpop.f32.mrf.mxu1 }
 0x181   : > { %v1756_v47 = vadd.f32 %v1755_v33, %v1667_v14  ;;  %v1580_v54 = vadd.f32 %v1579_v21, %v3822_v56  ;;  %v4575_v14 = vld [vmem:[#allocation39_spill] sm:$0xff]  ;;  %v4576_v21 = vld [vmem:[#allocation10_spill] sm:$0xff] }
 0x182   : > { %v1846_v32 = vpop.f32.mrf.mxu0 }
 0x183   : > { %v4222_v19 = vadd.f32 %v1844_v18, %v1756_v47 }
 0x186   : > { %v1668_v1 = vpop.f32.mrf.mxu2 }
 0x187   : > { %v1669_v30 = vadd.f32 %v1668_v1, %v1580_v54  ;;  %v1757_v28 = vpop.f32.mrf.mxu3  ;;  %v4577_v54 = vld [vmem:[#allocation25_spill] sm:$0xff] }
 0x188   : > { %v1582_v45 = vpop.f32.mrf.mxu1 }
 0x189   : > { %v1758_v62 = vadd.f32 %v1757_v28, %v1669_v30  ;;  %v1583_v53 = vadd.f32 %v1582_v45, %v3854_v12 }
 0x18a   : > { %v1849_v39 = vpop.f32.mrf.mxu0 }
 0x18b   : > { %1897 = vmatmul.bf16.gmra.mxu1 %v3703_v27  ;;  %2790 = vmatmul.msk.bf16.gmra.mxu2 %vm3209_vm3, %v3199_v59  ;;  %v4229_v44 = vadd.f32 %v1846_v32, %v1758_v62  ;;  %v4578_v32 = vld [vmem:[#allocation27_spill] sm:$0xff] }
 0x18c   : > { %2075 = vmatmul.bf16.gmra.mxu3 %v3705_v2 }
 0x18d   : > { %2164 = vmatmul.bf16.gmra.mxu0 %v3729_v46 }
 0x18e   : > { %v1671_v56 = vpop.f32.mrf.mxu2 }
 0x18f   : > { %v1672_v29 = vadd.f32 %v1671_v56, %v1583_v53  ;;  %v1760_v0 = vpop.f32.mrf.mxu3  ;;  %v4579_v53 = vld [vmem:[#allocation41_spill] sm:$0xff] }
 0x190   : > { %v1584_v4 = vpop.f32.mrf.mxu1 }
 0x191   : > { %v1761_v37 = vadd.f32 %v1760_v0, %v1672_v29  ;;  %v1585_v12 = vadd.f32 %v1584_v4, %v4574_v55 }
 0x192   : > { %v1851_v49 = vpop.f32.mrf.mxu0 }
 0x193   : > { %v4234_v51 = vadd.f32 %v1849_v39, %v1761_v37 }
 0x196   : > { %v1673_v27 = vpop.f32.mrf.mxu2 }
 0x197   : > { %v1674_v40 = vadd.f32 %v1673_v27, %v1585_v12  ;;  %v1762_v18 = vpop.f32.mrf.mxu3  ;;  %v4580_v12 = vld [vmem:[#allocation26_spill] sm:$0xff] }
 0x198   : > { %v1587_v59 = vpop.f32.mrf.mxu1 }
 0x199   : > { %v1763_v31 = vadd.f32 %v1762_v18, %v1674_v40  ;;  %v1588_v33 = vadd.f32 %v1587_v59, %v4575_v14  ;;  %v4581_v40 = vld [vmem:[#allocation16_spill] sm:$0xff]  ;;  %v4582_v59 = vld [vmem:[#allocation29_spill] sm:$0xff] }
 0x19a   : > { %v1854_v2 = vpop.f32.mrf.mxu0 }
 0x19b   : > { %1902 = vmatmul.bf16.gmra.mxu1 %v3729_v46  ;;  %2794 = vmatmul.msk.bf16.gmra.mxu2 %vm3209_vm3, %v4576_v21  ;;  %v4241_v47 = vadd.f32 %v1851_v49, %v1763_v31  ;;  %v4583_v31 = vld [vmem:[#allocation31_spill] sm:$0xff] }
 0x19c   : > { %2080 = vmatmul.bf16.gmra.mxu3 %v4577_v54 }
 0x19d   : > { %2169 = vmatmul.bf16.gmra.mxu0 %v4578_v32 }
 0x19e   : > { %v1676_v1 = vpop.f32.mrf.mxu2 }
 0x19f   : > { %v1677_v30 = vadd.f32 %v1676_v1, %v1588_v33  ;;  %v1765_v28 = vpop.f32.mrf.mxu3  ;;  %v4584_v1 = vld [vmem:[#allocation28_spill] sm:$0xff] }
 0x1a0   : > { %v1589_v45 = vpop.f32.mrf.mxu1 }
 0x1a1   : > { %v1766_v62 = vadd.f32 %v1765_v28, %v1677_v30  ;;  %v1590_v39 = vadd.f32 %v1589_v45, %v4579_v53 }
 0x1a2   : > { %v1856_v56 = vpop.f32.mrf.mxu0 }
 0x1a3   : > { %v4246_v29 = vadd.f32 %v1854_v2, %v1766_v62 }
 0x1a6   : > { %v1678_v46 = vpop.f32.mrf.mxu2 }
 0x1a7   : > { %v1679_v0 = vadd.f32 %v1678_v46, %v1590_v39  ;;  %v1767_v4 = vpop.f32.mrf.mxu3  ;;  %v4585_v46 = vld [vmem:[#allocation30_spill] sm:$0xff] }
 0x1a8   : > { %v1592_v37 = vpop.f32.mrf.mxu1 }
 0x1a9   : > { %v1768_v55 = vadd.f32 %v1767_v4, %v1679_v0  ;;  %v1593_v49 = vadd.f32 %v1592_v37, %v4580_v12  ;;  %v4586_v37 = vld [vmem:[#allocation21_spill] sm:$0xff] }
 0x1aa   : > { %v1859_v27 = vpop.f32.mrf.mxu0  ;;  %v4587_v12 = vld [vmem:[#allocation33_spill] sm:$0xff] }
 0x1ab   : > { %1907 = vmatmul.bf16.gmra.mxu1 %v4578_v32  ;;  %2798 = vmatmul.msk.bf16.gmra.mxu2 %vm3209_vm3, %v4581_v40  ;;  %v4253_v18 = vadd.f32 %v1856_v56, %v1768_v55 }
 0x1ac   : > { %2085 = vmatmul.bf16.gmra.mxu3 %v4582_v59 }
 0x1ad   : > { %2174 = vmatmul.bf16.gmra.mxu0 %v4583_v31 }
 0x1ae   : > { %v1681_v14 = vpop.f32.mrf.mxu2 }
 0x1af   : > { %v1682_v33 = vadd.f32 %v1681_v14, %v1593_v49  ;;  %v1770_v2 = vpop.f32.mrf.mxu3  ;;  %v4588_v49 = vld [vmem:[#allocation36_spill] sm:$0xff] }
 0x1b0   : > { %v1594_v21 = vpop.f32.mrf.mxu1 }
 0x1b1   : > { %v1771_v54 = vadd.f32 %v1770_v2, %v1682_v33  ;;  %v1595_v30 = vadd.f32 %v1594_v21, %v4584_v1  ;;  %v4589_v2 = vld [vmem:[#allocation32_spill] sm:$0xff] }
 0x1b2   : > { %v1861_v28 = vpop.f32.mrf.mxu0 }
 0x1b3   : > { %v4258_v45 = vadd.f32 %v1859_v27, %v1771_v54 }
 0x1b6   : > { %v1683_v32 = vpop.f32.mrf.mxu2 }
 0x1b7   : > { %v1684_v62 = vadd.f32 %v1683_v32, %v1595_v30  ;;  %v1772_v53 = vpop.f32.mrf.mxu3 }
 0x1b8   : > { %v1597_v39 = vpop.f32.mrf.mxu1 }
 0x1b9   : > { %v1773_v56 = vadd.f32 %v1772_v53, %v1684_v62  ;;  %v1598_v0 = vadd.f32 %v1597_v39, %v4585_v46  ;;  %v4590_v53 = vld [vmem:[#allocation34_spill] sm:$0xff]  ;;  %v4591_v46 = vld [vmem:[#allocation5_spill] sm:$0xff] }
 0x1ba   : > { %v1864_v4 = vpop.f32.mrf.mxu0 }
 0x1bb   : > { %1912 = vmatmul.bf16.gmra.mxu1 %v4583_v31  ;;  %2802 = vmatmul.msk.bf16.gmra.mxu2 %vm3209_vm3, %v4586_v37  ;;  %v4265_v55 = vadd.f32 %v1861_v28, %v1773_v56  ;;  %v4592_v37 = vld [vmem:[#allocation38_spill] sm:$0xff] }
 0x1bc   : > { %2090 = vmatmul.bf16.gmra.mxu3 %v4587_v12 }
 0x1bd   : > { %2179 = vmatmul.bf16.gmra.mxu0 %v4588_v49 }
 0x1be   : > { %v1686_v27 = vpop.f32.mrf.mxu2 }
 0x1bf   : > { %v1687_v40 = vadd.f32 %v1686_v27, %v1598_v0  ;;  %v1775_v59 = vpop.f32.mrf.mxu3 }
 0x1c0   : > { %v1599_v14 = vpop.f32.mrf.mxu1 }
 0x1c1   : > { %v1776_v33 = vadd.f32 %v1775_v59, %v1687_v40  ;;  %v1600_v21 = vadd.f32 %v1599_v14, %v4589_v2 }
 0x1c2   : > { %v1866_v54 = vpop.f32.mrf.mxu0 }
 0x1c3   : > { %v4270_v1 = vadd.f32 %v1864_v4, %v1776_v33  ;;  %v4593_v4 = vld [vmem:[#allocation42_spill] sm:$0xff]  ;;  %v4594_v33 = vld [vmem:[#allocation37_spill] sm:$0xff] }
 0x1c6   : > { %v1688_v31 = vpop.f32.mrf.mxu2 }
 0x1c7   : > { %v1689_v30 = vadd.f32 %v1688_v31, %v1600_v21  ;;  %v1777_v32 = vpop.f32.mrf.mxu3 }
 0x1c8   : > { %v1602_v62 = vpop.f32.mrf.mxu1 }
 0x1c9   : > { %v1778_v28 = vadd.f32 %v1777_v32, %v1689_v30  ;;  %v1603_v39 = vadd.f32 %v1602_v62, %v4590_v53 }
 0x1ca   : > { %v1869_v56 = vpop.f32.mrf.mxu0 }
 0x1cb   : > { %1917 = vmatmul.bf16.gmra.mxu1 %v4588_v49  ;;  %2806 = vmatmul.msk.bf16.gmra.mxu2 %vm3209_vm3, %v4591_v46  ;;  %v4277_v0 = vadd.f32 %v1866_v54, %v1778_v28  ;;  %v4595_v28 = vld [vmem:[#allocation40_spill] sm:$0xff] }
 0x1cc   : > { %2095 = vmatmul.bf16.gmra.mxu3 %v4592_v37  ;;  %v4596_v37 = vld [vmem:[#allocation11_spill] sm:$0xff] }
 0x1cd   : > { %2184 = vmatmul.bf16.gmra.mxu0 %v4593_v4 }
 0x1ce   : > { %v1691_v12 = vpop.f32.mrf.mxu2 }
 0x1cf   : > { %v1692_v27 = vadd.f32 %v1691_v12, %v1603_v39  ;;  %v1780_v40 = vpop.f32.mrf.mxu3 }
 0x1d0   : > { %v1604_v59 = vpop.f32.mrf.mxu1 }
 0x1d1   : > { %v1781_v14 = vadd.f32 %v1780_v40, %v1692_v27  ;;  %v1605_v2 = vadd.f32 %v1604_v59, %v4594_v33 }
 0x1d2   : > { %v1871_v21 = vpop.f32.mrf.mxu0 }
 0x1d3   : > { %v4282_v31 = vadd.f32 %v1869_v56, %v1781_v14  ;;  %v4597_v14 = vld [vmem:[#allocation43_spill] sm:$0xff] }
 0x1d6   : > { %v1693_v49 = vpop.f32.mrf.mxu2 }
 0x1d7   : > { %v1694_v30 = vadd.f32 %v1693_v49, %v1605_v2  ;;  %v1782_v32 = vpop.f32.mrf.mxu3 }
 0x1d8   : > { %v1607_v62 = vpop.f32.mrf.mxu1 }
 0x1d9   : > { %v1783_v54 = vadd.f32 %v1782_v32, %v1694_v30  ;;  %v1608_v53 = vadd.f32 %v1607_v62, %v4595_v28 }
 0x1da   : > { %v1874_v46 = vpop.f32.mrf.mxu0 }
 0x1db   : > { %1922 = vmatmul.bf16.gmra.mxu1 %v4593_v4  ;;  %2810 = vmatmul.msk.bf16.gmra.mxu2 %vm3209_vm3, %v4596_v37  ;;  %v4289_v39 = vadd.f32 %v1871_v21, %v1783_v54 }
 0x1dc   : > { %2100 = vmatmul.bf16.gmra.mxu3 %v3929_v38 }
 0x1dd   : > { %2189 = vmatmul.bf16.gmra.mxu0 %v3966_v17 }
 0x1de   : > { %v1696_v56 = vpop.f32.mrf.mxu2 }
 0x1df   : > { %v1697_v12 = vadd.f32 %v1696_v56, %v1608_v53  ;;  %v1785_v27 = vpop.f32.mrf.mxu3 }
 0x1e0   : > { %v1609_v40 = vpop.f32.mrf.mxu1 }
 0x1e1   : > { %v1786_v59 = vadd.f32 %v1785_v27, %v1697_v12  ;;  %v1610_v33 = vadd.f32 %v1609_v40, %v4597_v14 }
 0x1e2   : > { %v1876_v2 = vpop.f32.mrf.mxu0 }
 0x1e3   : > { %v4294_v49 = vadd.f32 %v1874_v46, %v1786_v59 }
 0x1e6   : > { %v1698_v4 = vpop.f32.mrf.mxu2 }
 0x1e7   : > { %v1699_v30 = vadd.f32 %v1698_v4, %v1610_v33  ;;  %v1787_v32 = vpop.f32.mrf.mxu3 }
 0x1e8   : > { %v1888_v21 = vpop.f32.mrf.mxu1 }
 0x1e9   : > { %v1788_v62 = vadd.f32 %v1787_v32, %v1699_v30  ;;  %v1889_v28 = vadd.f32 %v1888_v21, %v3958_v61 }
 0x1ea   : > { %v2155_v54 = vpop.f32.mrf.mxu0 }
 0x1eb   : > { %1927 = vmatmul.bf16.gmra.mxu1 %v3966_v17  ;;  %2814 = vmatmul.msk.bf16.gmra.mxu2 %vm3209_vm3, %v3478_v50  ;;  %v4300_v38 = vadd.f32 %v1876_v2, %v1788_v62 }
 0x1ec   : > { %2105 = vmatmul.bf16.gmra.mxu3 %v3968_v60 }
 0x1ed   : > { %2194 = vmatmul.bf16.gmra.mxu0 %v3995_v22 }
 0x1ee   : > { %v1977_v53 = vpop.f32.mrf.mxu2 }
 0x1ef   : > { %v1978_v46 = vadd.f32 %v1977_v53, %v1889_v28  ;;  %v2066_v37 = vpop.f32.mrf.mxu3 }
 0x1f0   : > { %v1890_v56 = vpop.f32.mrf.mxu1 }
 0x1f1   : > { %v2067_v12 = vadd.f32 %v2066_v37, %v1978_v46  ;;  %v1891_v60 = vadd.f32 %v1890_v56, %v3972_v16 }
 0x1f2   : > { %v2157_v27 = vpop.f32.mrf.mxu0 }
 0x1f3   : > { %v2156_v17 = vadd.f32 %v2155_v54, %v2067_v12 }
 0x1f5   : > { %v2235_v50 = vmax.f32 %v2156_v17, 0.0 }
 0x1f6   : > { %v1979_v40 = vpop.f32.mrf.mxu2 }
 0x1f7   : > { %2267 = vst [vmem:[%s4309_s25] sm:$0xff] %v2235_v50  ;;  %v1980_v61 = vadd.f32 %v1979_v40, %v1891_v60  ;;  %v2068_v59 = vpop.f32.mrf.mxu3  ;;  %v4598_v50 = vld [vmem:[#allocation6_spill] sm:$0xff] }
 0x1f8   : > { %v1893_v14 = vpop.f32.mrf.mxu1  ;;  %v4599_v60 = vld [vmem:[#allocation2_spill] sm:$0xff] }
 0x1f9   : > { %v2069_v33 = vadd.f32 %v2068_v59, %v1980_v61  ;;  %v1894_v30 = vadd.f32 %v1893_v14, %v3987_v34 }
 0x1fa   : > { %v2160_v2 = vpop.f32.mrf.mxu0 }
 0x1fb   : > { %v2158_v4 = vadd.f32 %v2157_v27, %v2069_v33  ;;  %1932 = vmatmul.bf16.gmra.mxu1 %v3995_v22  ;;  %2818 = vmatmul.msk.bf16.gmra.mxu2 %vm3209_vm3, %v3578_v10 }
 0x1fc   : > { %2110 = vmatmul.bf16.gmra.mxu3 %v3997_v58 }
 0x1fd   : > { %2199 = vmatmul.bf16.gmra.mxu0 %v4036_v3  ;;  %v2236_v16 = vmax.f32 %v2158_v4, 0.0 }
 0x1fe   : > { %v1982_v32 = vpop.f32.mrf.mxu2 }
 0x1ff   : > { %2268 = vst [vmem:[%s4309_s25 + $0x8] sm:$0xff] %v2236_v16  ;;  %v1983_v21 = vadd.f32 %v1982_v32, %v1894_v30  ;;  %v2071_v62 = vpop.f32.mrf.mxu3  ;;  %v4600_v30 = vld [vmem:[#allocation3_spill] sm:$0xff] }
 0x200   : > { %v1895_v54 = vpop.f32.mrf.mxu1 }
 0x201   : > { %v2072_v28 = vadd.f32 %v2071_v62, %v1983_v21  ;;  %v1896_v37 = vadd.f32 %v1895_v54, %v4001_v20 }
 0x202   : > { %v2162_v53 = vpop.f32.mrf.mxu0 }
 0x203   : > { %v2161_v22 = vadd.f32 %v2160_v2, %v2072_v28 }
 0x205   : > { %v2237_v46 = vmax.f32 %v2161_v22, 0.0 }
 0x206   : > { %v1984_v10 = vpop.f32.mrf.mxu2 }
 0x207   : > { %2269 = vst [vmem:[%s4309_s25 + $0x10] sm:$0xff] %v2237_v46  ;;  %v1985_v58 = vadd.f32 %v1984_v10, %v1896_v37  ;;  %v2073_v56 = vpop.f32.mrf.mxu3  ;;  %v4601_v46 = vld [vmem:[#allocation7_spill] sm:$0xff]  ;;  %v4602_v37 = vld [vmem:[#allocation14_spill] sm:$0xff] }
 0x208   : > { %v1898_v12 = vpop.f32.mrf.mxu1 }
 0x209   : > { %v2074_v27 = vadd.f32 %v2073_v56, %v1985_v58  ;;  %v1899_v40 = vadd.f32 %v1898_v12, %v4599_v60  ;;  %v4603_v58 = vld [vmem:[#allocation8_spill] sm:$0xff] }
 0x20a   : > { %v2165_v17 = vpop.f32.mrf.mxu0 }
 0x20b   : > { %v2163_v34 = vadd.f32 %v2162_v53, %v2074_v27  ;;  %1937 = vmatmul.bf16.gmra.mxu1 %v4036_v3  ;;  %2822 = vmatmul.msk.bf16.gmra.mxu2 %vm3209_vm3, %v4598_v50 }
 0x20c   : > { %2115 = vmatmul.bf16.gmra.mxu3 %v4038_v52 }
 0x20d   : > { %2204 = vmatmul.bf16.gmra.mxu0 %v4063_v9  ;;  %v2238_v20 = vmax.f32 %v2163_v34, 0.0 }
 0x20e   : > { %v1987_v61 = vpop.f32.mrf.mxu2 }
 0x20f   : > { %2270 = vst [vmem:[%s4309_s25 + $0x18] sm:$0xff] %v2238_v20  ;;  %v1988_v59 = vadd.f32 %v1987_v61, %v1899_v40  ;;  %v2076_v14 = vpop.f32.mrf.mxu3  ;;  %v4604_v40 = vld [vmem:[#allocation9_spill] sm:$0xff] }
 0x210   : > { %v1900_v33 = vpop.f32.mrf.mxu1 }
 0x211   : > { %v2077_v2 = vadd.f32 %v2076_v14, %v1988_v59  ;;  %v1901_v32 = vadd.f32 %v1900_v33, %v4600_v30 }
 0x212   : > { %v2167_v4 = vpop.f32.mrf.mxu0 }
 0x213   : > { %v2166_v3 = vadd.f32 %v2165_v17, %v2077_v2 }
 0x215   : > { %v2239_v16 = vmax.f32 %v2166_v3, 0.0 }
 0x216   : > { %v1989_v21 = vpop.f32.mrf.mxu2 }
 0x217   : > { %2271 = vst [vmem:[%s4309_s25 + $0x20] sm:$0xff] %v2239_v16  ;;  %v1990_v52 = vadd.f32 %v1989_v21, %v1901_v32  ;;  %v2078_v62 = vpop.f32.mrf.mxu3  ;;  %v4605_v16 = vld [vmem:[#allocation17_spill] sm:$0xff]  ;;  %v4606_v32 = vld [vmem:[#allocation12_spill] sm:$0xff] }
 0x218   : > { %v1903_v54 = vpop.f32.mrf.mxu1 }
 0x219   : > { %v2079_v28 = vadd.f32 %v2078_v62, %v1990_v52  ;;  %v1904_v56 = vadd.f32 %v1903_v54, %v4603_v58 }
 0x21a   : > { %v2170_v53 = vpop.f32.mrf.mxu0 }
 0x21b   : > { %v2168_v22 = vadd.f32 %v2167_v4, %v2079_v28  ;;  %1942 = vmatmul.bf16.gmra.mxu1 %v4063_v9  ;;  %2826 = vmatmul.msk.bf16.gmra.mxu2 %vm3209_vm3, %v4559_v57 }
 0x21c   : > { %2120 = vmatmul.bf16.gmra.mxu3 %v4601_v46 }
 0x21d   : > { %2209 = vmatmul.bf16.gmra.mxu0 %v4602_v37  ;;  %v2240_v10 = vmax.f32 %v2168_v22, 0.0 }
 0x21e   : > { %v1992_v12 = vpop.f32.mrf.mxu2 }
 0x21f   : > { %2272 = vst [vmem:[%s4309_s25 + $0x28] sm:$0xff] %v2240_v10  ;;  %v1993_v27 = vadd.f32 %v1992_v12, %v1904_v56  ;;  %v2081_v17 = vpop.f32.mrf.mxu3  ;;  %v4607_v10 = vld [vmem:[#allocation13_spill] sm:$0xff] }
 0x220   : > { %v1905_v34 = vpop.f32.mrf.mxu1 }
 0x221   : > { %v2082_v50 = vadd.f32 %v2081_v17, %v1993_v27  ;;  %v1906_v61 = vadd.f32 %v1905_v34, %v4604_v40 }
 0x222   : > { %v2172_v20 = vpop.f32.mrf.mxu0 }
 0x223   : > { %v2171_v9 = vadd.f32 %v2170_v53, %v2082_v50 }
 0x225   : > { %v2241_v60 = vmax.f32 %v2171_v9, 0.0 }
 0x226   : > { %v1994_v57 = vpop.f32.mrf.mxu2 }
 0x227   : > { %2273 = vst [vmem:[%s4309_s25 + $0x30] sm:$0xff] %v2241_v60  ;;  %v1995_v59 = vadd.f32 %v1994_v57, %v1906_v61  ;;  %v2083_v14 = vpop.f32.mrf.mxu3 }
 0x228   : > { %v1908_v33 = vpop.f32.mrf.mxu1 }
 0x229   : > { %v2084_v2 = vadd.f32 %v2083_v14, %v1995_v59  ;;  %v1909_v21 = vadd.f32 %v1908_v33, %v4606_v32  ;;  %v797_v33 = vrot.slane %v4164_v24, 2 }
 0x22a   : > { %v2175_v4 = vpop.f32.mrf.mxu0 }
 0x22b   : > { %v2173_v3 = vadd.f32 %v2172_v20, %v2084_v2  ;;  %1947 = vmatmul.bf16.gmra.mxu1 %v4602_v37  ;;  %2830 = vmatmul.msk.bf16.gmra.mxu2 %vm3209_vm3, %v4605_v16 }
 0x22c   : > { %2125 = vmatmul.bf16.gmra.mxu3 %v4110_v15 }
 0x22d   : > { %2214 = vmatmul.bf16.gmra.mxu0 %v4147_v5  ;;  %v2242_v30 = vmax.f32 %v2173_v3, 0.0 }
 0x22e   : > { %v1997_v52 = vpop.f32.mrf.mxu2 }
 0x22f   : > { %2274 = vst [vmem:[%s4309_s25 + $0x38] sm:$0xff] %v2242_v30  ;;  %v1998_v62 = vadd.f32 %v1997_v52, %v1909_v21  ;;  %v2086_v54 = vpop.f32.mrf.mxu3 }
 0x230   : > { %v1910_v28 = vpop.f32.mrf.mxu1 }
 0x231   : > { %v2087_v53 = vadd.f32 %v2086_v54, %v1998_v62  ;;  %v1911_v58 = vadd.f32 %v1910_v28, %v4607_v10 }
 0x232   : > { %v2177_v22 = vpop.f32.mrf.mxu0 }
 0x233   : > { %v2176_v46 = vadd.f32 %v2175_v4, %v2087_v53  ;;  %v4608_v4 = vld [vmem:[#allocation15_spill] sm:$0xff] }
 0x235   : > { %v2243_v37 = vmax.f32 %v2176_v46, 0.0 }
 0x236   : > { %v1999_v56 = vpop.f32.mrf.mxu2 }
 0x237   : > { %2275 = vst [vmem:[%s4309_s25 + $0x40] sm:$0xff] %v2243_v37  ;;  %v2000_v15 = vadd.f32 %v1999_v56, %v1911_v58  ;;  %v2088_v12 = vpop.f32.mrf.mxu3 }
 0x238   : > { %v1913_v27 = vpop.f32.mrf.mxu1 }
 0x239   : > { %v2089_v17 = vadd.f32 %v2088_v12, %v2000_v15  ;;  %v1914_v9 = vadd.f32 %v1913_v27, %v4138_v42 }
 0x23a   : > { %v2180_v34 = vpop.f32.mrf.mxu0 }
 0x23b   : > { %v2178_v50 = vadd.f32 %v2177_v22, %v2089_v17  ;;  %1952 = vmatmul.bf16.gmra.mxu1 %v4147_v5  ;;  %2834 = vmatmul.msk.bf16.gmra.mxu2 %vm3209_vm3, %v4573_v25  ;;  %v796_v5 = vrot.slane %v4161_v36, 2  ;;  %v799_v25 = vrot.slane %v4167_v7, 2 }
 0x23c   : > { %2130 = vmatmul.bf16.gmra.mxu3 %v4149_v43 }
 0x23d   : > { %2219 = vmatmul.bf16.gmra.mxu0 %v4181_v6  ;;  %v2244_v20 = vmax.f32 %v2178_v50, 0.0  ;;  %v798_v42 = vsel %vm674_vm5, %v796_v5, %v797_v33  ;;  %v800_v16 = vsel %vm674_vm5, %v797_v33, %v799_v25  ;;  %v4609_v50 = vld [vmem:[#allocation4_spill] sm:$0xff] }
 0x23e   : > { %v2002_v60 = vpop.f32.mrf.mxu2  ;;  %v853_v62 = vpack.c.bf16 %v800_v16, %v798_v42 }
 0x23f   : > { %2276 = vst [vmem:[%s4309_s25 + $0x48] sm:$0xff] %v2244_v20  ;;  %v2003_v40 = vadd.f32 %v2002_v60, %v1914_v9  ;;  %v2091_v61 = vpop.f32.mrf.mxu3  ;;  %v4610_v20 = vld [vmem:[#allocation23_spill] sm:$0xff]  ;;  %v4611_v9 = vld [vmem:[#allocation24_spill] sm:$0xff] }
 0x240   : > { %v1915_v57 = vpop.f32.mrf.mxu1 }
 0x241   : > { %v2092_v59 = vadd.f32 %v2091_v61, %v2003_v40  ;;  %v1916_v3 = vadd.f32 %v1915_v57, %v4608_v4 }
 0x242   : > { %v2182_v14 = vpop.f32.mrf.mxu0 }
 0x243   : > { %v2181_v43 = vadd.f32 %v2180_v34, %v2092_v59 }
 0x245   : > { %v2245_v2 = vmax.f32 %v2181_v43, 0.0 }
 0x246   : > { %v2004_v30 = vpop.f32.mrf.mxu2 }
 0x247   : > { %2277 = vst [vmem:[%s4309_s25 + $0x50] sm:$0xff] %v2245_v2  ;;  %v2005_v32 = vadd.f32 %v2004_v30, %v1916_v3  ;;  %v2093_v21 = vpop.f32.mrf.mxu3 }
 0x248   : > { %v1918_v52 = vpop.f32.mrf.mxu1 }
 0x249   : > { %v2094_v36 = vadd.f32 %v2093_v21, %v2005_v32  ;;  %v1919_v28 = vadd.f32 %v1918_v52, %v4175_v23 }
 0x24a   : > { %v2185_v54 = vpop.f32.mrf.mxu0 }
 0x24b   : > { %v2183_v24 = vadd.f32 %v2182_v14, %v2094_v36  ;;  %1957 = vmatmul.bf16.gmra.mxu1 %v4181_v6  ;;  %2838 = vmatmul.msk.bf16.gmra.mxu2 %vm3209_vm3, %v4184_v8 }
 0x24c   : > { %2135 = vmatmul.bf16.gmra.mxu3 %v4186_v11 }
 0x24d   : > { %2224 = vmatmul.bf16.gmra.mxu0 %v853_v62  ;;  %v2246_v7 = vmax.f32 %v2183_v24, 0.0 }
 0x24e   : > { %v2007_v53 = vpop.f32.mrf.mxu2 }
 0x24f   : > { %2278 = vst [vmem:[%s4309_s25 + $0x58] sm:$0xff] %v2246_v7  ;;  %v2008_v22 = vadd.f32 %v2007_v53, %v1919_v28  ;;  %v2096_v46 = vpop.f32.mrf.mxu3 }
 0x250   : > { %v1920_v37 = vpop.f32.mrf.mxu1 }
 0x251   : > { %v2097_v10 = vadd.f32 %v2096_v46, %v2008_v22  ;;  %v1921_v15 = vadd.f32 %v1920_v37, %v4191_v48 }
 0x252   : > { %v2187_v58 = vpop.f32.mrf.mxu0 }
 0x253   : > { %v2186_v56 = vadd.f32 %v2185_v54, %v2097_v10 }
 0x255   : > { %v2247_v6 = vmax.f32 %v2186_v56, 0.0 }
 0x256   : > { %v2009_v8 = vpop.f32.mrf.mxu2 }
 0x257   : > { %2279 = vst [vmem:[%s4309_s25 + $0x60] sm:$0xff] %v2247_v6  ;;  %v2010_v12 = vadd.f32 %v2009_v8, %v1921_v15  ;;  %v2098_v11 = vpop.f32.mrf.mxu3 }
 0x258   : > { %v1923_v27 = vpop.f32.mrf.mxu1 }
 0x259   : > { %v2099_v17 = vadd.f32 %v2098_v11, %v2010_v12  ;;  %v1924_v60 = vadd.f32 %v1923_v27, %v4198_v13 }
 0x25a   : > { %v2190_v34 = vpop.f32.mrf.mxu0 }
 0x25b   : > { %v2188_v23 = vadd.f32 %v2187_v58, %v2099_v17  ;;  %1962 = vmatmul.bf16.gmra.mxu1 %v853_v62  ;;  %2842 = vmatmul.msk.bf16.gmra.mxu2 %vm3209_vm3, %v4609_v50 }
 0x25c   : > { %2140 = vmatmul.bf16.gmra.mxu3 %v4610_v20 }
 0x25d   : > { %2229 = vmatmul.bf16.gmra.mxu0 %v4611_v9  ;;  %v2248_v48 = vmax.f32 %v2188_v23, 0.0 }
 0x25e   : > { %v2012_v40 = vpop.f32.mrf.mxu2 }
 0x25f   : > { %2280 = vst [vmem:[%s4309_s25 + $0x68] sm:$0xff] %v2248_v48  ;;  %v2013_v61 = vadd.f32 %v2012_v40, %v1924_v60  ;;  %v2101_v57 = vpop.f32.mrf.mxu3 }
 0x260   : > { %v1925_v59 = vpop.f32.mrf.mxu1 }
 0x261   : > { %v2102_v14 = vadd.f32 %v2101_v57, %v2013_v61  ;;  %v1926_v63 = vadd.f32 %v1925_v59, %v4205_v26 }
 0x262   : > { %v2192_v5 = vpop.f32.mrf.mxu0 }
 0x263   : > { %v2191_v33 = vadd.f32 %v2190_v34, %v2102_v14 }
 0x265   : > { %v2249_v25 = vmax.f32 %v2191_v33, 0.0 }
 0x266   : > { %v2014_v43 = vpop.f32.mrf.mxu2 }
 0x267   : > { %2281 = vst [vmem:[%s4309_s25 + $0x70] sm:$0xff] %v2249_v25  ;;  %v2015_v2 = vadd.f32 %v2014_v43, %v1926_v63  ;;  %v2103_v4 = vpop.f32.mrf.mxu3 }
 0x268   : > { %v1928_v3 = vpop.f32.mrf.mxu1 }
 0x269   : > { %v2104_v42 = vadd.f32 %v2103_v4, %v2015_v2  ;;  %v1929_v32 = vadd.f32 %v1928_v3, %v4210_v35 }
 0x26a   : > { %v2195_v13 = vpop.f32.mrf.mxu0 }
 0x26b   : > { %v2193_v16 = vadd.f32 %v2192_v5, %v2104_v42 }
 0x26d   : > { %v2250_v30 = vmax.f32 %v2193_v16, 0.0 }
 0x26e   : > { %v2017_v21 = vpop.f32.mrf.mxu2 }
 0x26f   : > { %2282 = vst [vmem:[%s4309_s25 + $0x78] sm:$0xff] %v2250_v30  ;;  %v2018_v52 = vadd.f32 %v2017_v21, %v1929_v32  ;;  %v2106_v62 = vpop.f32.mrf.mxu3 }
 0x270   : > { %v1930_v36 = vpop.f32.mrf.mxu1 }
 0x271   : > { %v2107_v54 = vadd.f32 %v2106_v62, %v2018_v52  ;;  %v1931_v28 = vadd.f32 %v1930_v36, %v4217_v41 }
 0x272   : > { %v2197_v26 = vpop.f32.mrf.mxu0 }
 0x273   : > { %v2196_v24 = vadd.f32 %v2195_v13, %v2107_v54 }
 0x275   : > { %v2251_v7 = vmax.f32 %v2196_v24, 0.0 }
 0x276   : > { %v2019_v53 = vpop.f32.mrf.mxu2 }
 0x277   : > { %2283 = vst [vmem:[%s4309_s25 + $0x80] sm:$0xff] %v2251_v7  ;;  %v2020_v22 = vadd.f32 %v2019_v53, %v1931_v28  ;;  %v2108_v46 = vpop.f32.mrf.mxu3 }
 0x278   : > { %v1933_v37 = vpop.f32.mrf.mxu1 }
 0x279   : > { %v2109_v10 = vadd.f32 %v2108_v46, %v2020_v22  ;;  %v1934_v6 = vadd.f32 %v1933_v37, %v4222_v19 }
 0x27a   : > { %v2200_v35 = vpop.f32.mrf.mxu0 }
 0x27b   : > { %v2198_v58 = vadd.f32 %v2197_v26, %v2109_v10 }
 0x27d   : > { %v2252_v56 = vmax.f32 %v2198_v58, 0.0 }
 0x27e   : > { %v2022_v15 = vpop.f32.mrf.mxu2 }
 0x27f   : > { %2284 = vst [vmem:[%s4309_s25 + $0x88] sm:$0xff] %v2252_v56  ;;  %v2023_v8 = vadd.f32 %v2022_v15, %v1934_v6  ;;  %v2111_v12 = vpop.f32.mrf.mxu3 }
 0x280   : > { %v1935_v11 = vpop.f32.mrf.mxu1 }
 0x281   : > { %v2112_v27 = vadd.f32 %v2111_v12, %v2023_v8  ;;  %v1936_v23 = vadd.f32 %v1935_v11, %v4229_v44 }
 0x282   : > { %v2202_v41 = vpop.f32.mrf.mxu0 }
 0x283   : > { %v2201_v17 = vadd.f32 %v2200_v35, %v2112_v27 }
 0x285   : > { %v2253_v34 = vmax.f32 %v2201_v17, 0.0 }
 0x286   : > { %v2024_v50 = vpop.f32.mrf.mxu2 }
 0x287   : > { %2285 = vst [vmem:[%s4309_s25 + $0x90] sm:$0xff] %v2253_v34  ;;  %v2025_v20 = vadd.f32 %v2024_v50, %v1936_v23  ;;  %v2113_v9 = vpop.f32.mrf.mxu3 }
 0x288   : > { %v1938_v48 = vpop.f32.mrf.mxu1 }
 0x289   : > { %v2114_v60 = vadd.f32 %v2113_v9, %v2025_v20  ;;  %v1939_v57 = vadd.f32 %v1938_v48, %v4234_v51 }
 0x28a   : > { %v2205_v19 = vpop.f32.mrf.mxu0 }
 0x28b   : > { %v2203_v40 = vadd.f32 %v2202_v41, %v2114_v60 }
 0x28d   : > { %v2254_v61 = vmax.f32 %v2203_v40, 0.0 }
 0x28e   : > { %v2027_v59 = vpop.f32.mrf.mxu2 }
 0x28f   : > { %2286 = vst [vmem:[%s4309_s25 + $0x98] sm:$0xff] %v2254_v61  ;;  %v2028_v14 = vadd.f32 %v2027_v59, %v1939_v57  ;;  %v2116_v5 = vpop.f32.mrf.mxu3 }
 0x290   : > { %v1940_v33 = vpop.f32.mrf.mxu1 }
 0x291   : > { %v2117_v25 = vadd.f32 %v2116_v5, %v2028_v14  ;;  %v1941_v2 = vadd.f32 %v1940_v33, %v4241_v47 }
 0x292   : > { %v2207_v44 = vpop.f32.mrf.mxu0 }
 0x293   : > { %v2206_v63 = vadd.f32 %v2205_v19, %v2117_v25 }
 0x295   : > { %v2255_v43 = vmax.f32 %v2206_v63, 0.0 }
 0x296   : > { %v2029_v4 = vpop.f32.mrf.mxu2 }
 0x297   : > { %2287 = vst [vmem:[%s4309_s25 + $0xa0] sm:$0xff] %v2255_v43  ;;  %v2030_v3 = vadd.f32 %v2029_v4, %v1941_v2  ;;  %v2118_v42 = vpop.f32.mrf.mxu3 }
 0x298   : > { %v1943_v13 = vpop.f32.mrf.mxu1 }
 0x299   : > { %v2119_v16 = vadd.f32 %v2118_v42, %v2030_v3  ;;  %v1944_v21 = vadd.f32 %v1943_v13, %v4246_v29 }
 0x29a   : > { %v2210_v51 = vpop.f32.mrf.mxu0 }
 0x29b   : > { %v2208_v30 = vadd.f32 %v2207_v44, %v2119_v16 }
 0x29d   : > { %v2256_v32 = vmax.f32 %v2208_v30, 0.0 }
 0x29e   : > { %v2032_v52 = vpop.f32.mrf.mxu2 }
 0x29f   : > { %2288 = vst [vmem:[%s4309_s25 + $0xa8] sm:$0xff] %v2256_v32  ;;  %v2033_v62 = vadd.f32 %v2032_v52, %v1944_v21  ;;  %v2121_v36 = vpop.f32.mrf.mxu3 }
 0x2a0   : > { %v1945_v54 = vpop.f32.mrf.mxu1 }
 0x2a1   : > { %v2122_v26 = vadd.f32 %v2121_v36, %v2033_v62  ;;  %v1946_v28 = vadd.f32 %v1945_v54, %v4253_v18 }
 0x2a2   : > { %v2212_v47 = vpop.f32.mrf.mxu0 }
 0x2a3   : > { %v2211_v24 = vadd.f32 %v2210_v51, %v2122_v26 }
 0x2a5   : > { %v2257_v7 = vmax.f32 %v2211_v24, 0.0 }
 0x2a6   : > { %v2034_v53 = vpop.f32.mrf.mxu2 }
 0x2a7   : > { %2289 = vst [vmem:[%s4309_s25 + $0xb0] sm:$0xff] %v2257_v7  ;;  %v2035_v22 = vadd.f32 %v2034_v53, %v1946_v28  ;;  %v2123_v46 = vpop.f32.mrf.mxu3 }
 0x2a8   : > { %v1948_v37 = vpop.f32.mrf.mxu1 }
 0x2a9   : > { %v2124_v10 = vadd.f32 %v2123_v46, %v2035_v22  ;;  %v1949_v56 = vadd.f32 %v1948_v37, %v4258_v45 }
 0x2aa   : > { %v2215_v29 = vpop.f32.mrf.mxu0 }
 0x2ab   : > { %v2213_v35 = vadd.f32 %v2212_v47, %v2124_v10 }
 0x2ad   : > { %v2258_v58 = vmax.f32 %v2213_v35, 0.0 }
 0x2ae   : > { %v2037_v6 = vpop.f32.mrf.mxu2 }
 0x2af   : > { %2290 = vst [vmem:[%s4309_s25 + $0xb8] sm:$0xff] %v2258_v58  ;;  %v2038_v15 = vadd.f32 %v2037_v6, %v1949_v56  ;;  %v2126_v8 = vpop.f32.mrf.mxu3 }
 0x2b0   : > { %v1950_v12 = vpop.f32.mrf.mxu1 }
 0x2b1   : > { %v2127_v11 = vadd.f32 %v2126_v8, %v2038_v15  ;;  %v1951_v17 = vadd.f32 %v1950_v12, %v4265_v55 }
 0x2b2   : > { %v2217_v18 = vpop.f32.mrf.mxu0 }
 0x2b3   : > { %v2216_v27 = vadd.f32 %v2215_v29, %v2127_v11 }
 0x2b5   : > { %v2259_v41 = vmax.f32 %v2216_v27, 0.0 }
 0x2b6   : > { %v2039_v34 = vpop.f32.mrf.mxu2 }
 0x2b7   : > { %2291 = vst [vmem:[%s4309_s25 + $0xc0] sm:$0xff] %v2259_v41  ;;  %v2040_v23 = vadd.f32 %v2039_v34, %v1951_v17  ;;  %v2128_v50 = vpop.f32.mrf.mxu3 }
 0x2b8   : > { %v1953_v20 = vpop.f32.mrf.mxu1 }
 0x2b9   : > { %v2129_v9 = vadd.f32 %v2128_v50, %v2040_v23  ;;  %v1954_v19 = vadd.f32 %v1953_v20, %v4270_v1 }
 0x2ba   : > { %v2220_v45 = vpop.f32.mrf.mxu0 }
 0x2bb   : > { %v2218_v48 = vadd.f32 %v2217_v18, %v2129_v9 }
 0x2bd   : > { %v2260_v60 = vmax.f32 %v2218_v48, 0.0 }
 0x2be   : > { %v2042_v40 = vpop.f32.mrf.mxu2 }
 0x2bf   : > { %2292 = vst [vmem:[%s4309_s25 + $0xc8] sm:$0xff] %v2260_v60  ;;  %v2043_v61 = vadd.f32 %v2042_v40, %v1954_v19  ;;  %v2131_v57 = vpop.f32.mrf.mxu3 }
 0x2c0   : > { %v1955_v59 = vpop.f32.mrf.mxu1 }
 0x2c1   : > { %v2132_v14 = vadd.f32 %v2131_v57, %v2043_v61  ;;  %v1956_v25 = vadd.f32 %v1955_v59, %v4277_v0 }
 0x2c2   : > { %v2222_v55 = vpop.f32.mrf.mxu0 }
 0x2c3   : > { %v2221_v5 = vadd.f32 %v2220_v45, %v2132_v14 }
 0x2c5   : > { %v2261_v33 = vmax.f32 %v2221_v5, 0.0 }
 0x2c6   : > { %v2044_v44 = vpop.f32.mrf.mxu2 }
 0x2c7   : > { %2293 = vst [vmem:[%s4309_s25 + $0xd0] sm:$0xff] %v2261_v33  ;;  %v2045_v63 = vadd.f32 %v2044_v44, %v1956_v25  ;;  %v2133_v43 = vpop.f32.mrf.mxu3 }
 0x2c8   : > { %v1958_v2 = vpop.f32.mrf.mxu1 }
 0x2c9   : > { %v2134_v4 = vadd.f32 %v2133_v43, %v2045_v63  ;;  %v1959_v13 = vadd.f32 %v1958_v2, %v4282_v31 }
 0x2ca   : > { %v2225_v3 = vpop.f32.mrf.mxu0 }
 0x2cb   : > { %v2223_v1 = vadd.f32 %v2222_v55, %v2134_v4 }
 0x2cd   : > { %v2262_v42 = vmax.f32 %v2223_v1, 0.0 }
 0x2ce   : > { %v2047_v16 = vpop.f32.mrf.mxu2 }
 0x2cf   : > { %2294 = vst [vmem:[%s4309_s25 + $0xd8] sm:$0xff] %v2262_v42  ;;  %v2048_v51 = vadd.f32 %v2047_v16, %v1959_v13  ;;  %v2136_v30 = vpop.f32.mrf.mxu3 }
 0x2d0   : > { %v1960_v32 = vpop.f32.mrf.mxu1 }
 0x2d1   : > { %v2137_v21 = vadd.f32 %v2136_v30, %v2048_v51  ;;  %v1961_v62 = vadd.f32 %v1960_v32, %v4289_v39 }
 0x2d2   : > { %v2227_v36 = vpop.f32.mrf.mxu0 }
 0x2d3   : > { %v2226_v0 = vadd.f32 %v2225_v3, %v2137_v21 }
 0x2d5   : > { %v2263_v52 = vmax.f32 %v2226_v0, 0.0 }
 0x2d6   : > { %v2049_v54 = vpop.f32.mrf.mxu2 }
 0x2d7   : > { %2295 = vst [vmem:[%s4309_s25 + $0xe0] sm:$0xff] %v2263_v52  ;;  %v2050_v26 = vadd.f32 %v2049_v54, %v1961_v62  ;;  %v2138_v47 = vpop.f32.mrf.mxu3 }
 0x2d8   : > { %v1963_v24 = vpop.f32.mrf.mxu1 }
 0x2d9   : > { %v2139_v7 = vadd.f32 %v2138_v47, %v2050_v26  ;;  %v1964_v53 = vadd.f32 %v1963_v24, %v4294_v49 }
 0x2da   : > { %v2230_v10 = vpop.f32.mrf.mxu0 }
 0x2db   : > { %v2228_v31 = vadd.f32 %v2227_v36, %v2139_v7 }
 0x2dd   : > { %v2264_v28 = vmax.f32 %v2228_v31, 0.0 }
 0x2de   : > { %v2052_v22 = vpop.f32.mrf.mxu2 }
 0x2df   : > { %2296 = vst [vmem:[%s4309_s25 + $0xe8] sm:$0xff] %v2264_v28  ;;  %v2053_v46 = vadd.f32 %v2052_v22, %v1964_v53  ;;  %v2141_v37 = vpop.f32.mrf.mxu3 }
 0x2e0   : > { %v1965_v39 = vpop.f32.mrf.mxu1 }
 0x2e1   : > { %v2142_v29 = vadd.f32 %v2141_v37, %v2053_v46  ;;  %v1966_v56 = vadd.f32 %v1965_v39, %v4300_v38 }
 0x2e2   : > { %v2232_v11 = vpop.f32.mrf.mxu0 }
 0x2e3   : > { %v2231_v35 = vadd.f32 %v2230_v10, %v2142_v29 }
 0x2e5   : > { %v2265_v58 = vmax.f32 %v2231_v35, 0.0 }
 0x2e6   : > { %v2054_v6 = vpop.f32.mrf.mxu2 }
 0x2e7   : > { %2297 = vst [vmem:[%s4309_s25 + $0xf0] sm:$0xff] %v2265_v58  ;;  %v2055_v15 = vadd.f32 %v2054_v6, %v1966_v56  ;;  %v2143_v8 = vpop.f32.mrf.mxu3 }
 0x2e9   : > { %v2144_v12 = vadd.f32 %v2143_v8, %v2055_v15 }
 0x2eb   : > { %v2233_v18 = vadd.f32 %v2232_v11, %v2144_v12 }
 0x2ed   : > { %v2266_v49 = vmax.f32 %v2233_v18, 0.0 }
 0x2ef   : > { %2298 = vst [vmem:[%s4309_s25 + $0xf8] sm:$0xff] %v2266_v49 }
 0x2f0 PF: > { %s15_s18 = sadd.s32 1, %s3043_s18  }
 0x2f1   : > { %p12_p4 = scmp.ge.s32.totalorder %s15_s18, 4  }
 0x2f3   :  { %14 = sbr.rel (!%p12_p4) target bundleno = 1 (0x1), region = 70 }

</bundles_post_ra>
